<compile_context>
chip_gen: v7x
topology: tpu7x:2x2x1
jax: 0.10.0
libtpu: 0.0.40
codegen_flags: <defaults>
</compile_context>

<pallas_src>
import functools

import jax
import jax.numpy as jnp
from jax import lax
from jax.experimental import pallas as pl
from jax.experimental.pallas import tpu as pltpu


_LANE = 128
_SLACK_ROWS = 8   # >= 2: shifted 3x3 taps over-read by at most 2 rows


def _round_up(x, m):
    return (x + m - 1) // m * m


def bottleneck_kernel(x_ref, w1_ref, s1_ref, b1_ref,
                      w2_ref, s2_ref, b2_ref,
                      w3_ref, s3_ref, b3_ref,
                      o_ref, pad_ref, acc_ref, *, TH, H, W):
    Wp = W + 2                      # padded row width (3x3 halo)
    PR = (TH + 2) * Wp              # rows of the flattened padded tile
    MF = TH * Wp                    # flattened conv2/conv3 rows (incl. junk cols)
    P = w1_ref.shape[1]             # padded mid channels
    C = w3_ref.shape[1]             # padded in/out channels

    h = pl.program_id(1)
    row0 = pl.multiple_of(h * TH, TH)          # first padded-input row of tile

    # ---- conv1 (1x1) + bn1 + relu over the whole (TH+2, Wp) padded tile ----
    xs = x_ref[0, pl.ds(row0, TH + 2)]                      # (TH+2, Wp, C) f32
    t1 = jnp.dot(xs.reshape(PR, C).astype(jnp.bfloat16), w1_ref[...],
                 preferred_element_type=jnp.float32)        # (PR, P) f32
    t1 = jnp.maximum(t1 * s1_ref[...] + b1_ref[...], 0.0)

    # Zero the conv2 padding positions: the wrapper's zero halo rows/cols pick
    # up relu(b1) through bn1, but conv2's zero padding must be exactly 0.
    t1 = t1.reshape(TH + 2, Wp, P)
    rr = lax.broadcasted_iota(jnp.int32, (TH + 2, Wp, P), 0) + row0
    cc = lax.broadcasted_iota(jnp.int32, (TH + 2, Wp, P), 1)
    keep = (rr >= 1) & (rr <= H) & (cc >= 1) & (cc <= W)
    t1 = jnp.where(keep, t1, 0.0)

    # Stage the padded tile flattened row-major: every 3x3 tap is then a
    # contiguous row-offset slice (no strided 3-D window + reshape per tap).
    pad_ref[pl.ds(0, PR), :] = t1.reshape(PR, P)
    slack = pad_ref.shape[0] - PR     # keep the tap over-read rows deterministic
    pad_ref[pl.ds(PR, slack), :] = jnp.zeros((slack, P), jnp.float32)

    # ---- conv2 (3x3, stride=1, pad=1) + bn2 + relu --------------------------
    # 9 shifted contiguous taps, accumulated into an f32 VMEM scratch.
    for k in range(9):
        dy, dx = k // 3, k % 3
        win = pad_ref[pl.ds(dy * Wp + dx, MF), :].astype(jnp.bfloat16)
        part = jnp.dot(win, w2_ref[k], preferred_element_type=jnp.float32)
        if k == 0:
            acc_ref[...] = part
        else:
            acc_ref[...] += part
    t2 = jnp.maximum(acc_ref[...] * s2_ref[...] + b2_ref[...], 0.0)  # (MF, P)

    # ---- conv3 (1x1) + bn3 ---------------------------------------------------
    t3 = jnp.dot(t2.astype(jnp.bfloat16), w3_ref[...],
                 preferred_element_type=jnp.float32)        # (MF, C) f32
    t3 = t3 * s3_ref[...] + b3_ref[...]

    # ---- residual add + relu; drop the junk halo columns --------------------
    res = x_ref[0, pl.ds(row0 + 1, TH), pl.ds(1, W), :]     # (TH, W, C) f32
    out = t3.reshape(TH, Wp, C)[:, :W, :] + res
    o_ref[0] = jnp.maximum(out, 0.0).astype(o_ref.dtype)


def bottleneck_forward(x_nchw, params, *, row_tile=8):
    """Bottleneck forward (stride=1, downsample=None).  NCHW in / NCHW out."""
    w1, s1, b1, w2, s2, b2, w3, s3, b3 = params
    N, Cin, H, W = x_nchw.shape
    P = w1.shape[1]
    Cout = w3.shape[1]
    assert Cin == Cout, "stride=1 / downsample=None requires inplanes == 4*planes"

    C_pad = _round_up(Cin, _LANE)
    P_pad = _round_up(P, _LANE)
    TH = row_tile if H % row_tile == 0 else H
    NH = H // TH
    Wp = W + 2
    PR = (TH + 2) * Wp
    MF = TH * Wp

    # NCHW -> NHWC, zero halo on H/W, zero-pad channels to a lane multiple.
    # TODO(synk): keeping the surrounding network NHWC end-to-end would remove
    # this transpose/pad round-trip from the hot path.
    x = jnp.transpose(x_nchw, (0, 2, 3, 1)).astype(jnp.float32)
    x = jnp.pad(x, ((0, 0), (1, 1), (1, 1), (0, C_pad - Cin)))

    # Weights -> bf16 (MXU-native); folded-BN scale/bias stay f32.  Padded
    # channels get zero weight/scale/bias so they contribute exact zeros.
    def pad_mat(a, r, c):
        return jnp.pad(a, ((0, r - a.shape[0]), (0, c - a.shape[1])))

    def pad_vec(v, c):
        v = jnp.reshape(v, (1, -1)).astype(jnp.float32)
        return jnp.pad(v, ((0, 0), (0, c - v.shape[1])))

    w1p = pad_mat(w1, C_pad, P_pad).astype(jnp.bfloat16)
    w2p = jnp.pad(w2, ((0, 0), (0, 0), (0, P_pad - P), (0, P_pad - P)))
    w2p = w2p.reshape(9, P_pad, P_pad).astype(jnp.bfloat16)    # tap-major HWIO
    w3p = pad_mat(w3, P_pad, C_pad).astype(jnp.bfloat16)
    s1p, b1p = pad_vec(s1, P_pad), pad_vec(b1, P_pad)
    s2p, b2p = pad_vec(s2, P_pad), pad_vec(b2, P_pad)
    s3p, b3p = pad_vec(s3, C_pad), pad_vec(b3, C_pad)

    kernel = functools.partial(bottleneck_kernel, TH=TH, H=H, W=W)

    out = pl.pallas_call(
        kernel,
        out_shape=jax.ShapeDtypeStruct((N, H, W, C_pad), jnp.float32),
        grid_spec=pltpu.PrefetchScalarGridSpec(
            num_scalar_prefetch=0,
            grid=(N, NH),
            in_specs=[
                # Padded input image: VMEM-resident across the row tiles of n.
                pl.BlockSpec((1, H + 2, Wp, C_pad), lambda n, h: (n, 0, 0, 0)),
                # Weights / folded-BN params: constant block index.
                # (On v7x, pipeline_mode=pl.Buffered(1) here would drop the
                # redundant second weight buffer; left at default for safety.)
                pl.BlockSpec((C_pad, P_pad), lambda n, h: (0, 0)),
                pl.BlockSpec((1, P_pad), lambda n, h: (0, 0)),
                pl.BlockSpec((1, P_pad), lambda n, h: (0, 0)),
                pl.BlockSpec((9, P_pad, P_pad), lambda n, h: (0, 0, 0)),
                pl.BlockSpec((1, P_pad), lambda n, h: (0, 0)),
                pl.BlockSpec((1, P_pad), lambda n, h: (0, 0)),
                pl.BlockSpec((P_pad, C_pad), lambda n, h: (0, 0)),
                pl.BlockSpec((1, C_pad), lambda n, h: (0, 0)),
                pl.BlockSpec((1, C_pad), lambda n, h: (0, 0)),
            ],
            out_specs=pl.BlockSpec((1, TH, W, C_pad), lambda n, h: (n, h, 0, 0)),
            scratch_shapes=[
                pltpu.VMEM((PR + _SLACK_ROWS, P_pad), jnp.float32),  # flat tile
                pltpu.VMEM((MF, P_pad), jnp.float32),                # conv2 acc
            ]),
        compiler_params=pltpu.CompilerParams(
            dimension_semantics=("parallel", "parallel"),
            vmem_limit_bytes=32 * 1024 * 1024),
    )(x, w1p, s1p, b1p, w2p, s2p, b2p, w3p, s3p, b3p)

    out = out[..., :Cout]
    return jnp.transpose(out, (0, 3, 1, 2))            # back to NCHW


def make_params(key, inplanes, planes, expansion=4, bn_eps=1e-5):
    """Deterministic synthetic parameters; BN folded to (scale, bias)."""
    outplanes = planes * expansion
    ks = jax.random.split(key, 15)

    def fold_bn(kg, kb, km, kv, c):
        gamma = jax.random.uniform(kg, (c,), jnp.float32, 0.5, 1.5)
        beta = 0.1 * jax.random.normal(kb, (c,), jnp.float32)
        mean = 0.1 * jax.random.normal(km, (c,), jnp.float32)
        var = jax.random.uniform(kv, (c,), jnp.float32, 0.5, 1.5)
        scale = gamma / jnp.sqrt(var + bn_eps)
        bias = beta - mean * scale
        return scale.reshape(1, c), bias.reshape(1, c)

    w1 = 0.1 * jax.random.normal(ks[0], (inplanes, planes), jnp.float32)
    s1, b1 = fold_bn(ks[1], ks[2], ks[3], ks[4], planes)
    w2 = 0.1 * jax.random.normal(ks[5], (3, 3, planes, planes), jnp.float32)  # HWIO
    s2, b2 = fold_bn(ks[6], ks[7], ks[8], ks[9], planes)
    w3 = 0.1 * jax.random.normal(ks[10], (planes, outplanes), jnp.float32)
    s3, b3 = fold_bn(ks[11], ks[12], ks[13], ks[14], outplanes)
    return (w1, s1, b1, w2, s2, b2, w3, s3, b3)


def reference_forward(x_nchw, params):
    """Pure-JAX reference (lax.conv), with the same bf16 operand rounding."""
    w1, s1, b1, w2, s2, b2, w3, s3, b3 = params
    q = lambda a: a.astype(jnp.bfloat16).astype(jnp.float32)
    x = jnp.transpose(x_nchw, (0, 2, 3, 1)).astype(jnp.float32)
    dn = lax.conv_dimension_numbers(x.shape, (1, 1, 1, 1),
                                    ('NHWC', 'HWIO', 'NHWC'))
    conv = functools.partial(lax.conv_general_dilated,
                             window_strides=(1, 1), dimension_numbers=dn)
    t = conv(q(x), q(w1).reshape(1, 1, *w1.shape), padding='VALID') * s1[0] + b1[0]
    t = jnp.maximum(t, 0.0)
    t = conv(q(t), q(w2), padding='SAME') * s2[0] + b2[0]
    t = jnp.maximum(t, 0.0)
    t = conv(q(t), q(w3).reshape(1, 1, *w3.shape), padding='VALID') * s3[0] + b3[0]
    out = jnp.maximum(t + x, 0.0)
    return jnp.transpose(out, (0, 3, 1, 2))


if __name__ == "__main__":
    key = jax.random.PRNGKey(0)
    k_x, k_p = jax.random.split(key)

    # Small but lane-friendly shapes: inplanes = 4 * planes = 128 channels so
    # the residual / output channel dim matches the 128-wide vreg lanes.
    N, planes, H, W = 2, 32, 16, 16
    inplanes = planes * 4                                 # 128
    x = jax.random.normal(k_x, (N, inplanes, H, W), jnp.float32)

    params = make_params(k_p, inplanes, planes)

    out = jax.block_until_ready(jax.jit(bottleneck_forward)(x, params))
    ref = jax.block_until_ready(reference_forward(x, params))

    assert out.shape == (N, inplanes, H, W)
    err = float(jnp.max(jnp.abs(out - ref)))
    assert err < 1e-2, f"mismatch vs JAX reference: {err}"

    print("KERNEL_OK")
</pallas_src>

<mosaic_0001>
module attributes {stable_mosaic.version = 11 : i64} {
  func.func @bottleneck_kernel(%arg0: i32, %arg1: i32, %arg2: memref<1x18x18x128xf32, #tpu.memory_space<vmem>>, %arg3: memref<128x128xbf16, #tpu.memory_space<vmem>>, %arg4: memref<1x128xf32, #tpu.memory_space<vmem>>, %arg5: memref<1x128xf32, #tpu.memory_space<vmem>>, %arg6: memref<9x128x128xbf16, #tpu.memory_space<vmem>>, %arg7: memref<1x128xf32, #tpu.memory_space<vmem>>, %arg8: memref<1x128xf32, #tpu.memory_space<vmem>>, %arg9: memref<128x128xbf16, #tpu.memory_space<vmem>>, %arg10: memref<1x128xf32, #tpu.memory_space<vmem>>, %arg11: memref<1x128xf32, #tpu.memory_space<vmem>>, %arg12: memref<1x8x16x128xf32, #tpu.memory_space<vmem>>, %arg13: memref<188x128xf32, #tpu.memory_space<vmem>>, %arg14: memref<144x128xf32, #tpu.memory_space<vmem>>) attributes {dimension_semantics = [#tpu.dimension_semantics<parallel>, #tpu.dimension_semantics<parallel>], iteration_bounds = array<i64: 2, 2>, scalar_prefetch = 0 : i64, scratch_operands = 2 : i64, tpu.core_type = #tpu.core_type<tc>, window_params = [{transform_indices = @transform_0, window_bounds = array<i64: 1, 18, 18, 128>}, {pipeline_mode = #tpu.pipeline_mode<synchronous>, transform_indices = @transform_1, window_bounds = array<i64: 128, 128>}, {pipeline_mode = #tpu.pipeline_mode<synchronous>, transform_indices = @transform_2, window_bounds = array<i64: 1, 128>}, {pipeline_mode = #tpu.pipeline_mode<synchronous>, transform_indices = @transform_3, window_bounds = array<i64: 1, 128>}, {pipeline_mode = #tpu.pipeline_mode<synchronous>, transform_indices = @transform_4, window_bounds = array<i64: 9, 128, 128>}, {pipeline_mode = #tpu.pipeline_mode<synchronous>, transform_indices = @transform_5, window_bounds = array<i64: 1, 128>}, {pipeline_mode = #tpu.pipeline_mode<synchronous>, transform_indices = @transform_6, window_bounds = array<i64: 1, 128>}, {pipeline_mode = #tpu.pipeline_mode<synchronous>, transform_indices = @transform_7, window_bounds = array<i64: 128, 128>}, {pipeline_mode = #tpu.pipeline_mode<synchronous>, transform_indices = @transform_8, window_bounds = array<i64: 1, 128>}, {pipeline_mode = #tpu.pipeline_mode<synchronous>, transform_indices = @transform_9, window_bounds = array<i64: 1, 128>}, {transform_indices = @transform_10, window_bounds = array<i64: 1, 8, 16, 128>}]} {
    %c8_i32 = arith.constant 8 : i32
    %0 = arith.muli %arg1, %c8_i32 : i32
    %1 = tpu.assume_multiple %0, 8 : i32
    %c0 = arith.constant 0 : index
    %2 = arith.index_cast %1 : i32 to index
    %c0_0 = arith.constant 0 : index
    %c0_1 = arith.constant 0 : index
    %3 = vector.load %arg2[%c0, %2, %c0_0, %c0_1] : memref<1x18x18x128xf32, #tpu.memory_space<vmem>>, vector<1x10x18x128xf32>
    %4 = vector.shape_cast %3 : vector<1x10x18x128xf32> to vector<10x18x128xf32>
    %5 = vector.shape_cast %4 : vector<10x18x128xf32> to vector<180x128xf32>
    %6 = arith.truncf %5 : vector<180x128xf32> to vector<180x128xbf16>
    %c0_2 = arith.constant 0 : index
    %c0_3 = arith.constant 0 : index
    %7 = vector.load %arg3[%c0_2, %c0_3] : memref<128x128xbf16, #tpu.memory_space<vmem>>, vector<128x128xbf16>
    %cst = arith.constant dense<0.000000e+00> : vector<180x128xf32>
    %8 = tpu.matmul %6, %7, %cst {dimension_numbers = #tpu.dot_dimension_numbers<[1], [0], [0], [1], [0, 0, 1, 1], [], []>} : vector<180x128xbf16>, vector<128x128xbf16>, vector<180x128xf32> -> vector<180x128xf32>
    %c0_4 = arith.constant 0 : index
    %c0_5 = arith.constant 0 : index
    %9 = vector.load %arg4[%c0_4, %c0_5] : memref<1x128xf32, #tpu.memory_space<vmem>>, vector<1x128xf32>
    %10 = vector.broadcast %9 : vector<1x128xf32> to vector<180x128xf32>
    %11 = arith.mulf %8, %10 : vector<180x128xf32>
    %c0_6 = arith.constant 0 : index
    %c0_7 = arith.constant 0 : index
    %12 = vector.load %arg5[%c0_6, %c0_7] : memref<1x128xf32, #tpu.memory_space<vmem>>, vector<1x128xf32>
    %13 = vector.broadcast %12 : vector<1x128xf32> to vector<180x128xf32>
    %14 = arith.addf %11, %13 : vector<180x128xf32>
    %cst_8 = arith.constant 0.000000e+00 : f32
    %15 = vector.broadcast %cst_8 : f32 to vector<180x128xf32>
    %16 = arith.maximumf %14, %15 : vector<180x128xf32>
    %17 = vector.shape_cast %16 : vector<180x128xf32> to vector<10x18x128xf32>
    %18 = tpu.iota {dimensions = array<i32: 0>} : vector<10x18x128xi32>
    %19 = vector.broadcast %1 : i32 to vector<10x18x128xi32>
    %20 = arith.addi %18, %19 : vector<10x18x128xi32>
    %21 = tpu.iota {dimensions = array<i32: 1>} : vector<10x18x128xi32>
    %c1_i32 = arith.constant 1 : i32
    %22 = vector.broadcast %c1_i32 : i32 to vector<10x18x128xi32>
    %23 = arith.cmpi sge, %20, %22 : vector<10x18x128xi32>
    %c16_i32 = arith.constant 16 : i32
    %24 = vector.broadcast %c16_i32 : i32 to vector<10x18x128xi32>
    %25 = arith.cmpi sle, %20, %24 : vector<10x18x128xi32>
    %26 = arith.andi %23, %25 : vector<10x18x128xi1>
    %c1_i32_9 = arith.constant 1 : i32
    %27 = vector.broadcast %c1_i32_9 : i32 to vector<10x18x128xi32>
    %28 = arith.cmpi sge, %21, %27 : vector<10x18x128xi32>
    %29 = arith.andi %26, %28 : vector<10x18x128xi1>
    %c16_i32_10 = arith.constant 16 : i32
    %30 = vector.broadcast %c16_i32_10 : i32 to vector<10x18x128xi32>
    %31 = arith.cmpi sle, %21, %30 : vector<10x18x128xi32>
    %32 = arith.andi %29, %31 : vector<10x18x128xi1>
    %cst_11 = arith.constant 0.000000e+00 : f32
    %33 = vector.broadcast %cst_11 : f32 to vector<10x18x128xf32>
    %34 = arith.select %32, %17, %33 : vector<10x18x128xi1>, vector<10x18x128xf32>
    %35 = vector.shape_cast %34 : vector<10x18x128xf32> to vector<180x128xf32>
    %c0_12 = arith.constant 0 : index
    %c0_13 = arith.constant 0 : index
    %36 = vector.load %arg13[%c0_12, %c0_13] : memref<188x128xf32, #tpu.memory_space<vmem>>, vector<180x128xf32>
    tpu.vector_store %arg13[%c0_12, %c0_13], %35 {strides = array<i32>} : memref<188x128xf32, #tpu.memory_space<vmem>>, vector<180x128xf32>,
    %cst_14 = arith.constant 0.000000e+00 : f32
    %37 = vector.broadcast %cst_14 : f32 to vector<8x128xf32>
    %c180 = arith.constant 180 : index
    %c0_15 = arith.constant 0 : index
    %38 = vector.load %arg13[%c180, %c0_15] : memref<188x128xf32, #tpu.memory_space<vmem>>, vector<8x128xf32>
    tpu.vector_store %arg13[%c180, %c0_15], %37 {strides = array<i32>} : memref<188x128xf32, #tpu.memory_space<vmem>>, vector<8x128xf32>,
    %c0_16 = arith.constant 0 : index
    %c0_17 = arith.constant 0 : index
    %39 = vector.load %arg13[%c0_16, %c0_17] : memref<188x128xf32, #tpu.memory_space<vmem>>, vector<144x128xf32>
    %40 = arith.truncf %39 : vector<144x128xf32> to vector<144x128xbf16>
    %c0_18 = arith.constant 0 : index
    %c0_19 = arith.constant 0 : index
    %c0_20 = arith.constant 0 : index
    %41 = vector.load %arg6[%c0_18, %c0_19, %c0_20] : memref<9x128x128xbf16, #tpu.memory_space<vmem>>, vector<1x128x128xbf16>
    %42 = vector.shape_cast %41 : vector<1x128x128xbf16> to vector<128x128xbf16>
    %cst_21 = arith.constant dense<0.000000e+00> : vector<144x128xf32>
    %43 = tpu.matmul %40, %42, %cst_21 {dimension_numbers = #tpu.dot_dimension_numbers<[1], [0], [0], [1], [0, 0, 1, 1], [], []>} : vector<144x128xbf16>, vector<128x128xbf16>, vector<144x128xf32> -> vector<144x128xf32>
    %c0_22 = arith.constant 0 : index
    %c0_23 = arith.constant 0 : index
    %44 = vector.load %arg14[%c0_22, %c0_23] : memref<144x128xf32, #tpu.memory_space<vmem>>, vector<144x128xf32>
    tpu.vector_store %arg14[%c0_22, %c0_23], %43 {strides = array<i32>} : memref<144x128xf32, #tpu.memory_space<vmem>>, vector<144x128xf32>,
    %c1 = arith.constant 1 : index
    %c0_24 = arith.constant 0 : index
    %45 = vector.load %arg13[%c1, %c0_24] : memref<188x128xf32, #tpu.memory_space<vmem>>, vector<144x128xf32>
    %46 = arith.truncf %45 : vector<144x128xf32> to vector<144x128xbf16>
    %c1_25 = arith.constant 1 : index
    %c0_26 = arith.constant 0 : index
    %c0_27 = arith.constant 0 : index
    %47 = vector.load %arg6[%c1_25, %c0_26, %c0_27] : memref<9x128x128xbf16, #tpu.memory_space<vmem>>, vector<1x128x128xbf16>
    %48 = vector.shape_cast %47 : vector<1x128x128xbf16> to vector<128x128xbf16>
    %cst_28 = arith.constant dense<0.000000e+00> : vector<144x128xf32>
    %49 = tpu.matmul %46, %48, %cst_28 {dimension_numbers = #tpu.dot_dimension_numbers<[1], [0], [0], [1], [0, 0, 1, 1], [], []>} : vector<144x128xbf16>, vector<128x128xbf16>, vector<144x128xf32> -> vector<144x128xf32>
    %c0_29 = arith.constant 0 : index
    %c0_30 = arith.constant 0 : index
    %50 = vector.load %arg14[%c0_29, %c0_30] : memref<144x128xf32, #tpu.memory_space<vmem>>, vector<144x128xf32>
    %51 = arith.addf %50, %49 : vector<144x128xf32>
    %c0_31 = arith.constant 0 : index
    %c0_32 = arith.constant 0 : index
    %52 = vector.load %arg14[%c0_31, %c0_32] : memref<144x128xf32, #tpu.memory_space<vmem>>, vector<144x128xf32>
    tpu.vector_store %arg14[%c0_31, %c0_32], %51 {strides = array<i32>} : memref<144x128xf32, #tpu.memory_space<vmem>>, vector<144x128xf32>,
    %c2 = arith.constant 2 : index
    %c0_33 = arith.constant 0 : index
    %53 = vector.load %arg13[%c2, %c0_33] : memref<188x128xf32, #tpu.memory_space<vmem>>, vector<144x128xf32>
    %54 = arith.truncf %53 : vector<144x128xf32> to vector<144x128xbf16>
    %c2_34 = arith.constant 2 : index
    %c0_35 = arith.constant 0 : index
    %c0_36 = arith.constant 0 : index
    %55 = vector.load %arg6[%c2_34, %c0_35, %c0_36] : memref<9x128x128xbf16, #tpu.memory_space<vmem>>, vector<1x128x128xbf16>
    %56 = vector.shape_cast %55 : vector<1x128x128xbf16> to vector<128x128xbf16>
    %cst_37 = arith.constant dense<0.000000e+00> : vector<144x128xf32>
    %57 = tpu.matmul %54, %56, %cst_37 {dimension_numbers = #tpu.dot_dimension_numbers<[1], [0], [0], [1], [0, 0, 1, 1], [], []>} : vector<144x128xbf16>, vector<128x128xbf16>, vector<144x128xf32> -> vector<144x128xf32>
    %c0_38 = arith.constant 0 : index
    %c0_39 = arith.constant 0 : index
    %58 = vector.load %arg14[%c0_38, %c0_39] : memref<144x128xf32, #tpu.memory_space<vmem>>, vector<144x128xf32>
    %59 = arith.addf %58, %57 : vector<144x128xf32>
    %c0_40 = arith.constant 0 : index
    %c0_41 = arith.constant 0 : index
    %60 = vector.load %arg14[%c0_40, %c0_41] : memref<144x128xf32, #tpu.memory_space<vmem>>, vector<144x128xf32>
    tpu.vector_store %arg14[%c0_40, %c0_41], %59 {strides = array<i32>} : memref<144x128xf32, #tpu.memory_space<vmem>>, vector<144x128xf32>,
    %c18 = arith.constant 18 : index
    %c0_42 = arith.constant 0 : index
    %61 = vector.load %arg13[%c18, %c0_42] : memref<188x128xf32, #tpu.memory_space<vmem>>, vector<144x128xf32>
    %62 = arith.truncf %61 : vector<144x128xf32> to vector<144x128xbf16>
    %c3 = arith.constant 3 : index
    %c0_43 = arith.constant 0 : index
    %c0_44 = arith.constant 0 : index
    %63 = vector.load %arg6[%c3, %c0_43, %c0_44] : memref<9x128x128xbf16, #tpu.memory_space<vmem>>, vector<1x128x128xbf16>
    %64 = vector.shape_cast %63 : vector<1x128x128xbf16> to vector<128x128xbf16>
    %cst_45 = arith.constant dense<0.000000e+00> : vector<144x128xf32>
    %65 = tpu.matmul %62, %64, %cst_45 {dimension_numbers = #tpu.dot_dimension_numbers<[1], [0], [0], [1], [0, 0, 1, 1], [], []>} : vector<144x128xbf16>, vector<128x128xbf16>, vector<144x128xf32> -> vector<144x128xf32>
    %c0_46 = arith.constant 0 : index
    %c0_47 = arith.constant 0 : index
    %66 = vector.load %arg14[%c0_46, %c0_47] : memref<144x128xf32, #tpu.memory_space<vmem>>, vector<144x128xf32>
    %67 = arith.addf %66, %65 : vector<144x128xf32>
    %c0_48 = arith.constant 0 : index
    %c0_49 = arith.constant 0 : index
    %68 = vector.load %arg14[%c0_48, %c0_49] : memref<144x128xf32, #tpu.memory_space<vmem>>, vector<144x128xf32>
    tpu.vector_store %arg14[%c0_48, %c0_49], %67 {strides = array<i32>} : memref<144x128xf32, #tpu.memory_space<vmem>>, vector<144x128xf32>,
    %c19 = arith.constant 19 : index
    %c0_50 = arith.constant 0 : index
    %69 = vector.load %arg13[%c19, %c0_50] : memref<188x128xf32, #tpu.memory_space<vmem>>, vector<144x128xf32>
    %70 = arith.truncf %69 : vector<144x128xf32> to vector<144x128xbf16>
    %c4 = arith.constant 4 : index
    %c0_51 = arith.constant 0 : index
    %c0_52 = arith.constant 0 : index
    %71 = vector.load %arg6[%c4, %c0_51, %c0_52] : memref<9x128x128xbf16, #tpu.memory_space<vmem>>, vector<1x128x128xbf16>
    %72 = vector.shape_cast %71 : vector<1x128x128xbf16> to vector<128x128xbf16>
    %cst_53 = arith.constant dense<0.000000e+00> : vector<144x128xf32>
    %73 = tpu.matmul %70, %72, %cst_53 {dimension_numbers = #tpu.dot_dimension_numbers<[1], [0], [0], [1], [0, 0, 1, 1], [], []>} : vector<144x128xbf16>, vector<128x128xbf16>, vector<144x128xf32> -> vector<144x128xf32>
    %c0_54 = arith.constant 0 : index
    %c0_55 = arith.constant 0 : index
    %74 = vector.load %arg14[%c0_54, %c0_55] : memref<144x128xf32, #tpu.memory_space<vmem>>, vector<144x128xf32>
    %75 = arith.addf %74, %73 : vector<144x128xf32>
    %c0_56 = arith.constant 0 : index
    %c0_57 = arith.constant 0 : index
    %76 = vector.load %arg14[%c0_56, %c0_57] : memref<144x128xf32, #tpu.memory_space<vmem>>, vector<144x128xf32>
    tpu.vector_store %arg14[%c0_56, %c0_57], %75 {strides = array<i32>} : memref<144x128xf32, #tpu.memory_space<vmem>>, vector<144x128xf32>,
    %c20 = arith.constant 20 : index
    %c0_58 = arith.constant 0 : index
    %77 = vector.load %arg13[%c20, %c0_58] : memref<188x128xf32, #tpu.memory_space<vmem>>, vector<144x128xf32>
    %78 = arith.truncf %77 : vector<144x128xf32> to vector<144x128xbf16>
    %c5 = arith.constant 5 : index
    %c0_59 = arith.constant 0 : index
    %c0_60 = arith.constant 0 : index
    %79 = vector.load %arg6[%c5, %c0_59, %c0_60] : memref<9x128x128xbf16, #tpu.memory_space<vmem>>, vector<1x128x128xbf16>
    %80 = vector.shape_cast %79 : vector<1x128x128xbf16> to vector<128x128xbf16>
    %cst_61 = arith.constant dense<0.000000e+00> : vector<144x128xf32>
    %81 = tpu.matmul %78, %80, %cst_61 {dimension_numbers = #tpu.dot_dimension_numbers<[1], [0], [0], [1], [0, 0, 1, 1], [], []>} : vector<144x128xbf16>, vector<128x128xbf16>, vector<144x128xf32> -> vector<144x128xf32>
    %c0_62 = arith.constant 0 : index
    %c0_63 = arith.constant 0 : index
    %82 = vector.load %arg14[%c0_62, %c0_63] : memref<144x128xf32, #tpu.memory_space<vmem>>, vector<144x128xf32>
    %83 = arith.addf %82, %81 : vector<144x128xf32>
    %c0_64 = arith.constant 0 : index
    %c0_65 = arith.constant 0 : index
    %84 = vector.load %arg14[%c0_64, %c0_65] : memref<144x128xf32, #tpu.memory_space<vmem>>, vector<144x128xf32>
    tpu.vector_store %arg14[%c0_64, %c0_65], %83 {strides = array<i32>} : memref<144x128xf32, #tpu.memory_space<vmem>>, vector<144x128xf32>,
    %c36 = arith.constant 36 : index
    %c0_66 = arith.constant 0 : index
    %85 = vector.load %arg13[%c36, %c0_66] : memref<188x128xf32, #tpu.memory_space<vmem>>, vector<144x128xf32>
    %86 = arith.truncf %85 : vector<144x128xf32> to vector<144x128xbf16>
    %c6 = arith.constant 6 : index
    %c0_67 = arith.constant 0 : index
    %c0_68 = arith.constant 0 : index
    %87 = vector.load %arg6[%c6, %c0_67, %c0_68] : memref<9x128x128xbf16, #tpu.memory_space<vmem>>, vector<1x128x128xbf16>
    %88 = vector.shape_cast %87 : vector<1x128x128xbf16> to vector<128x128xbf16>
    %cst_69 = arith.constant dense<0.000000e+00> : vector<144x128xf32>
    %89 = tpu.matmul %86, %88, %cst_69 {dimension_numbers = #tpu.dot_dimension_numbers<[1], [0], [0], [1], [0, 0, 1, 1], [], []>} : vector<144x128xbf16>, vector<128x128xbf16>, vector<144x128xf32> -> vector<144x128xf32>
    %c0_70 = arith.constant 0 : index
    %c0_71 = arith.constant 0 : index
    %90 = vector.load %arg14[%c0_70, %c0_71] : memref<144x128xf32, #tpu.memory_space<vmem>>, vector<144x128xf32>
    %91 = arith.addf %90, %89 : vector<144x128xf32>
    %c0_72 = arith.constant 0 : index
    %c0_73 = arith.constant 0 : index
    %92 = vector.load %arg14[%c0_72, %c0_73] : memref<144x128xf32, #tpu.memory_space<vmem>>, vector<144x128xf32>
    tpu.vector_store %arg14[%c0_72, %c0_73], %91 {strides = array<i32>} : memref<144x128xf32, #tpu.memory_space<vmem>>, vector<144x128xf32>,
    %c37 = arith.constant 37 : index
    %c0_74 = arith.constant 0 : index
    %93 = vector.load %arg13[%c37, %c0_74] : memref<188x128xf32, #tpu.memory_space<vmem>>, vector<144x128xf32>
    %94 = arith.truncf %93 : vector<144x128xf32> to vector<144x128xbf16>
    %c7 = arith.constant 7 : index
    %c0_75 = arith.constant 0 : index
    %c0_76 = arith.constant 0 : index
    %95 = vector.load %arg6[%c7, %c0_75, %c0_76] : memref<9x128x128xbf16, #tpu.memory_space<vmem>>, vector<1x128x128xbf16>
    %96 = vector.shape_cast %95 : vector<1x128x128xbf16> to vector<128x128xbf16>
    %cst_77 = arith.constant dense<0.000000e+00> : vector<144x128xf32>
    %97 = tpu.matmul %94, %96, %cst_77 {dimension_numbers = #tpu.dot_dimension_numbers<[1], [0], [0], [1], [0, 0, 1, 1], [], []>} : vector<144x128xbf16>, vector<128x128xbf16>, vector<144x128xf32> -> vector<144x128xf32>
    %c0_78 = arith.constant 0 : index
    %c0_79 = arith.constant 0 : index
    %98 = vector.load %arg14[%c0_78, %c0_79] : memref<144x128xf32, #tpu.memory_space<vmem>>, vector<144x128xf32>
    %99 = arith.addf %98, %97 : vector<144x128xf32>
    %c0_80 = arith.constant 0 : index
    %c0_81 = arith.constant 0 : index
    %100 = vector.load %arg14[%c0_80, %c0_81] : memref<144x128xf32, #tpu.memory_space<vmem>>, vector<144x128xf32>
    tpu.vector_store %arg14[%c0_80, %c0_81], %99 {strides = array<i32>} : memref<144x128xf32, #tpu.memory_space<vmem>>, vector<144x128xf32>,
    %c38 = arith.constant 38 : index
    %c0_82 = arith.constant 0 : index
    %101 = vector.load %arg13[%c38, %c0_82] : memref<188x128xf32, #tpu.memory_space<vmem>>, vector<144x128xf32>
    %102 = arith.truncf %101 : vector<144x128xf32> to vector<144x128xbf16>
    %c8 = arith.constant 8 : index
    %c0_83 = arith.constant 0 : index
    %c0_84 = arith.constant 0 : index
    %103 = vector.load %arg6[%c8, %c0_83, %c0_84] : memref<9x128x128xbf16, #tpu.memory_space<vmem>>, vector<1x128x128xbf16>
    %104 = vector.shape_cast %103 : vector<1x128x128xbf16> to vector<128x128xbf16>
    %cst_85 = arith.constant dense<0.000000e+00> : vector<144x128xf32>
    %105 = tpu.matmul %102, %104, %cst_85 {dimension_numbers = #tpu.dot_dimension_numbers<[1], [0], [0], [1], [0, 0, 1, 1], [], []>} : vector<144x128xbf16>, vector<128x128xbf16>, vector<144x128xf32> -> vector<144x128xf32>
    %c0_86 = arith.constant 0 : index
    %c0_87 = arith.constant 0 : index
    %106 = vector.load %arg14[%c0_86, %c0_87] : memref<144x128xf32, #tpu.memory_space<vmem>>, vector<144x128xf32>
    %107 = arith.addf %106, %105 : vector<144x128xf32>
    %c0_88 = arith.constant 0 : index
    %c0_89 = arith.constant 0 : index
    %108 = vector.load %arg14[%c0_88, %c0_89] : memref<144x128xf32, #tpu.memory_space<vmem>>, vector<144x128xf32>
    tpu.vector_store %arg14[%c0_88, %c0_89], %107 {strides = array<i32>} : memref<144x128xf32, #tpu.memory_space<vmem>>, vector<144x128xf32>,
    %c0_90 = arith.constant 0 : index
    %c0_91 = arith.constant 0 : index
    %109 = vector.load %arg14[%c0_90, %c0_91] : memref<144x128xf32, #tpu.memory_space<vmem>>, vector<144x128xf32>
    %c0_92 = arith.constant 0 : index
    %c0_93 = arith.constant 0 : index
    %110 = vector.load %arg7[%c0_92, %c0_93] : memref<1x128xf32, #tpu.memory_space<vmem>>, vector<1x128xf32>
    %111 = vector.broadcast %110 : vector<1x128xf32> to vector<144x128xf32>
    %112 = arith.mulf %109, %111 : vector<144x128xf32>
    %c0_94 = arith.constant 0 : index
    %c0_95 = arith.constant 0 : index
    %113 = vector.load %arg8[%c0_94, %c0_95] : memref<1x128xf32, #tpu.memory_space<vmem>>, vector<1x128xf32>
    %114 = vector.broadcast %113 : vector<1x128xf32> to vector<144x128xf32>
    %115 = arith.addf %112, %114 : vector<144x128xf32>
    %cst_96 = arith.constant 0.000000e+00 : f32
    %116 = vector.broadcast %cst_96 : f32 to vector<144x128xf32>
    %117 = arith.maximumf %115, %116 : vector<144x128xf32>
    %118 = arith.truncf %117 : vector<144x128xf32> to vector<144x128xbf16>
    %c0_97 = arith.constant 0 : index
    %c0_98 = arith.constant 0 : index
    %119 = vector.load %arg9[%c0_97, %c0_98] : memref<128x128xbf16, #tpu.memory_space<vmem>>, vector<128x128xbf16>
    %cst_99 = arith.constant dense<0.000000e+00> : vector<144x128xf32>
    %120 = tpu.matmul %118, %119, %cst_99 {dimension_numbers = #tpu.dot_dimension_numbers<[1], [0], [0], [1], [0, 0, 1, 1], [], []>} : vector<144x128xbf16>, vector<128x128xbf16>, vector<144x128xf32> -> vector<144x128xf32>
    %c0_100 = arith.constant 0 : index
    %c0_101 = arith.constant 0 : index
    %121 = vector.load %arg10[%c0_100, %c0_101] : memref<1x128xf32, #tpu.memory_space<vmem>>, vector<1x128xf32>
    %122 = vector.broadcast %121 : vector<1x128xf32> to vector<144x128xf32>
    %123 = arith.mulf %120, %122 : vector<144x128xf32>
    %c0_102 = arith.constant 0 : index
    %c0_103 = arith.constant 0 : index
    %124 = vector.load %arg11[%c0_102, %c0_103] : memref<1x128xf32, #tpu.memory_space<vmem>>, vector<1x128xf32>
    %125 = vector.broadcast %124 : vector<1x128xf32> to vector<144x128xf32>
    %126 = arith.addf %123, %125 : vector<144x128xf32>
    %c1_i32_104 = arith.constant 1 : i32
    %127 = arith.addi %1, %c1_i32_104 : i32
    %c0_105 = arith.constant 0 : index
    %128 = arith.index_cast %127 : i32 to index
    %c1_106 = arith.constant 1 : index
    %c0_107 = arith.constant 0 : index
    %129 = vector.load %arg2[%c0_105, %128, %c1_106, %c0_107] : memref<1x18x18x128xf32, #tpu.memory_space<vmem>>, vector<1x8x16x128xf32>
    %130 = vector.shape_cast %129 : vector<1x8x16x128xf32> to vector<8x16x128xf32>
    %131 = vector.shape_cast %126 : vector<144x128xf32> to vector<8x18x128xf32>
    %132 = vector.extract_strided_slice %131 {offsets = [0, 0, 0], sizes = [8, 16, 128], strides = [1, 1, 1]} : vector<8x18x128xf32> to vector<8x16x128xf32>
    %133 = arith.addf %132, %130 : vector<8x16x128xf32>
    %cst_108 = arith.constant 0.000000e+00 : f32
    %134 = vector.broadcast %cst_108 : f32 to vector<8x16x128xf32>
    %135 = arith.maximumf %133, %134 : vector<8x16x128xf32>
    %c0_109 = arith.constant 0 : index
    %c0_110 = arith.constant 0 : index
    %c0_111 = arith.constant 0 : index
    %c0_112 = arith.constant 0 : index
    %136 = vector.load %arg12[%c0_109, %c0_110, %c0_111, %c0_112] : memref<1x8x16x128xf32, #tpu.memory_space<vmem>>, vector<1x8x16x128xf32>
    %137 = vector.shape_cast %136 : vector<1x8x16x128xf32> to vector<8x16x128xf32>
    %138 = vector.shape_cast %135 : vector<8x16x128xf32> to vector<1x8x16x128xf32>
    tpu.vector_store %arg12[%c0_109, %c0_110, %c0_111, %c0_112], %138 {strides = array<i32>} : memref<1x8x16x128xf32, #tpu.memory_space<vmem>>, vector<1x8x16x128xf32>,
    return
  }
  func.func @transform_0(%arg0: i32, %arg1: i32) -> (i32, i32, i32, i32) {
    %c0_i32 = arith.constant 0 : i32
    %c0_i32_0 = arith.constant 0 : i32
    %c0_i32_1 = arith.constant 0 : i32
    %c0_i32_2 = arith.constant 0 : i32
    return %arg0, %c0_i32, %c0_i32_0, %c0_i32_1 : i32, i32, i32, i32
  }
  func.func @transform_1(%arg0: i32, %arg1: i32) -> (i32, i32) {
    %c0_i32 = arith.constant 0 : i32
    %c0_i32_0 = arith.constant 0 : i32
    %c0_i32_1 = arith.constant 0 : i32
    return %c0_i32, %c0_i32_0 : i32, i32
  }
  func.func @transform_2(%arg0: i32, %arg1: i32) -> (i32, i32) {
    %c0_i32 = arith.constant 0 : i32
    %c0_i32_0 = arith.constant 0 : i32
    %c0_i32_1 = arith.constant 0 : i32
    return %c0_i32, %c0_i32_0 : i32, i32
  }
  func.func @transform_3(%arg0: i32, %arg1: i32) -> (i32, i32) {
    %c0_i32 = arith.constant 0 : i32
    %c0_i32_0 = arith.constant 0 : i32
    %c0_i32_1 = arith.constant 0 : i32
    return %c0_i32, %c0_i32_0 : i32, i32
  }
  func.func @transform_4(%arg0: i32, %arg1: i32) -> (i32, i32, i32) {
    %c0_i32 = arith.constant 0 : i32
    %c0_i32_0 = arith.constant 0 : i32
    %c0_i32_1 = arith.constant 0 : i32
    %c0_i32_2 = arith.constant 0 : i32
    return %c0_i32, %c0_i32_0, %c0_i32_1 : i32, i32, i32
  }
  func.func @transform_5(%arg0: i32, %arg1: i32) -> (i32, i32) {
    %c0_i32 = arith.constant 0 : i32
    %c0_i32_0 = arith.constant 0 : i32
    %c0_i32_1 = arith.constant 0 : i32
    return %c0_i32, %c0_i32_0 : i32, i32
  }
  func.func @transform_6(%arg0: i32, %arg1: i32) -> (i32, i32) {
    %c0_i32 = arith.constant 0 : i32
    %c0_i32_0 = arith.constant 0 : i32
    %c0_i32_1 = arith.constant 0 : i32
    return %c0_i32, %c0_i32_0 : i32, i32
  }
  func.func @transform_7(%arg0: i32, %arg1: i32) -> (i32, i32) {
    %c0_i32 = arith.constant 0 : i32
    %c0_i32_0 = arith.constant 0 : i32
    %c0_i32_1 = arith.constant 0 : i32
    return %c0_i32, %c0_i32_0 : i32, i32
  }
  func.func @transform_8(%arg0: i32, %arg1: i32) -> (i32, i32) {
    %c0_i32 = arith.constant 0 : i32
    %c0_i32_0 = arith.constant 0 : i32
    %c0_i32_1 = arith.constant 0 : i32
    return %c0_i32, %c0_i32_0 : i32, i32
  }
  func.func @transform_9(%arg0: i32, %arg1: i32) -> (i32, i32) {
    %c0_i32 = arith.constant 0 : i32
    %c0_i32_0 = arith.constant 0 : i32
    %c0_i32_1 = arith.constant 0 : i32
    return %c0_i32, %c0_i32_0 : i32, i32
  }
  func.func @transform_10(%arg0: i32, %arg1: i32) -> (i32, i32, i32, i32) {
    %c0_i32 = arith.constant 0 : i32
    %c0_i32_0 = arith.constant 0 : i32
    %c0_i32_1 = arith.constant 0 : i32
    return %arg0, %arg1, %c0_i32, %c0_i32_0 : i32, i32, i32, i32
  }
}

</mosaic_0001>

<bundles_post_ra>
// kernel: bottleneck_forward.1
= control target key start
LH: loop header
LB: loop body
LE: loop exit
PB: predicated region body
PF: predicated region fallthrough
CT: control target
= control target key end

     0   :  { %15 = vsyncpa [#allocation5], 0  ;;  %s11144_s0 = inlined_call_operand.vmem [shape: f32[2,18,18,128], index: 0, kind: input, shape index: {}]   ;;  %s11145_s1 = inlined_call_operand.vmem [shape: bf16[128,128], index: 1, kind: input, shape index: {}]   ;;  %s11146_s2 = inlined_call_operand.vmem [shape: f32[1,128], index: 2, kind: input, shape index: {}]   ;;  %s11147_s3 = inlined_call_operand.vmem [shape: f32[1,128], index: 3, kind: input, shape index: {}]   ;;  %s11148_s4 = inlined_call_operand.vmem [shape: bf16[9,128,128], index: 4, kind: input, shape index: {}]   ;;  %s11149_s5 = inlined_call_operand.vmem [shape: f32[1,128], index: 5, kind: input, shape index: {}]   ;;  %s11150_s6 = inlined_call_operand.vmem [shape: f32[1,128], index: 6, kind: input, shape index: {}]   ;;  %s11151_s7 = inlined_call_operand.vmem [shape: bf16[128,128], index: 7, kind: input, shape index: {}]   ;;  %s11152_s8 = inlined_call_operand.vmem [shape: f32[1,128], index: 8, kind: input, shape index: {}]   ;;  %s11153_s9 = inlined_call_operand.vmem [shape: f32[1,128], index: 9, kind: input, shape index: {}]   ;;  %s11154_s10 = inlined_call_operand.hbm [shape: f32[2,16,16,128], index: 10, kind: output, shape index: {}]  }
   0x1   :  { %17 = vsyncpa [#allocation5 + $0x1], 0  ;;  %s8933_s13 = smov 0   ;;  %s8935_s14 = smov 0  }
   0x2   :  { %s8937_s15 = smov 0   ;;  %s8939_s16 = smov 0  }
   0x3   :  { %s8941_s17 = smov 0   ;;  %s8943_s18 = smov 0  }
   0x4   :  { %s8945_s19 = smov 0   ;;  %s8947_s20 = smov 0  }
   0x5 LB: > { %11159 = sst [smem:[#allocation7_spill]] %s8862_s18  ;;  %s7279_s21 = sadd.s32 4294967295, %s8870_s20   ;;  %s8870_s20 = sphi %s8947_s20, %s23_s20   ;;  %s8866_s19 = sphi %s8945_s19, %s11214_s19   ;;  %s8862_s18 = sphi %s8943_s18, %s11213_s18   ;;  %s8858_s17 = sphi %s8941_s17, %s11212_s17   ;;  %s8854_s16 = sphi %s8939_s16, %s11211_s16   ;;  %s8850_s15 = sphi %s8937_s15, %s11217_s15   ;;  %s8846_s14 = sphi %s8935_s14, %s11216_s14   ;;  %s8842_s13 = sphi %s8933_s13, %s11215_s13  }
   0x6   : > { %11160 = sst [smem:[#allocation8_spill]] %s8866_s19  ;;  %s7280_s22 = sadd.s32 4294967294, %s8870_s20  }
   0x7   : > { %s32_s23 = sadd.s32 1, %s8862_s18  ;;  %s35_s24 = sadd.s32 1, %s8866_s19 }
   0x8   : > { %p33_p0 = scmp.ge.s32.totalorder %s32_s23, 2  ;;  %p269_p1 = scmp.ne.s32.totalorder %s8850_s15, %s8846_s14 }
   0x9   : > { %p270_p2 = scmp.eq.s32.totalorder %s7279_s21, 3  ;;  %p275_p5 = scmp.ne.s32.totalorder %s8846_s14, %s8842_s13 }
   0xa   : > { %s11219_s23 = smov (%p33_p0, %s32_s23), 0  ;;  %s11221_s24 = smov (!%p33_p0, %s35_s24), %s8866_s19 }
   0xb   : > { %11161 = sst [smem:[#allocation9_spill]] %s11219_s23  ;;  %s255_s25 = ssub.s32 %s8862_s18, %s11219_s23 }
   0xc   : > { %p8984_p3 = por %p270_p2, %p269_p1  ;;  %p37_p4 = scmp.ge.s32.totalorder %s11221_s24, 2 }
   0xd   : > { %p276_p6 = scmp.eq.s32.totalorder %s7280_s22, 3  ;;  %p7283_p7 = scmp.ge.s32.totalorder %s8870_s20, 1 }
   0xe   : > { %s11223_s24 = smov (%p37_p4, %s11221_s24), 0  ;;  %p329_p9 = scmp.lt.s32.totalorder %s8870_s20, 5 }
   0xf   : > { %11163 = sst [smem:[#allocation10_spill]] %s11223_s24  ;;  %p8993_p8 = por %p276_p6, %p275_p5 }
  0x10   : > { %s254_s28 = ssub.s32 %s8866_s19, %s11223_s24  ;;  %s259_s29 = sadd.s32 1, %s8850_s15 }
  0x11   : > { %s256_s30 = sor.u32 %s255_s25, %s254_s28  ;;  %p330_p10 = pnand %p7283_p7, %p329_p9 }
  0x12   : > { %p257_p11 = scmp.eq.s32.totalorder %s256_s30, 0  ;;  %v8648_v0 = vld [vmem:[%s11145_s1] sm:$0xff] (!%p330_p10)   ;;  %p367_p12 = scmp.lt.s32.totalorder (!%p330_p10), %s8858_s17, 1  ;;  %v8649_v1 = vld [vmem:[%s11145_s1 + $0x8] sm:$0xff] (!%p330_p10)   ;;  %v8650_v2 = vld [vmem:[%s11145_s1 + $0x10] sm:$0xff] (!%p330_p10)   ;;  %v441_v3 = vlaneseq (!%p330_p10)  ;;  %vm8874_vm0 = vmmov (!%p330_p10), 0  }
  0x13   : > { %333 = sbr.rel (%p330_p10) target bundleno = 1241 (0x4d9), region = 60  ;;  %7737 = vmatprep.subr.bf16.mxu0 (!%p330_p10), %v8648_v0  ;;  %v8651_v4 = vld [vmem:[%s11145_s1 + $0x18] sm:$0xff] (!%p330_p10)   ;;  %v8872_v7 = vmov (!%p330_p10), 1983009808   ;;  %v8652_v15 = vld [vmem:[%s11145_s1 + $0x20] sm:$0xff] (!%p330_p10)   ;;  %v8653_v42 = vld [vmem:[%s11145_s1 + $0x28] sm:$0xff] (!%p330_p10)  }
  0x14   : > { %s9002_s11 = scalar_select %p257_p11, %s8850_s15, %s259_s29  }
  0x15   : > { %7738 = vmatpush3.bf16.msra.mxu0 (!%p330_p10), %v8648_v0  ;;  %s7287_s25 = smul.u32 (!%p330_p10), 192, %s8854_s16  ;;  %v439_v8 = vunpack.c.l.s4 (!%p330_p10), %v8872_v7  ;;  %v9026_v9 = vshrl.u32 (!%p330_p10), %v441_v3, 7  ;;  %v8654_v51 = vld [vmem:[%s11145_s1 + $0x30] sm:$0xff] (!%p330_p10)   ;;  %s7542_s23 = sshll.u32 (!%p330_p10), %s8858_s17, 5 }
  0x16   : > { %7739 = vmatprep.subr.bf16.mxu0 (!%p330_p10), %v8649_v1 }
  0x17   : > { %v440_v17 = vunpack.c.0.s8 (!%p330_p10), %v439_v8  ;;  %vm1988_vm5 = vcmp.ge.s32.totalorder (!%p330_p10), %v9026_v9, 1 }
  0x19   : > { %7740 = vmatpush3.bf16.msra.mxu0 (!%p330_p10), %v8649_v1  ;;  %v9059_v27 = vsub.s32 (!%p330_p10), %v440_v17, %v9026_v9 }
  0x1a   : > { %s368_s24 = scalar_select %p367_p12, %s8858_s17, 1  ;;  %7741 = vmatprep.subr.bf16.mxu0 %v8650_v2 }
  0x1c   : > { %s8571_s30 = smul.u32 432, %s368_s24 }
  0x1d   : > { %7742 = vmatpush3.bf16.msra.mxu0 %v8650_v2 }
  0x1e   : > { %s371_s19 = scalar_lea.vmem %s11144_s0, %s8571_s30  ;;  %7743 = vmatprep.subr.bf16.mxu0 %v8651_v4  ;;  %s364_s30 = sand.u32 1, %s8846_s14  }
  0x1f   : > { %s9019_s18 = scalar_lea.vmem %s371_s19, %s7287_s25  ;;  %s7286_s19 = sshll.u32 %s8854_s16, 3 }
  0x20   : > { %v377_v5 = vld [vmem:[%s9019_s18] sm:$0xff]  ;;  %v378_v6 = vld [vmem:[%s9019_s18 + $0x8] sm:$0xff]  ;;  %v380_v10 = vld [vmem:[%s9019_s18 + $0x18] sm:$0xff]  ;;  %s7284_s12 = sshll.u32 %s364_s30, 7  ;;  %s11092_s28 = scalar_lea.sflag [#allocation5], %s364_s30 }
  0x21   : > { %v381_v11 = vld [vmem:[%s9019_s18 + $0x20] sm:$0xff]  ;;  %v9031_v12 = vld [vmem:[%s9019_s18 + $0x30] sm:$0xff]  ;;  %v9034_v13 = vld [vmem:[%s9019_s18 + $0x38] sm:$0xff]  ;;  %v437_v16 = vcombine.high %v377_v5, %v377_v5  ;;  %v454_v18 = vcombine.high %v378_v6, %v378_v6  ;;  %v478_v20 = vcombine.high %v380_v10, %v380_v10  ;;  %7744 = vmatpush3.bf16.msra.mxu0 %v8651_v4  ;;  %v444_v37 = vrot.slane %v377_v5, %v9059_v27  ;;  %s10844_s21 = scalar_lea.vmem [#allocation4], %s7284_s12  ;;  %s8875_s12 = smov [#allocation4]  }
  0x22   : > { %v9037_v14 = vld [vmem:[%s9019_s18 + $0x48] sm:$0xff]  ;;  %v9043_v19 = vld [vmem:[%s9019_s18 + $0x60] sm:$0xff]  ;;  %v495_v21 = vcombine.high %v381_v11, %v381_v11  ;;  %v519_v22 = vcombine.high %v9031_v12, %v9031_v12  ;;  %v9048_v23 = vld [vmem:[%s9019_s18 + $0x50] sm:$0xff]  ;;  %v536_v24 = vcombine.high %v9034_v13, %v9034_v13  ;;  %v461_v39 = vrot.slane %v378_v6, %v9059_v27  ;;  %7745 = vmatprep.subr.bf16.mxu0 %v8652_v15  ;;  %s7197_s17 = sshll.u32 %s10844_s21, 4  ;;  %s11087_s17 = int_to_ptr.vmem [resolvable:$true] %s7197_s17 }
  0x23   : > { %v9053_v25 = vld [vmem:[%s9019_s18 + $0x68] sm:$0xff]  ;;  %v9056_v26 = vld [vmem:[%s9019_s18 + $0x78] sm:$0xff]  ;;  %v560_v28 = vcombine.high %v9037_v14, %v9037_v14  ;;  %v577_v29 = vcombine.high %v9048_v23, %v9048_v23  ;;  %v601_v30 = vcombine.high %v9043_v19, %v9043_v19  ;;  %v9068_v31 = vld [vmem:[%s9019_s18 + $0x80] sm:$0xff]  ;;  %v451_v38 = vrot.slane %v437_v16, %v9059_v27  ;;  %s8776_s29 = scalar_lea.vmem %s11087_s17, 2048 }
  0x24   : > { %v9071_v32 = vld [vmem:[%s9019_s18 + $0x90] sm:$0xff]  ;;  %v618_v33 = vcombine.high %v9053_v25, %v9053_v25  ;;  %v642_v34 = vcombine.high %v9056_v26, %v9056_v26  ;;  %v659_v35 = vcombine.high %v9068_v31, %v9068_v31  ;;  %v468_v40 = vrot.slane %v454_v18, %v9059_v27  ;;  %v7289_v60 = vld.sshfl [vmem:[%s9019_s18 + $0x28] sm:$0x3 pattern:$0x76325410]  ;;  %v8655_v5 = vld [vmem:[%s11145_s1 + $0x38] sm:$0xff]   ;;  %p8777_p13 = scmp.ne.s32.totalorder %s11087_s17, %s8776_s29 }
  0x25   : > { %v683_v36 = vcombine.high %v9071_v32, %v9071_v32  ;;  %v7288_v41 = vld.sshfl [vmem:[%s9019_s18 + $0x10] sm:$0x3 pattern:$0x76325410]  ;;  %v485_v43 = vrot.slane %v380_v10, %v9059_v27  ;;  %v492_v44 = vrot.slane %v478_v20, %v9059_v27  ;;  %v502_v45 = vrot.slane %v381_v11, %v9059_v27  ;;  %7746 = vmatpush3.bf16.msra.mxu0 %v8652_v15 }
  0x26   : > { %v509_v46 = vrot.slane %v495_v21, %v9059_v27  ;;  %v452_v47 = vcombine.high %v444_v37, %v444_v37  ;;  %v453_v48 = vcombine.high %v451_v38, %v451_v38  ;;  %v469_v49 = vcombine.high %v461_v39, %v461_v39  ;;  %7747 = vmatprep.subr.bf16.mxu0 %v8653_v42  ;;  %p8778_p0 = pnand %p8777_p13, %p8984_p3 }
  0x27   : > { %v470_v50 = vcombine.high %v468_v40, %v468_v40  ;;  %v493_v52 = vcombine.high %v485_v43, %v485_v43  ;;  %v494_v53 = vcombine.high %v492_v44, %v492_v44  ;;  %v510_v54 = vcombine.high %v502_v45, %v502_v45 }
  0x28   : > { %v881_v55 = vcombine.low %v7288_v41, %v485_v43  ;;  %v847_v56 = vcombine.low %v444_v37, %v452_v47  ;;  %v848_v57 = vcombine.low %v451_v38, %v453_v48  ;;  %v864_v58 = vcombine.low %v461_v39, %v469_v49  ;;  %v7290_v38 = vld.sshfl [vmem:[%s9019_s18 + $0x40] sm:$0x3 pattern:$0x76325410]  ;;  %p8779_p1 = pneg %p8778_p0 }
  0x29   : > { %v865_v59 = vcombine.low %v468_v40, %v470_v50  ;;  %v882_v61 = vcombine.low %v493_v52, %v492_v44  ;;  %v898_v63 = vcombine.low %v494_v53, %v502_v45  ;;  %v899_v0 = vcombine.low %v510_v54, %v509_v46  ;;  %7748 = vmatpush3.bf16.msra.mxu0 %v8653_v42  ;;  %v7291_v54 = vld.sshfl [vmem:[%s9019_s18 + $0x58] sm:$0x3 pattern:$0x76325410] }
  0x2a   : > { %v889_v62 = vrot.slane %v881_v55, %v9059_v27  ;;  %v855_v1 = vrot.slane %v847_v56, %v9059_v27  ;;  %v862_v2 = vrot.slane %v848_v57, %v9059_v27  ;;  %v872_v3 = vrot.slane %v864_v58, %v9059_v27  ;;  %7749 = vmatprep.subr.bf16.mxu0 %v8654_v51 }
  0x2b   : > { %v879_v4 = vrot.slane %v865_v59, %v9059_v27  ;;  %v896_v6 = vrot.slane %v882_v61, %v9059_v27  ;;  %v906_v7 = vrot.slane %v898_v63, %v9059_v27  ;;  %v913_v8 = vrot.slane %v899_v0, %v9059_v27 }
  0x2c   : > { %v511_v10 = vcombine.high %v509_v46, %v509_v46  ;;  %v863_v11 = vcombine.low %v855_v1, %v862_v2  ;;  %v526_v16 = vrot.slane %v9031_v12, %v9059_v27  ;;  %v533_v17 = vrot.slane %v519_v22, %v9059_v27 }
  0x2d   : > { %v880_v15 = vcombine.low %v872_v3, %v879_v4  ;;  %v897_v18 = vcombine.low %v889_v62, %v896_v6  ;;  %v914_v20 = vcombine.low %v906_v7, %v913_v8  ;;  %v543_v21 = vrot.slane %v9034_v13, %v9059_v27  ;;  %7750 = vmatpush3.bf16.msra.mxu0 %v8654_v51  ;;  %v7292_v6 = vld.sshfl [vmem:[%s9019_s18 + $0x70] sm:$0x3 pattern:$0x76325410] }
  0x2e   : > { %v915_v37 = vcombine.low %v511_v10, %v7289_v60  ;;  %v534_v40 = vcombine.high %v526_v16, %v526_v16  ;;  %v535_v41 = vcombine.high %v533_v17, %v533_v17  ;;  %v550_v42 = vrot.slane %v536_v24, %v9059_v27  ;;  %7751 = vmatprep.subr.bf16.mxu0 %v8655_v5 }
  0x2f   : > { %v1252_v39 = vpack.c.bf16 %v880_v15, %v863_v11  ;;  %v1253_v43 = vpack.c.bf16 %v914_v20, %v897_v18  ;;  %v551_v12 = vcombine.high %v543_v21, %v543_v21  ;;  %v567_v44 = vrot.slane %v9037_v14, %v9059_v27 }
  0x30   : > { %v923_v22 = vrot.slane %v915_v37, %v9059_v27  ;;  %v916_v45 = vcombine.low %v526_v16, %v534_v40  ;;  %v932_v46 = vcombine.low %v533_v17, %v535_v41  ;;  %v552_v47 = vcombine.high %v550_v42, %v550_v42 }
  0x31   : > { %7753 = vmatprep.mubr.bf16.mxu0 %v1252_v39  ;;  %v933_v48 = vcombine.low %v543_v21, %v551_v12  ;;  %v574_v13 = vrot.slane %v560_v28, %v9059_v27  ;;  %v575_v24 = vcombine.high %v567_v44, %v567_v44  ;;  %v584_v49 = vrot.slane %v9048_v23, %v9059_v27 }
  0x32   : > { %v930_v50 = vrot.slane %v916_v45, %v9059_v27  ;;  %v940_v52 = vrot.slane %v932_v46, %v9059_v27  ;;  %v949_v51 = vcombine.low %v550_v42, %v552_v47  ;;  %v950_v53 = vcombine.low %v7290_v38, %v567_v44  ;;  %7752 = vmatpush3.bf16.msra.mxu0 %v8655_v5  ;;  %v7293_v44 = vld.sshfl [vmem:[%s9019_s18 + $0x88] sm:$0x3 pattern:$0x76325410] }
  0x33   : > { %v947_v55 = vrot.slane %v933_v48, %v9059_v27  ;;  %v576_v56 = vcombine.high %v574_v13, %v574_v13  ;;  %v966_v57 = vcombine.low %v575_v24, %v574_v13  ;;  %v591_v14 = vrot.slane %v577_v29, %v9059_v27  ;;  %v398_v24 = vld [vmem:[%s9019_s18 + $0xa8] sm:$0xff] }
  0x34   : > { %v931_v28 = vcombine.low %v923_v22, %v930_v50  ;;  %v957_v58 = vrot.slane %v949_v51, %v9059_v27  ;;  %v964_v59 = vrot.slane %v950_v53, %v9059_v27  ;;  %v592_v60 = vcombine.high %v584_v49, %v584_v49 }
  0x35   : > { %v948_v61 = vcombine.low %v940_v52, %v947_v55  ;;  %v967_v62 = vcombine.low %v576_v56, %v584_v49  ;;  %v974_v63 = vrot.slane %v966_v57, %v9059_v27  ;;  %v593_v0 = vcombine.high %v591_v14, %v591_v14  ;;  %7754 = vmatmul.mubr.bf16.vlgmr.msra.gmra.mrb[0].mxu0 %v1253_v43  ;;  %v7294_v56 = vld.sshfl [vmem:[%s9019_s18 + $0xa0] sm:$0x3 pattern:$0x76325410] }
  0x36   : > { %v965_v1 = vcombine.low %v957_v58, %v964_v59  ;;  %v608_v2 = vrot.slane %v9043_v19, %v9059_v27  ;;  %v615_v23 = vrot.slane %v601_v30, %v9059_v27  ;;  %v983_v29 = vcombine.low %v592_v60, %v591_v14 }
  0x37   : > { %v1254_v3 = vpack.c.bf16 %v948_v61, %v931_v28  ;;  %v981_v4 = vrot.slane %v967_v62, %v9059_v27  ;;  %v984_v5 = vcombine.low %v593_v0, %v7291_v54  ;;  %v625_v7 = vrot.slane %v9053_v25, %v9059_v27  ;;  %v399_v62 = vld [vmem:[%s9019_s18 + $0xb0] sm:$0xff] }
  0x38   : > { %v616_v8 = vcombine.high %v608_v2, %v608_v2  ;;  %v617_v10 = vcombine.high %v615_v23, %v615_v23  ;;  %v991_v11 = vrot.slane %v983_v29, %v9059_v27  ;;  %v632_v19 = vrot.slane %v618_v33, %v9059_v27 }
  0x39   : > { %7757 = vmatprep.mubr.bf16.mxu0 %v1254_v3  ;;  %v982_v30 = vcombine.low %v974_v63, %v981_v4  ;;  %v998_v15 = vrot.slane %v984_v5, %v9059_v27  ;;  %v633_v16 = vcombine.high %v625_v7, %v625_v7  ;;  %v649_v17 = vrot.slane %v9056_v26, %v9059_v27 }
  0x3a   : > { %v1000_v18 = vcombine.low %v608_v2, %v616_v8  ;;  %v1001_v20 = vcombine.low %v615_v23, %v617_v10  ;;  %v634_v21 = vcombine.high %v632_v19, %v632_v19  ;;  %v656_v37 = vrot.slane %v642_v34, %v9059_v27  ;;  %v396_v34 = vld [vmem:[%s9019_s18 + $0x98] sm:$0xff]  ;;  %v401_v2 = vld [vmem:[%s9019_s18 + $0xc0] sm:$0xff] }
  0x3b   : > { %v1255_v25 = vpack.c.bf16 %v982_v30, %v965_v1  ;;  %v999_v33 = vcombine.low %v991_v11, %v998_v15  ;;  %v657_v38 = vcombine.high %v649_v17, %v649_v17  ;;  %v1017_v39 = vcombine.low %v625_v7, %v633_v16 }
  0x3c   : > { %v1008_v40 = vrot.slane %v1000_v18, %v9059_v27  ;;  %v1015_v41 = vrot.slane %v1001_v20, %v9059_v27  ;;  %v1018_v42 = vcombine.low %v632_v19, %v634_v21  ;;  %v1034_v43 = vcombine.low %v7292_v6, %v649_v17  ;;  %v402_v18 = vld [vmem:[%s9019_s18 + $0xc8] sm:$0xff] }
  0x3d   : > { %v1025_v12 = vrot.slane %v1017_v39, %v9059_v27  ;;  %v1035_v22 = vcombine.low %v657_v38, %v656_v37  ;;  %v658_v45 = vcombine.high %v656_v37, %v656_v37  ;;  %v666_v26 = vrot.slane %v9068_v31, %v9059_v27  ;;  %7758 = vmatmul.mubr.bf16.gmra.mrb[4].mxu0 %v1255_v25  ;;  %v7295_v37 = vld.sshfl [vmem:[%s9019_s18 + $0xb8] sm:$0x3 pattern:$0x76325410] }
  0x3e   : > { %v1016_v46 = vcombine.low %v1008_v40, %v1015_v41  ;;  %v1032_v47 = vrot.slane %v1018_v42, %v9059_v27  ;;  %v1042_v48 = vrot.slane %v1034_v43, %v9059_v27  ;;  %v673_v13 = vrot.slane %v659_v35, %v9059_v27 }
  0x3f   : > { %v1049_v49 = vrot.slane %v1035_v22, %v9059_v27  ;;  %v674_v50 = vcombine.high %v666_v26, %v666_v26  ;;  %v690_v52 = vrot.slane %v9071_v32, %v9059_v27  ;;  %v1051_v51 = vcombine.low %v658_v45, %v666_v26 }
  0x40   : > { %v1256_v53 = vpack.c.bf16 %v1016_v46, %v999_v33  ;;  %v1033_v54 = vcombine.low %v1025_v12, %v1032_v47  ;;  %v675_v55 = vcombine.high %v673_v13, %v673_v13  ;;  %v697_v31 = vrot.slane %v683_v36, %v9059_v27  ;;  %v404_v46 = vld [vmem:[%s9019_s18 + $0xd8] sm:$0xff] }
  0x41   : > { %v1050_v35 = vcombine.low %v1042_v48, %v1049_v49  ;;  %v698_v57 = vcombine.high %v690_v52, %v690_v52  ;;  %v1052_v14 = vcombine.low %v674_v50, %v673_v13  ;;  %v1059_v28 = vrot.slane %v1051_v51, %v9059_v27  ;;  %v405_v49 = vld [vmem:[%s9019_s18 + $0xe0] sm:$0xff] }
  0x42   : > { %7761 = vmatprep.mubr.bf16.mxu0 %v1256_v53  ;;  %v1068_v58 = vcombine.low %v675_v55, %v7293_v44  ;;  %v699_v59 = vcombine.high %v697_v31, %v697_v31  ;;  %v700_v60 = vcombine.high %v396_v34, %v396_v34  ;;  %v707_v61 = vrot.slane %v396_v34, %v9059_v27 }
  0x43   : > { %v1257_v63 = vpack.c.bf16 %v1050_v35, %v1033_v54  ;;  %v1066_v0 = vrot.slane %v1052_v14, %v9059_v27  ;;  %v1069_v1 = vcombine.low %v690_v52, %v698_v57  ;;  %v731_v32 = vrot.slane %v398_v24, %v9059_v27 }
  0x44   : > { %v1076_v36 = vrot.slane %v1068_v58, %v9059_v27  ;;  %v714_v23 = vrot.slane %v700_v60, %v9059_v27  ;;  %v715_v29 = vcombine.high %v707_v61, %v707_v61  ;;  %v1085_v3 = vcombine.low %v697_v31, %v699_v59  ;;  %v7296_v58 = vld.sshfl [vmem:[%s9019_s18 + $0xd0] sm:$0x3 pattern:$0x76325410] }
  0x45   : > { %v1067_v4 = vcombine.low %v1059_v28, %v1066_v0  ;;  %v1083_v5 = vrot.slane %v1069_v1, %v9059_v27  ;;  %v1103_v6 = vcombine.low %v7294_v56, %v731_v32  ;;  %v724_v7 = vcombine.high %v398_v24, %v398_v24  ;;  %7762 = vmatmul.mubr.bf16.gmra.mrb[8].mxu0 %v1257_v63 }
  0x46   : > { %v716_v8 = vcombine.high %v714_v23, %v714_v23  ;;  %v1086_v10 = vcombine.low %v707_v61, %v715_v29  ;;  %v1093_v11 = vrot.slane %v1085_v3, %v9059_v27  ;;  %v739_v19 = vcombine.high %v731_v32, %v731_v32  ;;  %v7297_v3 = vld.sshfl [vmem:[%s9019_s18 + $0xe8] sm:$0x3 pattern:$0x76325410] }
  0x47   : > { %v1084_v30 = vcombine.low %v1076_v36, %v1083_v5  ;;  %v1117_v15 = vrot.slane %v1103_v6, %v9059_v27  ;;  %v738_v16 = vrot.slane %v724_v7, %v9059_v27  ;;  %v741_v17 = vcombine.high %v399_v62, %v399_v62 }
  0x48   : > { %v1100_v20 = vrot.slane %v1086_v10, %v9059_v27  ;;  %v1102_v21 = vcombine.low %v714_v23, %v716_v8  ;;  %v748_v25 = vrot.slane %v399_v62, %v9059_v27  ;;  %v765_v33 = vcombine.high %v401_v2, %v401_v2 }
  0x49   : > { %v1258_v38 = vpack.c.bf16 %v1084_v30, %v1067_v4  ;;  %v740_v39 = vcombine.high %v738_v16, %v738_v16  ;;  %v755_v40 = vrot.slane %v741_v17, %v9059_v27  ;;  %v1119_v41 = vcombine.low %v739_v19, %v738_v16 }
  0x4a   : > { %v1101_v42 = vcombine.low %v1093_v11, %v1100_v20  ;;  %v1110_v43 = vrot.slane %v1102_v21, %v9059_v27  ;;  %v756_v12 = vcombine.high %v748_v25, %v748_v25  ;;  %v772_v22 = vrot.slane %v401_v2, %v9059_v27 }
  0x4b   : > { %7765 = vmatprep.mubr.bf16.mxu0 %v1258_v38  ;;  %v757_v44 = vcombine.high %v755_v40, %v755_v40  ;;  %v1120_v45 = vcombine.low %v740_v39, %v748_v25  ;;  %v1127_v26 = vrot.slane %v1119_v41, %v9059_v27  ;;  %v779_v34 = vrot.slane %v765_v33, %v9059_v27 }
  0x4c   : > { %v1118_v47 = vcombine.low %v1110_v43, %v1117_v15  ;;  %v1136_v48 = vcombine.low %v756_v12, %v755_v40  ;;  %v780_v13 = vcombine.high %v772_v22, %v772_v22  ;;  %v782_v24 = vcombine.high %v402_v18, %v402_v18  ;;  %v8676_v12 = vld [vmem:[%s11148_s4] sm:$0xff]  }
  0x4d   : > { %v1134_v50 = vrot.slane %v1120_v45, %v9059_v27  ;;  %v1137_v52 = vcombine.low %v757_v44, %v7295_v37  ;;  %v781_v51 = vcombine.high %v779_v34, %v779_v34  ;;  %v789_v53 = vrot.slane %v402_v18, %v9059_v27  ;;  %v8677_v44 = vld [vmem:[%s11148_s4 + $0xc0] sm:$0xff]   ;;  %v8678_v45 = vld [vmem:[%s11148_s4 + $0x8] sm:$0xff]  }
  0x4e   : > { %v1259_v54 = vpack.c.bf16 %v1118_v47, %v1101_v42  ;;  %v1144_v55 = vrot.slane %v1136_v48, %v9059_v27  ;;  %v796_v56 = vrot.slane %v782_v24, %v9059_v27  ;;  %v1153_v31 = vcombine.low %v772_v22, %v780_v13  ;;  %v8682_v47 = vld [vmem:[%s11148_s4 + $0x18] sm:$0xff]   ;;  %v8684_v13 = vld [vmem:[%s11148_s4 + $0x20] sm:$0xff]  }
  0x4f   : > { %v1135_v35 = vcombine.low %v1127_v26, %v1134_v50  ;;  %v1151_v57 = vrot.slane %v1137_v52, %v9059_v27  ;;  %v797_v14 = vcombine.high %v789_v53, %v789_v53  ;;  %v1154_v28 = vcombine.low %v779_v34, %v781_v51  ;;  %v8679_v26 = vld [vmem:[%s11148_s4 + $0xc8] sm:$0xff]   ;;  %v8680_v34 = vld [vmem:[%s11148_s4 + $0x10] sm:$0xff]   ;;  %v8683_v48 = vld [vmem:[%s11148_s4 + $0xd8] sm:$0xff]  }
  0x50   : > { %7766 = vmatmul.mubr.bf16.gmra.mrb[12].mxu0 %v1259_v54  ;;  %v798_v59 = vcombine.high %v796_v56, %v796_v56  ;;  %v1161_v60 = vrot.slane %v1153_v31, %v9059_v27  ;;  %v806_v61 = vcombine.high %v404_v46, %v404_v46  ;;  %v813_v62 = vrot.slane %v404_v46, %v9059_v27  ;;  %v8681_v46 = vld [vmem:[%s11148_s4 + $0xd0] sm:$0xff]   ;;  %v8685_v24 = vld [vmem:[%s11148_s4 + $0xe0] sm:$0xff]   ;;  %v8687_v50 = vld [vmem:[%s11148_s4 + $0xe8] sm:$0xff]  }
  0x51   : > { %v1152_v63 = vcombine.low %v1144_v55, %v1151_v57  ;;  %v1168_v0 = vrot.slane %v1154_v28, %v9059_v27  ;;  %v1170_v1 = vcombine.low %v789_v53, %v797_v14  ;;  %v823_v32 = vcombine.high %v405_v49, %v405_v49  ;;  %v8688_v52 = vld [vmem:[%s11148_s4 + $0x30] sm:$0xff]   ;;  %v8690_v53 = vld [vmem:[%s11148_s4 + $0x38] sm:$0xff]   ;;  %v9279_v55 = vld [vmem:[%s11146_s2] ss:$0 sm:$0xff] }
  0x52   : > { %v1171_v2 = vcombine.low %v796_v56, %v798_v59  ;;  %v820_v36 = vrot.slane %v806_v61, %v9059_v27  ;;  %v821_v23 = vcombine.high %v813_v62, %v813_v62  ;;  %v830_v29 = vrot.slane %v405_v49, %v9059_v27  ;;  %v8686_v49 = vld [vmem:[%s11148_s4 + $0x28] sm:$0xff]   ;;  %v8689_v51 = vld [vmem:[%s11148_s4 + $0xf0] sm:$0xff]   ;;  %v8691_v54 = vld [vmem:[%s11148_s4 + $0xf8] sm:$0xff]  }
  0x53   : > { %v1260_v4 = vpack.c.bf16 %v1152_v63, %v1135_v35  ;;  %v1169_v5 = vcombine.low %v1161_v60, %v1168_v0  ;;  %v1178_v6 = vrot.slane %v1170_v1, %v9059_v27  ;;  %v837_v7 = vrot.slane %v823_v32, %v9059_v27  ;;  %v9286_v35 = vld [vmem:[%s11147_s3] ss:$0 sm:$0xff] }
  0x54   : > { %v1185_v8 = vrot.slane %v1171_v2, %v9059_v27  ;;  %v822_v10 = vcombine.high %v820_v36, %v820_v36  ;;  %v838_v11 = vcombine.high %v830_v29, %v830_v29  ;;  %v1187_v19 = vcombine.low %v7296_v58, %v813_v62 }
  0x55   : > { %7769 = vmatprep.mubr.bf16.mxu0 %v1260_v4  ;;  %v1188_v30 = vcombine.low %v821_v23, %v820_v36  ;;  %v839_v15 = vcombine.high %v837_v7, %v837_v7  ;;  %v8873_v22 = vmov 0.0   ;;  %v9281_v56 = vstv %s7286_s19 }
  0x56   : > { %v1186_v16 = vcombine.low %v1178_v6, %v1185_v8  ;;  %v1195_v17 = vrot.slane %v1187_v19, %v9059_v27  ;;  %v1204_v18 = vcombine.low %v822_v10, %v830_v29  ;;  %v1205_v20 = vcombine.low %v838_v11, %v837_v7  ;;  %7777 = vmatprep.subr.bf16.mxu0 %v8873_v22 }
  0x57   : > { %v1202_v21 = vrot.slane %v1188_v30, %v9059_v27  ;;  %v1221_v37 = vcombine.low %v839_v15, %v7297_v3  ;;  %3392 = vst [vmem:[#allocation2 + $0xb4] sm:$0xff] %v8873_v22  ;;  %7933 = vmatprep.subr.bf16.mxu1 %v8873_v22  ;;  %7778 = vmatpush3.bf16.msra.mxu0 %v8676_v12  ;;  %v9289_v57 = vadd.s32 16, %v9026_v9  ;;  %v1945_v58 = vadd.s32 1, %v9281_v56 }
  0x58   : > { %v1261_v25 = vpack.c.bf16 %v1186_v16, %v1169_v5  ;;  %v1212_v33 = vrot.slane %v1204_v18, %v9059_v27  ;;  %v1219_v38 = vrot.slane %v1205_v20, %v9059_v27  ;;  %7779 = vmatprep.subr.bf16.mxu0 %v8873_v22  ;;  %7934 = vmatpush3.bf16.msra.mxu1 %v8677_v44  ;;  %vm1958_vm1 = vcmp.ge.s32.totalorder %v9281_v56, 1 }
  0x59   : > { %v1203_v39 = vcombine.low %v1195_v17, %v1202_v21  ;;  %v1228_v41 = vrot.slane %v1221_v37, %v9059_v27  ;;  %7935 = vmatprep.subr.bf16.mxu1 %v8873_v22  ;;  %7949 = vmatprep.mubr.msk.bf16.mxu1 %vm8874_vm0, %v8873_v22  ;;  %vm1968_vm2 = vcmp.le.s32.totalorder %v9281_v56, 16  ;;  %vm2023_vm3 = vcmp.le.s32.totalorder %v9289_v57, 16 }
  0x5a   : > { %7770 = vmatmul.mubr.bf16.gmra.mrb[16].mxu0 %v1261_v25  ;;  %v1220_v40 = vcombine.low %v1212_v33, %v1219_v38  ;;  %vm9301_vm4 = vmand %vm1958_vm1, %vm1968_vm2  ;;  %vm1959_vm6 = vcmp.ge.s32.totalorder %v1945_v58, 1  ;;  %vm1969_vm7 = vcmp.le.s32.totalorder %v1945_v58, 16  ;;  %v9309_v3 = vadd.s32 2, %v9281_v56 }
  0x5b   : > { %v1263_v43 = vpack.c.bf16 %v1228_v41, %v1228_v41  ;;  %7780 = vmatpush3.bf16.msra.mxu0 %v8678_v45  ;;  %v9312_v4 = vadd.s32 3, %v9281_v56  ;;  %v9316_v8 = vadd.s32 4, %v9281_v56  ;;  %vm9322_vm8 = vmand %vm9301_vm4, %vm2023_vm3  ;;  %v9328_v16 = vadd.s32 5, %v9281_v56 }
  0x5c   : > { %v1262_v42 = vpack.c.bf16 %v1220_v40, %v1203_v39  ;;  %7781 = vmatprep.subr.bf16.mxu0 %v8873_v22  ;;  %7936 = vmatpush3.bf16.msra.mxu1 %v8679_v26  ;;  %vm1960_vm9 = vcmp.ge.s32.totalorder %v9309_v3, 1  ;;  %vm1970_vm10 = vcmp.le.s32.totalorder %v9309_v3, 16  ;;  %vm9345_vm11 = vmand %vm1959_vm6, %vm1969_vm7 }
  0x5d   : > { %7937 = vmatprep.subr.bf16.mxu1 %v8873_v22  ;;  %vm9363_vm12 = vmand %vm9345_vm11, %vm1988_vm5  ;;  %vm1961_vm1 = vcmp.ge.s32.totalorder %v9312_v4, 1  ;;  %vm1971_vm2 = vcmp.le.s32.totalorder %v9312_v4, 16 }
  0x5e   : > { %7773 = vmatprep.mubr.bf16.mxu0 %v1262_v42  ;;  %vm9378_vm13 = vmand %vm9301_vm4, %vm1988_vm5 }
  0x5f   : > { %7782 = vmatpush3.bf16.msra.mxu0 %v8680_v34  ;;  %vm9406_vm14 = vmand %vm1960_vm9, %vm1970_vm10  ;;  %vm1972_vm9 = vcmp.le.s32.totalorder %v9316_v8, 16 }
  0x60   : > { %7783 = vmatprep.subr.bf16.mxu0 %v8873_v22  ;;  %7938 = vmatpush3.bf16.msra.mxu1 %v8681_v46  ;;  %vm2032_vm15 = vmand %vm9406_vm14, %vm2023_vm3 }
  0x61   : > { %7939 = vmatprep.subr.bf16.mxu1 %v8873_v22  ;;  %vm9504_vm6 = vmand %vm1961_vm1, %vm1971_vm2 }
  0x62   : > { %7774 = vmatmul.mubr.bf16.gmra.mrb[20].mxu0 %v1263_v43  ;;  %vm9520_vm7 = vmand %vm9504_vm6, %vm1988_vm5 }
  0x63   : > { %7784 = vmatpush3.bf16.msra.mxu0 %v8682_v47  ;;  %7793 = vmatprep.mubr.msk.bf16.mxu0 %vm8874_vm0, %v8873_v22  ;;  %vm1997_vm10 = vmand %vm9406_vm14, %vm1988_vm5 }
  0x64   : > { %7785 = vmatprep.subr.bf16.mxu0 %v8873_v22  ;;  %7940 = vmatpush3.bf16.msra.mxu1 %v8683_v48 }
  0x65   : > { %7941 = vmatprep.subr.bf16.mxu1 %v8873_v22 }
  0x67   : > { %7786 = vmatpush3.bf16.msra.mxu0 %v8684_v13 }
  0x68   : > { %7787 = vmatprep.subr.bf16.mxu0 %v8873_v22  ;;  %7942 = vmatpush3.bf16.msra.mxu1 %v8685_v24 }
  0x69   : > { %7943 = vmatprep.subr.bf16.mxu1 %v8873_v22 }
  0x6b   : > { %7788 = vmatpush3.bf16.msra.mxu0 %v8686_v49 }
  0x6c   : > { %7789 = vmatprep.subr.bf16.mxu0 %v8873_v22  ;;  %7944 = vmatpush3.bf16.msra.mxu1 %v8687_v50 }
  0x6d   : > { %7945 = vmatprep.subr.bf16.mxu1 %v8873_v22 }
  0x6f   : > { %7790 = vmatpush3.bf16.msra.mxu0 %v8688_v52 }
  0x70   : > { %7791 = vmatprep.subr.bf16.mxu0 %v8873_v22  ;;  %7946 = vmatpush3.bf16.msra.mxu1 %v8689_v51 }
  0x71   : > { %7947 = vmatprep.subr.bf16.mxu1 %v8873_v22 }
  0x73   : > { %7792 = vmatpush3.bf16.msra.mxu0 %v8690_v53 }
  0x74   : > { %7829 = vmatprep.subr.bf16.mxu0 %v8873_v22  ;;  %7948 = vmatpush3.bf16.msra.mxu1 %v8691_v54 }
  0x75   : > { %7985 = vmatprep.subr.bf16.mxu1 %v8873_v22 }
 0x108   : > { %v7755_v31 = vpop.f32.mrb[0].mxu0 }
 0x109   : > { %v1465_v14 = vmul.f32 %v7755_v31, %v9279_v55  ;;  %v1362_v28 = vpop.f32.mrb[1].mxu0 }
 0x10a   : > { %v1463_v59 = vmul.f32 %v9279_v55, %v1362_v28  ;;  %v7756_v60 = vpop.f32.mrb[2].mxu0 }
 0x10b   : > { %v1495_v61 = vadd.f32 %v9286_v35, %v1465_v14  ;;  %v1466_v62 = vmul.f32 %v7756_v60, %v9279_v55  ;;  %v1365_v63 = vpop.f32.mrb[3].mxu0 }
 0x10c   : > { %v1493_v0 = vadd.f32 %v9286_v35, %v1463_v59  ;;  %v1464_v1 = vmul.f32 %v9279_v55, %v1365_v63 }
 0x10d   : > { %v1518_v32 = vmax.f32 %v1495_v61, 0.0  ;;  %v1496_v36 = vadd.f32 %v9286_v35, %v1466_v62 }
 0x10e   : > { %v1516_v23 = vmax.f32 %v1493_v0, 0.0  ;;  %v1494_v29 = vadd.f32 %v9286_v35, %v1464_v1 }
 0x10f   : > { %v1596_v5 = vcombine.high %v1518_v32, %v1518_v32  ;;  %v1603_v6 = vrot.slane %v1518_v32, %v9059_v27  ;;  %v1519_v7 = vmax.f32 %v1496_v36, 0.0 }
 0x110   : > { %v1562_v11 = vcombine.high %v1516_v23, %v1516_v23  ;;  %v1569_v19 = vrot.slane %v1516_v23, %v9059_v27  ;;  %v1517_v30 = vmax.f32 %v1494_v29, 0.0  ;;  %v7759_v15 = vpop.f32.mrb[4].mxu0 }
 0x111   : > { %v1610_v17 = vrot.slane %v1596_v5, %v9059_v27  ;;  %v1611_v18 = vcombine.high %v1603_v6, %v1603_v6  ;;  %v2094_v20 = vrot.slane %v1603_v6, %v9059_v27  ;;  %v1613_v21 = vcombine.high %v1519_v7, %v1519_v7  ;;  %v1378_v37 = vpop.f32.mrb[5].mxu0 }
 0x112   : > { %v1576_v25 = vrot.slane %v1562_v11, %v9059_v27  ;;  %v1577_v33 = vcombine.high %v1569_v19, %v1569_v19  ;;  %v1620_v38 = vrot.slane %v1519_v7, %v9059_v27  ;;  %v1579_v39 = vcombine.high %v1517_v30, %v1517_v30  ;;  %v7760_v40 = vpop.f32.mrb[6].mxu0 }
 0x113   : > { %v2095_v41 = vcombine.low %v1611_v18, %v1610_v17  ;;  %v2496_v42 = vsel %vm9322_vm8, %v2094_v20, 0.0  ;;  %v1612_v43 = vcombine.high %v1610_v17, %v1610_v17  ;;  %v9339_v12 = vrot.slane %v1613_v21, %v9059_v27  ;;  %v1381_v22 = vpop.f32.mrb[7].mxu0 }
 0x114   : > { %v2594_v44 = vrot.slane %v2496_v42, %v9059_v27  ;;  %v1578_v45 = vcombine.high %v1576_v25, %v1576_v25  ;;  %v2054_v26 = vcombine.low %v1569_v19, %v1577_v33  ;;  %v1628_v34 = vcombine.high %v1620_v38, %v1620_v38 }
 0x115   : > { %v2103_v46 = vrot.slane %v2095_v41, %v9059_v27  ;;  %v2096_v48 = vcombine.low %v1612_v43, %v1620_v38  ;;  %v1586_v13 = vrot.slane %v1517_v30, %v9059_v27  ;;  %v1593_v24 = vrot.slane %v1579_v39, %v9059_v27 }
 0x116   : > { %v2055_v49 = vcombine.low %v1576_v25, %v1578_v45  ;;  %v2062_v50 = vrot.slane %v2054_v26, %v9059_v27  ;;  %v9353_v52 = vcombine.low %v1628_v34, %v9339_v12  ;;  %v1469_v51 = vmul.f32 %v7759_v15, %v9279_v55 }
 0x117   : > { %v2110_v53 = vrot.slane %v2096_v48, %v9059_v27  ;;  %v1594_v54 = vcombine.high %v1586_v13, %v1586_v13  ;;  %v1595_v31 = vcombine.high %v1593_v24, %v1593_v24  ;;  %v1467_v14 = vmul.f32 %v9279_v55, %v1378_v37 }
 0x118   : > { %v2069_v28 = vrot.slane %v2055_v49, %v9059_v27  ;;  %v2120_v59 = vrot.slane %v9353_v52, %v9059_v27  ;;  %v1499_v60 = vadd.f32 %v9286_v35, %v1469_v51  ;;  %v1629_v61 = vcombine.high %v9339_v12, %v9339_v12  ;;  %v9372_v62 = vpop.f32.mrb[8].mxu0 }
 0x119   : > { %v2111_v0 = vcombine.low %v2103_v46, %v2110_v53  ;;  %v2071_v1 = vcombine.low %v1586_v13, %v1594_v54  ;;  %v2072_v32 = vcombine.low %v1593_v24, %v1595_v31  ;;  %v1497_v36 = vadd.f32 %v9286_v35, %v1467_v14  ;;  %v9383_v23 = vpop.f32.mrb[9].mxu0 }
 0x11a   : > { %v2070_v29 = vcombine.low %v2062_v50, %v2069_v28  ;;  %v1522_v5 = vmax.f32 %v1499_v60, 0.0  ;;  %v1470_v6 = vmul.f32 %v7760_v40, %v9279_v55  ;;  %v9387_v7 = vmul.f32 %v9279_v55, %v1381_v22  ;;  %v9389_v10 = vpop.f32.mrb[10].mxu0 }
 0x11b   : > { %v2497_v11 = vsel %vm9363_vm12, %v2111_v0, 0.0  ;;  %v2079_v19 = vrot.slane %v2071_v1, %v9059_v27  ;;  %v2086_v30 = vrot.slane %v2072_v32, %v9059_v27  ;;  %v1520_v15 = vmax.f32 %v1497_v36, 0.0  ;;  %v9395_v17 = vpop.f32.mrb[11].mxu0  ;;  %vm9602_vm12 = vmand %vm9504_vm6, %vm2023_vm3 }
 0x11c   : > { %v2494_v18 = vsel %vm9378_vm13, %v2070_v29, 0.0  ;;  %v2595_v20 = vcombine.high %v2497_v11, %v2497_v11  ;;  %v2602_v21 = vrot.slane %v2497_v11, %v9059_v27  ;;  %v1664_v37 = vcombine.high %v1522_v5, %v1522_v5 }
 0x11d   : > { %v2554_v25 = vcombine.high %v2494_v18, %v2494_v18  ;;  %v2561_v33 = vrot.slane %v2494_v18, %v9059_v27  ;;  %v2087_v38 = vcombine.low %v2079_v19, %v2086_v30  ;;  %v1671_v39 = vrot.slane %v1522_v5, %v9059_v27 }
 0x11e   : > { %v9411_v41 = vrot.slane %v2595_v20, %v9059_v27  ;;  %v2610_v42 = vcombine.high %v2602_v21, %v2602_v21  ;;  %v2998_v43 = vcombine.low %v2594_v44, %v2602_v21  ;;  %v9414_v22 = vrot.slane %v1664_v37, %v9059_v27 }
 0x11f   : > { %v2568_v45 = vrot.slane %v2554_v25, %v9059_v27  ;;  %v2569_v26 = vcombine.high %v2561_v33, %v2561_v33  ;;  %v2495_v34 = vsel %vm9301_vm4, %v2087_v38, 0.0  ;;  %v1679_v46 = vcombine.high %v1671_v39, %v1671_v39  ;;  %vm9466_vm4 = vmand %vm9345_vm11, %vm2023_vm3 }
 0x120   : > { %v2999_v3 = vcombine.low %v2610_v42, %v9411_v41  ;;  %v3006_v48 = vrot.slane %v2998_v43, %v9059_v27  ;;  %v2571_v13 = vcombine.high %v2495_v34, %v2495_v34  ;;  %v2578_v24 = vrot.slane %v2495_v34, %v9059_v27 }
 0x121   : > { %v2570_v44 = vcombine.high %v2568_v45, %v2568_v45  ;;  %v2964_v49 = vcombine.low %v2561_v33, %v2569_v26  ;;  %v9426_v50 = vcombine.low %v1671_v39, %v1679_v46  ;;  %v2176_v2 = vrot.slane %v9414_v22, %v9059_v27 }
 0x122   : > { %v3013_v53 = vrot.slane %v2999_v3, %v9059_v27  ;;  %v2585_v54 = vrot.slane %v2571_v13, %v9059_v27  ;;  %v2586_v31 = vcombine.high %v2578_v24, %v2578_v24  ;;  %v1630_v14 = vcombine.high %v1520_v15, %v1520_v15 }
 0x123   : > { %v9430_v51 = vpop.f32.mrb[12].mxu0  ;;  %v2965_v58 = vcombine.low %v2568_v45, %v2570_v44  ;;  %v2972_v60 = vrot.slane %v2964_v49, %v9059_v27  ;;  %v2168_v63 = vrot.slane %v9426_v50, %v9059_v27  ;;  %v9439_v0 = vsel %vm2032_vm15, %v2176_v2, 0.0 }
 0x124   : > { %v9434_v28 = vpop.f32.mrb[13].mxu0  ;;  %v3014_v32 = vcombine.low %v3006_v48, %v3013_v53  ;;  %v2587_v36 = vcombine.high %v2585_v54, %v2585_v54  ;;  %v2981_v29 = vcombine.low %v2578_v24, %v2586_v31  ;;  %v2676_v5 = vrot.slane %v9439_v0, %v9059_v27 }
 0x125   : > { %v9443_v1 = vpop.f32.mrb[14].mxu0  ;;  %v2979_v19 = vrot.slane %v2965_v58, %v9059_v27  ;;  %v1637_v30 = vrot.slane %v1520_v15, %v9059_v27  ;;  %v1644_v18 = vrot.slane %v1630_v14, %v9059_v27  ;;  %v2611_v20 = vcombine.high %v9411_v41, %v9411_v41 }
 0x126   : > { %v9447_v11 = vpop.f32.mrb[15].mxu0  ;;  %3371 = vst [vmem:[#allocation2 + $0x10] sm:$0xff] %v3014_v32  ;;  %v2982_v21 = vcombine.low %v2585_v54, %v2587_v36  ;;  %v2989_v37 = vrot.slane %v2981_v29, %v9059_v27  ;;  %v1500_v25 = vadd.f32 %v9286_v35, %v1470_v6  ;;  %v1680_v33 = vcombine.high %v9414_v22, %v9414_v22 }
 0x127   : > { %v2980_v38 = vcombine.low %v2972_v60, %v2979_v19  ;;  %v1645_v39 = vcombine.high %v1637_v30, %v1637_v30  ;;  %v1646_v42 = vcombine.high %v1644_v18, %v1644_v18  ;;  %v2113_v15 = vcombine.low %v1629_v61, %v1637_v30 }
 0x128   : > { %v2996_v43 = vrot.slane %v2982_v21, %v9059_v27  ;;  %v1523_v6 = vmax.f32 %v1500_v25, 0.0  ;;  %v1498_v22 = vadd.f32 %v9286_v35, %v9387_v7  ;;  %v1473_v45 = vmul.f32 %v9372_v62, %v9279_v55 }
 0x129   : > { %3369 = vst [vmem:[#allocation2] sm:$0xff] %v2980_v38  ;;  %v2127_v12 = vrot.slane %v2113_v15, %v9059_v27  ;;  %v2135_v61 = vrot.slane %v1645_v39, %v9059_v27  ;;  %v2136_v26 = vcombine.low %v1644_v18, %v1646_v42  ;;  %v1471_v34 = vmul.f32 %v9279_v55, %v9383_v23 }
 0x12a   : > { %v2997_v46 = vcombine.low %v2989_v37, %v2996_v43  ;;  %v1681_v3 = vcombine.high %v1523_v6, %v1523_v6  ;;  %v1688_v48 = vrot.slane %v1523_v6, %v9059_v27  ;;  %v1521_v13 = vmax.f32 %v1498_v22, 0.0 }
 0x12b   : > { %v2128_v7 = vcombine.low %v2120_v59, %v2127_v12  ;;  %v2144_v62 = vrot.slane %v2136_v26, %v9059_v27  ;;  %v2499_v24 = vsel %vm9466_vm4, %v2135_v61, 0.0  ;;  %v1503_v44 = vadd.f32 %v9286_v35, %v1473_v45 }
 0x12c   : > { %3370 = vst [vmem:[#allocation2 + $0x8] sm:$0xff] %v2997_v46  ;;  %v2635_v23 = vrot.slane %v2499_v24, %v9059_v27  ;;  %v9490_v2 = vrot.slane %v1681_v3, %v9059_v27  ;;  %v1696_v53 = vcombine.high %v1688_v48, %v1688_v48  ;;  %v2177_v54 = vcombine.low %v1680_v33, %v1688_v48 }
 0x12d   : > { %v9486_v49 = vpop.f32.mrb[16].mxu0  ;;  %v2498_v52 = vsel %vm9345_vm11, %v2128_v7, 0.0  ;;  %v1647_v59 = vcombine.high %v1521_v13, %v1521_v13  ;;  %v1654_v14 = vrot.slane %v1521_v13, %v9059_v27  ;;  %v1526_v58 = vmax.f32 %v1503_v44, 0.0 }
 0x12e   : > { %v9492_v31 = vpop.f32.mrb[17].mxu0  ;;  %v2612_v32 = vcombine.high %v2498_v52, %v2498_v52  ;;  %v2619_v36 = vrot.slane %v2498_v52, %v9059_v27  ;;  %v2178_v47 = vcombine.low %v1696_v53, %v9490_v2  ;;  %v2185_v19 = vrot.slane %v2177_v54, %v9059_v27 }
 0x12f   : > { %v9497_v60 = vpop.f32.mrb[18].mxu0  ;;  %v1661_v18 = vrot.slane %v1647_v59, %v9059_v27  ;;  %v1662_v21 = vcombine.high %v1654_v14, %v1654_v14  ;;  %v1732_v37 = vcombine.high %v1526_v58, %v1526_v58  ;;  %v1739_v25 = vrot.slane %v1526_v58, %v9059_v27 }
 0x130   : > { %v9510_v30 = vpop.f32.mrb[19].mxu0  ;;  %v2626_v33 = vrot.slane %v2612_v32, %v9059_v27  ;;  %v2627_v38 = vcombine.high %v2619_v36, %v2619_v36  ;;  %v3015_v4 = vcombine.low %v2611_v20, %v2619_v36  ;;  %v2192_v39 = vrot.slane %v2178_v47, %v9059_v27 }
 0x131   : > { %v1663_v15 = vcombine.high %v1661_v18, %v1661_v18  ;;  %v2137_v43 = vcombine.low %v1654_v14, %v1662_v21  ;;  %v1746_v41 = vrot.slane %v1732_v37, %v9059_v27  ;;  %v1747_v6 = vcombine.high %v1739_v25, %v1739_v25 }
 0x132   : > { %v2628_v22 = vcombine.high %v2626_v33, %v2626_v33  ;;  %v3016_v45 = vcombine.low %v2627_v38, %v2626_v33  ;;  %v3023_v12 = vrot.slane %v3015_v4, %v9059_v27  ;;  %v2193_v20 = vcombine.low %v2185_v19, %v2192_v39 }
 0x133   : > { %v2151_v61 = vrot.slane %v2137_v43, %v9059_v27  ;;  %v2153_v26 = vcombine.low %v1661_v18, %v1663_v15  ;;  %v1748_v46 = vcombine.high %v1746_v41, %v1746_v41  ;;  %v2235_v3 = vcombine.low %v1739_v25, %v1747_v6 }
 0x134   : > { %vm1962_vm8 = vcmp.ge.s32.totalorder %v9316_v8, 1  ;;  %v3030_v13 = vrot.slane %v3016_v45, %v9059_v27  ;;  %v9532_v7 = vcombine.low %v2628_v22, %v2635_v23  ;;  %v2503_v24 = vsel %vm9520_vm7, %v2193_v20, 0.0 }
 0x135   : > { %v9529_v48 = vpop.f32.mrb[20].mxu0  ;;  %v1501_v44 = vadd.f32 %v9286_v35, %v1471_v34  ;;  %v2677_v54 = vcombine.high %v2503_v24, %v2503_v24  ;;  %v9540_v52 = vrot.slane %v2503_v24, %v9059_v27  ;;  %v2152_v59 = vcombine.low %v2144_v62, %v2151_v61  ;;  %vm9591_vm11 = vmand %vm1962_vm8, %vm1972_vm9 }
 0x136   : > { %v9537_v53 = vpop.f32.mrb[21].mxu0  ;;  %v2161_v23 = vrot.slane %v2153_v26, %v9059_v27  ;;  %v3031_v58 = vcombine.low %v3023_v12, %v3030_v13  ;;  %v2236_v32 = vcombine.low %v1746_v41, %v1748_v46  ;;  %v9548_v36 = vadd.s32 6, %v9281_v56  ;;  %vm9635_vm13 = vmand %vm9591_vm11, %vm2023_vm3 }
 0x137   : > { %v7776_v14 = vpop.f32.mrb[22].mxu0  ;;  %v9551_v34 = vadd.s32 7, %v9281_v56  ;;  %v3040_v19 = vrot.slane %v9532_v7, %v9059_v27  ;;  %v3067_v62 = vcombine.low %v2676_v5, %v9540_v52  ;;  %v9565_v21 = vadd.s32 8, %v9281_v56  ;;  %vm2003_vm4 = vmand %vm9591_vm11, %vm1988_vm5 }
 0x138   : > { %v9553_v47 = vpop.f32.mrb[23].mxu0  ;;  %v2169_v18 = vcombine.low %v2161_v23, %v2168_v63  ;;  %3372 = vst [vmem:[#allocation2 + $0x18] sm:$0xff] %v3031_v58  ;;  %v2500_v37 = vsel %vm1997_vm10, %v2152_v59, 0.0  ;;  %v2243_v25 = vrot.slane %v2235_v3, %v9059_v27  ;;  %v2250_v33 = vrot.slane %v2236_v32, %v9059_v27 }
 0x139   : > { %v1524_v38 = vmax.f32 %v1501_v44, 0.0  ;;  %v9570_v4 = vrot.slane %v2677_v54, %v9059_v27  ;;  %v2692_v0 = vcombine.high %v9540_v52, %v9540_v52  ;;  %v2636_v63 = vcombine.high %v2500_v37, %v2500_v37 }
 0x13a   : > { %v2501_v50 = vsel %vm9406_vm14, %v2169_v18, 0.0  ;;  %v2643_v5 = vrot.slane %v2500_v37, %v9059_v27  ;;  %v1697_v15 = vcombine.high %v9490_v2, %v9490_v2  ;;  %v3081_v43 = vrot.slane %v3067_v62, %v9059_v27 }
 0x13b   : > { %v2653_v39 = vcombine.high %v2501_v50, %v2501_v50  ;;  %v2660_v42 = vrot.slane %v2501_v50, %v9059_v27  ;;  %v2650_v41 = vrot.slane %v2636_v63, %v9059_v27  ;;  %v1698_v6 = vcombine.high %v1524_v38, %v1524_v38 }
 0x13c   : > { %v1705_v22 = vrot.slane %v1524_v38, %v9059_v27  ;;  %v2651_v45 = vcombine.high %v2643_v5, %v2643_v5  ;;  %v2251_v20 = vcombine.low %v2243_v25, %v2250_v33  ;;  %v1474_v24 = vmul.f32 %v9389_v10, %v9279_v55 }
 0x13d   : > { %v2667_v40 = vrot.slane %v2653_v39, %v9059_v27  ;;  %v2668_v12 = vcombine.high %v2660_v42, %v2660_v42  ;;  %v2652_v61 = vcombine.high %v2650_v41, %v2650_v41  ;;  %v1712_v26 = vrot.slane %v1698_v6, %v9059_v27 }
 0x13e   : > { %v1713_v46 = vcombine.high %v1705_v22, %v1705_v22  ;;  %v2194_v3 = vcombine.low %v1697_v15, %v1705_v22  ;;  %v3033_v7 = vcombine.low %v2643_v5, %v2651_v45  ;;  %v1504_v10 = vadd.f32 %v9286_v35, %v1474_v24 }
 0x13f   : > { %v2669_v13 = vcombine.high %v2667_v40, %v2667_v40  ;;  %v3050_v2 = vcombine.low %v2660_v42, %v2668_v12  ;;  %v3049_v54 = vcombine.low %v2650_v41, %v2652_v61  ;;  %v1714_v52 = vcombine.high %v1712_v26, %v1712_v26 }
 0x140   : > { %v2195_v59 = vcombine.low %v1713_v46, %v1712_v26  ;;  %v2202_v23 = vrot.slane %v2194_v3, %v9059_v27  ;;  %v3047_v14 = vrot.slane %v3033_v7, %v9059_v27  ;;  %v2507_v25 = vsel %vm9591_vm11, %v2251_v20, 0.0 }
 0x141   : > { %v3064_v58 = vrot.slane %v3050_v2, %v9059_v27  ;;  %v3066_v32 = vcombine.low %v2667_v40, %v2669_v13  ;;  %v3057_v62 = vrot.slane %v3049_v54, %v9059_v27  ;;  %v2217_v37 = vrot.slane %v1714_v52, %v9059_v27 }
 0x142   : > { %v2209_v18 = vrot.slane %v2195_v59, %v9059_v27  ;;  %v3048_v33 = vcombine.low %v3040_v19, %v3047_v14  ;;  %v1527_v50 = vmax.f32 %v1504_v10, 0.0  ;;  %v2735_v63 = vcombine.high %v2507_v25, %v2507_v25 }
 0x143   : > { %v3074_v38 = vrot.slane %v3066_v32, %v9059_v27  ;;  %v3065_v5 = vcombine.low %v3057_v62, %v3064_v58  ;;  %v2505_v42 = vsel %vm9602_vm12, %v2217_v37, 0.0  ;;  %v2742_v15 = vrot.slane %v2507_v25, %v9059_v27 }
 0x144   : > { %v2210_v39 = vcombine.low %v2202_v23, %v2209_v18  ;;  %v3083_v41 = vcombine.low %v2692_v0, %v9570_v4  ;;  %3373 = vst [vmem:[#allocation2 + $0x20] sm:$0xff] %v3048_v33  ;;  %v1749_v22 = vcombine.high %v1527_v50, %v1527_v50  ;;  %v1756_v45 = vrot.slane %v1527_v50, %v9059_v27 }
 0x145   : > { %v3082_v6 = vcombine.low %v3074_v38, %v3081_v43  ;;  %3374 = vst [vmem:[#allocation2 + $0x28] sm:$0xff] %v3065_v5  ;;  %v2749_v40 = vrot.slane %v2735_v63, %v9059_v27  ;;  %v2750_v12 = vcombine.high %v2742_v15, %v2742_v15  ;;  %v1472_v20 = vmul.f32 %v9279_v55, %v9395_v17 }
 0x146   : > { %v2504_v19 = vsel %vm9504_vm6, %v2210_v39, 0.0  ;;  %v2693_v61 = vcombine.high %v9570_v4, %v9570_v4  ;;  %v2717_v26 = vrot.slane %v2505_v42, %v9059_v27  ;;  %v1764_v46 = vcombine.high %v1756_v45, %v1756_v45 }
 0x147   : > { %3375 = vst [vmem:[#allocation2 + $0x30] sm:$0xff] %v3082_v6  ;;  %v2694_v0 = vcombine.high %v2504_v19, %v2504_v19  ;;  %v2701_v43 = vrot.slane %v2504_v19, %v9059_v27  ;;  %v2751_v3 = vcombine.high %v2749_v40, %v2749_v40  ;;  %v3134_v13 = vcombine.low %v2742_v15, %v2750_v12 }
 0x148   : > { %v1502_v29 = vadd.f32 %v9286_v35, %v1472_v20  ;;  %v2258_v17 = vrot.slane %v1756_v45, %v9059_v27  ;;  %v1763_v54 = vrot.slane %v1749_v22, %v9059_v27  ;;  %v3091_v14 = vrot.slane %v3083_v41, %v9059_v27 }
 0x149   : > { %v2708_v7 = vrot.slane %v2694_v0, %v9059_v27  ;;  %v2709_v2 = vcombine.high %v2701_v43, %v2701_v43  ;;  %v3084_v24 = vcombine.low %v2693_v61, %v2701_v43  ;;  %v3135_v52 = vcombine.low %v2749_v40, %v2751_v3 }
 0x14a   : > { %v3142_v59 = vrot.slane %v3134_v13, %v9059_v27  ;;  %v1525_v23 = vmax.f32 %v1502_v29, 0.0  ;;  %vm1963_vm14 = vcmp.ge.s32.totalorder %v9328_v16, 1  ;;  %vm1973_vm15 = vcmp.le.s32.totalorder %v9328_v16, 16 }
 0x14b   : > { %v2710_v58 = vcombine.high %v2708_v7, %v2708_v7  ;;  %v3098_v32 = vrot.slane %v3084_v24, %v9059_v27  ;;  %v3100_v8 = vcombine.low %v2709_v2, %v2708_v7  ;;  %v9644_v10 = vcombine.low %v1764_v46, %v1763_v54  ;;  %vm9694_vm6 = vmand %vm1963_vm14, %vm1973_vm15  ;;  %v3610_v9 = vld [vmem:[#allocation2 + $0x19] sm:$0xff] }
 0x14c   : > { %v3149_v62 = vrot.slane %v3135_v52, %v9059_v27  ;;  %v1715_v18 = vcombine.high %v1525_v23, %v1525_v23  ;;  %v1722_v37 = vrot.slane %v1525_v23, %v9059_v27  ;;  %v9652_v38 = vsel %vm9635_vm13, %v2258_v17, 0.0  ;;  %vm2006_vm7 = vmand %vm9694_vm6, %vm1988_vm5 }
 0x14d   : > { %v9648_v25 = vcombine.low %v3091_v14, %v3098_v32  ;;  %v3101_v33 = vcombine.low %v2710_v58, %v2717_v26  ;;  %v1477_v50 = vmul.f32 %v9430_v51, %v9279_v55  ;;  %v1475_v42 = vmul.f32 %v9279_v55, %v9434_v28  ;;  %vm9736_vm9 = vmand %vm9694_vm6, %vm2023_vm3 }
 0x14e   : > { %v9656_v63 = vcombine.low %v3142_v59, %v3149_v62  ;;  %v1729_v5 = vrot.slane %v1715_v18, %v9059_v27  ;;  %v1730_v39 = vcombine.high %v1722_v37, %v1722_v37  ;;  %v3108_v15 = vrot.slane %v3100_v8, %v9059_v27 }
 0x14f   : > { %v3115_v41 = vrot.slane %v3101_v33, %v9059_v27  ;;  %3376 = vst [vmem:[#allocation2 + $0x38] sm:$0xff] %v9648_v25  ;;  %v1507_v6 = vadd.f32 %v9286_v35, %v1477_v50  ;;  %v1478_v22 = vmul.f32 %v9443_v1, %v9279_v55  ;;  %v1505_v19 = vadd.f32 %v9286_v35, %v1475_v42 }
 0x150   : > { %3379 = vst [vmem:[#allocation2 + $0x50] sm:$0xff] %v9656_v63  ;;  %v1731_v51 = vcombine.high %v1729_v5, %v1729_v5  ;;  %v2218_v45 = vcombine.low %v1722_v37, %v1730_v39  ;;  %v1476_v28 = vmul.f32 %v9279_v55, %v9447_v11  ;;  %v2267_v12 = vrot.slane %v9644_v10, %v9059_v27 }
 0x151   : > { %v3116_v40 = vcombine.low %v3108_v15, %v3115_v41  ;;  %v1530_v20 = vmax.f32 %v1507_v6, 0.0  ;;  %v1508_v61 = vadd.f32 %v9286_v35, %v1478_v22  ;;  %v1528_v1 = vmax.f32 %v1505_v19, 0.0 }
 0x152   : > { %v2219_v0 = vcombine.low %v1729_v5, %v1731_v51  ;;  %v2226_v43 = vrot.slane %v2218_v45, %v9059_v27  ;;  %v1765_v26 = vcombine.high %v1763_v54, %v1763_v54  ;;  %v1506_v29 = vadd.f32 %v9286_v35, %v1476_v28 }
 0x153   : > { %3377 = vst [vmem:[#allocation2 + $0x40] sm:$0xff] %v3116_v40  ;;  %v1800_v46 = vcombine.high %v1530_v20, %v1530_v20  ;;  %v1807_v3 = vrot.slane %v1530_v20, %v9059_v27  ;;  %v1531_v13 = vmax.f32 %v1508_v61, 0.0  ;;  %v1766_v7 = vcombine.high %v1528_v1, %v1528_v1 }
 0x154   : > { %v2233_v11 = vrot.slane %v2219_v0, %v9059_v27  ;;  %v1773_v2 = vrot.slane %v1528_v1, %v9059_v27  ;;  %vm1964_vm1 = vcmp.ge.s32.totalorder %v9548_v36, 1  ;;  %vm1974_vm2 = vcmp.le.s32.totalorder %v9548_v36, 16 }
 0x155   : > { %v1481_v24 = vmul.f32 %v9486_v49, %v9279_v55  ;;  %v1814_v17 = vrot.slane %v1800_v46, %v9059_v27  ;;  %v1815_v54 = vcombine.high %v1807_v3, %v1807_v3  ;;  %v1817_v4 = vcombine.high %v1531_v13, %v1531_v13  ;;  %vm9724_vm8 = vmand %vm1964_vm1, %vm1974_vm2 }
 0x156   : > { %v1824_v52 = vrot.slane %v1531_v13, %v9059_v27  ;;  %v2234_v59 = vcombine.low %v2226_v43, %v2233_v11  ;;  %v1780_v23 = vrot.slane %v1766_v7, %v9059_v27  ;;  %v1781_v14 = vcombine.high %v1773_v2, %v1773_v2  ;;  %vm2009_vm10 = vmand %vm9724_vm8, %vm1988_vm5 }
 0x157   : > { %v2260_v44 = vcombine.low %v1765_v26, %v1773_v2  ;;  %v2758_v58 = vrot.slane %v9652_v38, %v9059_v27  ;;  %v1816_v32 = vcombine.high %v1814_v17, %v1814_v17  ;;  %v1529_v10 = vmax.f32 %v1506_v29, 0.0  ;;  %vm9793_vm15 = vmand %vm9724_vm8, %vm2023_vm3 }
 0x158   : > { %v1832_v8 = vcombine.high %v1824_v52, %v1824_v52  ;;  %v2506_v62 = vsel %vm2003_vm4, %v2234_v59, 0.0  ;;  %v2301_v18 = vcombine.low %v1807_v3, %v1815_v54  ;;  %v1511_v33 = vadd.f32 %v9286_v35, %v1481_v24 }
 0x159   : > { %v2274_v37 = vrot.slane %v2260_v44, %v9059_v27  ;;  %v2718_v50 = vcombine.high %v2506_v62, %v2506_v62  ;;  %v2725_v16 = vrot.slane %v2506_v62, %v9059_v27  ;;  %v2317_v5 = vcombine.low %v1814_v17, %v1816_v32 }
 0x15a   : > { %v9708_v38 = vrot.slane %v1817_v4, %v9059_v27  ;;  %v2276_v42 = vcombine.low %v1781_v14, %v1780_v23  ;;  %v2318_v15 = vcombine.low %v1824_v52, %v1832_v8  ;;  %v1782_v41 = vcombine.high %v1780_v23, %v1780_v23 }
 0x15b   : > { %v2275_v39 = vcombine.low %v2267_v12, %v2274_v37  ;;  %v2732_v6 = vrot.slane %v2718_v50, %v9059_v27  ;;  %v2733_v22 = vcombine.high %v2725_v16, %v2725_v16  ;;  %v2325_v51 = vrot.slane %v2317_v5, %v9059_v27 }
 0x15c   : > { %v1783_v45 = vcombine.high %v1529_v10, %v1529_v10  ;;  %v2315_v19 = vrot.slane %v2301_v18, %v9059_v27  ;;  %v2332_v40 = vrot.slane %v2318_v15, %v9059_v27  ;;  %v1790_v20 = vrot.slane %v1529_v10, %v9059_v27 }
 0x15d   : > { %v2509_v28 = vsel %vm2006_vm7, %v2275_v39, 0.0  ;;  %v2734_v61 = vcombine.high %v2732_v6, %v2732_v6  ;;  %v3117_v0 = vcombine.low %v2725_v16, %v2733_v22  ;;  %v2284_v1 = vrot.slane %v2276_v42, %v9059_v27 }
 0x15e   : > { %v2759_v43 = vcombine.high %v2509_v28, %v2509_v28  ;;  %v2766_v12 = vrot.slane %v2509_v28, %v9059_v27  ;;  %v2333_v26 = vcombine.low %v2325_v51, %v2332_v40  ;;  %v1797_v46 = vrot.slane %v1783_v45, %v9059_v27 }
 0x15f   : > { %v1798_v3 = vcombine.high %v1790_v20, %v1790_v20  ;;  %v3118_v13 = vcombine.low %v2732_v6, %v2734_v61  ;;  %v3125_v29 = vrot.slane %v3117_v0, %v9059_v27  ;;  %v2277_v4 = vcombine.low %v1782_v41, %v1790_v20 }
 0x160   : > { %v2773_v11 = vrot.slane %v2759_v43, %v9059_v27  ;;  %v2774_v7 = vcombine.high %v2766_v12, %v2766_v12  ;;  %v3151_v24 = vcombine.low %v2758_v58, %v2766_v12  ;;  %v2513_v17 = vsel %vm9724_vm8, %v2333_v26, 0.0 }
 0x161   : > { %v1799_v54 = vcombine.high %v1797_v46, %v1797_v46  ;;  %v3132_v52 = vrot.slane %v3118_v13, %v9059_v27  ;;  %v2817_v23 = vcombine.high %v2513_v17, %v2513_v17  ;;  %v2824_v14 = vrot.slane %v2513_v17, %v9059_v27 }
 0x162   : > { %v3152_v59 = vcombine.low %v2774_v7, %v2773_v11  ;;  %v3159_v44 = vrot.slane %v3151_v24, %v9059_v27  ;;  %v2291_v58 = vrot.slane %v2277_v4, %v9059_v27  ;;  %v2299_v32 = vrot.slane %v1798_v3, %v9059_v27 }
 0x163   : > { %v2300_v8 = vcombine.low %v1797_v46, %v1799_v54  ;;  %v9743_v10 = vcombine.low %v3125_v29, %v3132_v52  ;;  %v9747_v18 = vrot.slane %v2817_v23, %v9059_v27  ;;  %v2832_v37 = vcombine.high %v2824_v14, %v2824_v14 }
 0x164   : > { %v3166_v62 = vrot.slane %v3152_v59, %v9059_v27  ;;  %v2292_v50 = vcombine.low %v2284_v1, %v2291_v58  ;;  %v2511_v5 = vsel %vm9736_vm9, %v2299_v32, 0.0  ;;  %v2340_v42 = vrot.slane %v9708_v38, %v9059_v27 }
 0x165   : > { %v2308_v16 = vrot.slane %v2300_v8, %v9059_v27  ;;  %3378 = vst [vmem:[#allocation2 + $0x48] sm:$0xff] %v9743_v10  ;;  %v9757_v15 = vcombine.low %v2824_v14, %v2832_v37  ;;  %v2775_v41 = vcombine.high %v2773_v11, %v2773_v11  ;;  %v1534_v51 = vmax.f32 %v1511_v33, 0.0 }
 0x166   : > { %v9753_v39 = vcombine.low %v3159_v44, %v3166_v62  ;;  %v2510_v22 = vsel %vm9694_vm6, %v2292_v50, 0.0  ;;  %v1479_v45 = vmul.f32 %v9279_v55, %v9492_v31  ;;  %vm1965_vm11 = vcmp.ge.s32.totalorder %v9551_v34, 1 }
 0x167   : > { %v2316_v6 = vcombine.low %v2308_v16, %v2315_v19  ;;  %vm1975_vm12 = vcmp.le.s32.totalorder %v9551_v34, 16  ;;  %v2833_v28 = vcombine.high %v9747_v18, %v9747_v18  ;;  %v2776_v40 = vcombine.high %v2510_v22, %v2510_v22 }
 0x168   : > { %3380 = vst [vmem:[#allocation2 + $0x58] sm:$0xff] %v9753_v39  ;;  %v2783_v20 = vrot.slane %v2510_v22, %v9059_v27  ;;  %v2799_v19 = vrot.slane %v2511_v5, %v9059_v27  ;;  %vm1966_vm13 = vcmp.ge.s32.totalorder %v9565_v21, 1  ;;  %vm1976_vm14 = vcmp.le.s32.totalorder %v9565_v21, 16  ;;  %vm9812_vm1 = vmand %vm1965_vm11, %vm1975_vm12 }
 0x169   : > { %v2512_v49 = vsel %vm2009_vm10, %v2316_v6, 0.0  ;;  %v1868_v31 = vcombine.high %v1534_v51, %v1534_v51  ;;  %v1875_v33 = vrot.slane %v1534_v51, %v9059_v27  ;;  %v1509_v61 = vadd.f32 %v9286_v35, %v1479_v45  ;;  %vm9832_vm2 = vmand %vm1966_vm13, %vm1976_vm14 }
 0x16a   : > { %v3217_v0 = vrot.slane %v9757_v15, %v9059_v27  ;;  %v2790_v43 = vrot.slane %v2776_v40, %v9059_v27  ;;  %v2791_v12 = vcombine.high %v2783_v20, %v2783_v20  ;;  %v2800_v1 = vcombine.high %v2512_v49, %v2512_v49  ;;  %vm9852_vm4 = vmand %vm9832_vm2, %vm1988_vm5 }
 0x16b   : > { %v2807_v26 = vrot.slane %v2512_v49, %v9059_v27  ;;  %v3168_v46 = vcombine.low %v2775_v41, %v2783_v20  ;;  %v1882_v3 = vrot.slane %v1868_v31, %v9059_v27  ;;  %v1883_v13 = vcombine.high %v1875_v33, %v1875_v33  ;;  %v3394_v20 = vld [vmem:[#allocation2 + $0x8] sm:$0xff]  ;;  %vm9865_vm6 = vmand %vm9812_vm1, %vm1988_vm5 }
 0x16c   : > { %v2792_v29 = vcombine.high %v2790_v43, %v2790_v43  ;;  %v2814_v11 = vrot.slane %v2800_v1, %v9059_v27  ;;  %v3169_v7 = vcombine.low %v2791_v12, %v2790_v43  ;;  %v1532_v24 = vmax.f32 %v1509_v61, 0.0  ;;  %v4109_v61 = vld [vmem:[#allocation2 + $0x12] sm:$0xff]  ;;  %v8692_v43 = vld [vmem:[%s11148_s4 + $0x100] sm:$0xff]   ;;  %vm9921_vm7 = vmand %vm9812_vm1, %vm2023_vm3 }
 0x16d   : > { %v2815_v17 = vcombine.high %v2807_v26, %v2807_v26  ;;  %v3176_v54 = vrot.slane %v3168_v46, %v9059_v27  ;;  %v1884_v4 = vcombine.high %v1882_v3, %v1882_v3  ;;  %v2382_v52 = vcombine.low %v1875_v33, %v1883_v13  ;;  %v8697_v13 = vld [vmem:[%s11148_s4 + $0x40] sm:$0xff]   ;;  %vm2050_vm10 = vmand %vm9832_vm2, %vm2023_vm3  ;;  %v4113_v33 = vld [vmem:[#allocation2 + $0x32] sm:$0xff] }
 0x16e   : > { %v2816_v59 = vcombine.high %v2814_v11, %v2814_v11  ;;  %v3183_v23 = vrot.slane %v3169_v7, %v9059_v27  ;;  %v3185_v14 = vcombine.low %v2792_v29, %v2799_v19  ;;  %v1833_v36 = vcombine.high %v9708_v38, %v9708_v38  ;;  %v4110_v19 = vld [vmem:[#allocation2 + $0x1a] sm:$0xff] }
 0x16f   : > { %v3186_v44 = vcombine.low %v2807_v26, %v2815_v17  ;;  %v2383_v58 = vcombine.low %v1882_v3, %v1884_v4  ;;  %v2390_v32 = vrot.slane %v2382_v52, %v9059_v27  ;;  %v1834_v8 = vcombine.high %v1532_v24, %v1532_v24  ;;  %v9875_v52 = vld [vmem:[%s11146_s2] ss:$0 sm:$0xff] }
 0x170   : > { %v9797_v37 = vcombine.low %v3176_v54, %v3183_v23  ;;  %v3193_v50 = vrot.slane %v3185_v14, %v9059_v27  ;;  %v3202_v16 = vcombine.low %v2814_v11, %v2816_v59  ;;  %v1841_v38 = vrot.slane %v1532_v24, %v9059_v27  ;;  %v8693_v23 = vld [vmem:[%s11148_s4 + $0x108] sm:$0xff]  }
 0x171   : > { %v3200_v5 = vrot.slane %v3186_v44, %v9059_v27  ;;  %v2397_v15 = vrot.slane %v2383_v58, %v9059_v27  ;;  %v1848_v41 = vrot.slane %v1834_v8, %v9059_v27  ;;  %v1482_v2 = vmul.f32 %v9497_v60, %v9279_v55 }
 0x172   : > { %v3210_v6 = vrot.slane %v3202_v16, %v9059_v27  ;;  %3381 = vst [vmem:[#allocation2 + $0x60] sm:$0xff] %v9797_v37  ;;  %v1849_v22 = vcombine.high %v1841_v38, %v1841_v38  ;;  %v2341_v45 = vcombine.low %v1833_v36, %v1841_v38  ;;  %v1480_v40 = vmul.f32 %v9279_v55, %v9510_v30  ;;  %v8698_v16 = vld [vmem:[%s11148_s4 + $0x48] sm:$0xff]  }
 0x173   : > { %v9820_v60 = vsel %vm9793_vm15, %v2340_v42, 0.0  ;;  %v9823_v49 = vcombine.low %v9747_v18, %v2833_v28  ;;  %v9825_v31 = vcombine.low %v3193_v50, %v3200_v5  ;;  %v1512_v34 = vadd.f32 %v9286_v35, %v1482_v2  ;;  %v3393_v28 = vld [vmem:[#allocation2] sm:$0xff] }
 0x174   : > { %v9836_v55 = vcombine.low %v3210_v6, %v3217_v0  ;;  %v2342_v30 = vcombine.low %v1849_v22, %v1848_v41  ;;  %v2349_v42 = vrot.slane %v2341_v45, %v9059_v27  ;;  %v1510_v18 = vadd.f32 %v9286_v35, %v1480_v40  ;;  %v9908_v45 = vld [vmem:[%s11147_s3] ss:$0 sm:$0xff]  ;;  %v8695_v35 = vld [vmem:[%s11148_s4 + $0x118] sm:$0xff]  }
 0x175   : > { %3382 = vst [vmem:[#allocation2 + $0x68] sm:$0xff] %v9825_v31  ;;  %v2398_v21 = vcombine.low %v2390_v32, %v2397_v15  ;;  %v1535_v12 = vmax.f32 %v1512_v34, 0.0  ;;  %v3411_v1 = vpack.c.bf16 %v3394_v20, %v3393_v28  ;;  %v9844_v26 = vpack.c.bf16 %v4110_v19, %v4109_v61  ;;  %v9889_v32 = vld [vmem:[#allocation2 + $0xb4] sm:$0xff] }
 0x176   : > { %3383 = vst [vmem:[#allocation2 + $0x70] sm:$0xff] %v9836_v55  ;;  %v2356_v0 = vrot.slane %v2342_v30, %v9059_v27  ;;  %v1533_v46 = vmax.f32 %v1510_v18, 0.0  ;;  %v1850_v3 = vcombine.high %v1848_v41, %v1848_v41  ;;  %v2840_v29 = vrot.slane %v9820_v60, %v9059_v27  ;;  %v8694_v20 = vld [vmem:[%s11148_s4 + $0x110] sm:$0xff]  }
 0x177   : > { %v1885_v7 = vcombine.high %v1535_v12, %v1535_v12  ;;  %v1892_v24 = vrot.slane %v1535_v12, %v9059_v27  ;;  %7794 = vmatmul.mubr.bf16.vlgmr.msra.gmra.mrb[24].mxu0 %v3411_v1  ;;  %7950 = vmatmul.mubr.bf16.vlgmr.msra.gmra.mrb[0].mxu1 %v9844_v26  ;;  %v1483_v59 = vmul.f32 %v9875_v52, %v9537_v53  ;;  %v9887_v58 = vsel %vm9852_vm4, %v2398_v21, 0.0  ;;  %v8699_v61 = vld [vmem:[%s11148_s4 + $0x50] sm:$0xff]  }
 0x178   : > { %v2357_v17 = vcombine.low %v2349_v42, %v2356_v0  ;;  %v1851_v54 = vcombine.high %v1533_v46, %v1533_v46  ;;  %v1858_v4 = vrot.slane %v1533_v46, %v9059_v27  ;;  %7986 = vmatpush3.bf16.msra.mxu1 %v8692_v43  ;;  %v3227_v14 = vrot.slane %v9823_v49, %v9059_v27 }
 0x179   : > { %v1899_v36 = vrot.slane %v1885_v7, %v9059_v27  ;;  %v1900_v44 = vcombine.high %v1892_v24, %v1892_v24  ;;  %7797 = vmatprep.mubr.msk.bf16.mxu0 %vm8874_vm0, %v9889_v32  ;;  %7953 = vmatprep.mubr.msk.bf16.mxu1 %vm8874_vm0, %v9889_v32  ;;  %v1513_v40 = vadd.f32 %v9908_v45, %v1483_v59 }
 0x17a   : > { %v2515_v53 = vsel %vm9865_vm6, %v2357_v17, 0.0  ;;  %v1865_v8 = vrot.slane %v1851_v54, %v9059_v27  ;;  %v1866_v62 = vcombine.high %v1858_v4, %v1858_v4  ;;  %v2358_v50 = vcombine.low %v1850_v3, %v1858_v4  ;;  %7987 = vmatprep.subr.bf16.mxu1 %v9889_v32  ;;  %7830 = vmatpush3.bf16.msra.mxu0 %v8697_v13 }
 0x17b   : > { %v2841_v38 = vcombine.high %v2515_v53, %v2515_v53  ;;  %v2848_v5 = vrot.slane %v2515_v53, %v9059_v27  ;;  %v1901_v15 = vcombine.high %v1899_v36, %v1899_v36  ;;  %v2399_v41 = vcombine.low %v1892_v24, %v1900_v44  ;;  %7831 = vmatprep.subr.bf16.mxu0 %v9889_v32  ;;  %v8701_v24 = vld [vmem:[%s11148_s4 + $0x58] sm:$0xff]   ;;  %v8696_v44 = vld [vmem:[%s11148_s4 + $0x120] sm:$0xff]  }
 0x17c   : > { %v1867_v2 = vcombine.high %v1865_v8, %v1865_v8  ;;  %v2359_v6 = vcombine.low %v1866_v62, %v1865_v8  ;;  %v2366_v22 = vrot.slane %v2358_v50, %v9059_v27  ;;  %7988 = vmatpush3.bf16.msra.mxu1 %v8693_v23  ;;  %v1485_v12 = vmul.f32 %v9875_v52, %v9529_v48 }
 0x17d   : > { %v2855_v19 = vrot.slane %v2841_v38, %v9059_v27  ;;  %v2856_v60 = vcombine.high %v2848_v5, %v2848_v5  ;;  %v3220_v49 = vcombine.low %v2840_v29, %v2848_v5  ;;  %v2400_v34 = vcombine.low %v1899_v36, %v1901_v15  ;;  %7989 = vmatprep.subr.bf16.mxu1 %v9889_v32  ;;  %v8702_v15 = vld [vmem:[%s11148_s4 + $0x60] sm:$0xff]  }
 0x17e   : > { %v2407_v30 = vrot.slane %v2399_v41, %v9059_v27  ;;  %v2373_v18 = vrot.slane %v2359_v6, %v9059_v27  ;;  %v2381_v28 = vrot.slane %v1867_v2, %v9059_v27  ;;  %7832 = vmatpush3.bf16.msra.mxu0 %v8698_v16  ;;  %v1536_v46 = vmax.f32 %v1513_v40, 0.0  ;;  %v3396_v40 = vld [vmem:[#allocation2 + $0x18] sm:$0xff] }
 0x17f   : > { %v3234_v43 = vrot.slane %v3220_v49, %v9059_v27  ;;  %v2414_v21 = vrot.slane %v2400_v34, %v9059_v27  ;;  %7833 = vmatprep.subr.bf16.mxu0 %v9889_v32  ;;  %v3236_v1 = vcombine.low %v2856_v60, %v2855_v19  ;;  %v2882_v3 = vcombine.high %v9887_v58, %v9887_v58 }
 0x180   : > { %v2374_v0 = vcombine.low %v2366_v22, %v2373_v18  ;;  %7990 = vmatpush3.bf16.msra.mxu1 %v8694_v20  ;;  %v2517_v11 = vsel %vm9921_vm7, %v2381_v28, 0.0  ;;  %v2857_v48 = vcombine.high %v2855_v19, %v2855_v19  ;;  %v9953_v4 = vadd.f32 %v9908_v45, %v1485_v12  ;;  %v3395_v18 = vld [vmem:[#allocation2 + $0x10] sm:$0xff] }
 0x181   : > { %v9940_v13 = vcombine.low %v3227_v14, %v3234_v43  ;;  %v2415_v29 = vcombine.low %v2407_v30, %v2414_v21  ;;  %7991 = vmatprep.subr.bf16.mxu1 %v9889_v32  ;;  %v3244_v51 = vrot.slane %v3236_v1, %v9059_v27  ;;  %v2881_v23 = vrot.slane %v2517_v11, %v9059_v27  ;;  %v4112_v28 = vld [vmem:[#allocation2 + $0x2a] sm:$0xff] }
 0x182   : > { %v2516_v7 = vsel %vm9812_vm1, %v2374_v0, 0.0  ;;  %7834 = vmatpush3.bf16.msra.mxu0 %v8699_v61  ;;  %v1902_v14 = vcombine.high %v1536_v46, %v1536_v46  ;;  %v2889_v36 = vrot.slane %v9887_v58, %v9059_v27  ;;  %v2896_v50 = vrot.slane %v2882_v3, %v9059_v27 }
 0x183   : > { %3384 = vst [vmem:[#allocation2 + $0x78] sm:$0xff] %v9940_v13  ;;  %v2858_v17 = vcombine.high %v2516_v7, %v2516_v7  ;;  %v2865_v54 = vrot.slane %v2516_v7, %v9059_v27  ;;  %v2519_v59 = vsel %vm9832_vm2, %v2415_v29, 0.0  ;;  %7835 = vmatprep.subr.bf16.mxu0 %v9889_v32  ;;  %v9969_v16 = vadd.s32 9, %v9281_v56  ;;  %v8700_v29 = vld [vmem:[%s11148_s4 + $0x128] sm:$0xff]  }
 0x184   : > { %7992 = vmatpush3.bf16.msra.mxu1 %v8695_v35  ;;  %v9972_v38 = vrot.slane %v1536_v46, %v9059_v27  ;;  %v2897_v58 = vcombine.high %v2889_v36, %v2889_v36  ;;  %v2899_v5 = vcombine.high %v2519_v59, %v2519_v59  ;;  %v2898_v22 = vcombine.high %v2896_v50, %v2896_v50  ;;  %v4111_v35 = vld [vmem:[#allocation2 + $0x22] sm:$0xff] }
 0x185   : > { %v2872_v53 = vrot.slane %v2858_v17, %v9059_v27  ;;  %v2873_v8 = vcombine.high %v2865_v54, %v2865_v54  ;;  %v3237_v62 = vcombine.low %v2857_v48, %v2865_v54  ;;  %7993 = vmatprep.subr.bf16.mxu1 %v9889_v32  ;;  %v1538_v56 = vmax.f32 %v9953_v4, 0.0 }
 0x186   : > { %7836 = vmatpush3.bf16.msra.mxu0 %v8701_v24  ;;  %v9981_v20 = vrot.slane %v1902_v14, %v9059_v27  ;;  %v2906_v19 = vrot.slane %v2519_v59, %v9059_v27  ;;  %v2913_v60 = vrot.slane %v2899_v5, %v9059_v27  ;;  %v3270_v42 = vcombine.low %v2889_v36, %v2897_v58  ;;  %v3398_v36 = vld [vmem:[#allocation2 + $0x28] sm:$0xff] }
 0x187   : > { %v2874_v41 = vcombine.high %v2872_v53, %v2872_v53  ;;  %v3251_v2 = vrot.slane %v3237_v62, %v9059_v27  ;;  %v3253_v6 = vcombine.low %v2873_v8, %v2872_v53  ;;  %7837 = vmatprep.subr.bf16.mxu0 %v9889_v32  ;;  %v3271_v21 = vcombine.low %v2896_v50, %v2898_v22 }
 0x188   : > { %7994 = vmatpush3.bf16.msra.mxu1 %v8696_v44  ;;  %v2914_v61 = vcombine.high %v2906_v19, %v2906_v19  ;;  %v2915_v43 = vcombine.high %v2913_v60, %v2913_v60  ;;  %v3412_v12 = vpack.c.bf16 %v3396_v40, %v3395_v18  ;;  %v1917_v0 = vcombine.high %v9972_v38, %v9972_v38  ;;  %v8703_v44 = vld [vmem:[%s11148_s4 + $0x130] sm:$0xff]  }
 0x189   : > { %v9985_v49 = vcombine.low %v3244_v51, %v3251_v2  ;;  %v3254_v34 = vcombine.low %v2874_v41, %v2881_v23  ;;  %v3261_v30 = vrot.slane %v3253_v6, %v9059_v27  ;;  %7995 = vmatprep.subr.bf16.mxu1 %v9889_v32  ;;  %v3278_v46 = vrot.slane %v3270_v42, %v9059_v27  ;;  %v4114_v41 = vld [vmem:[#allocation2 + $0x3a] sm:$0xff]  ;;  %v8705_v6 = vld [vmem:[%s11148_s4 + $0x70] sm:$0xff]  }
 0x18a   : > { %7838 = vmatpush3.bf16.msra.mxu0 %v8702_v15  ;;  %v1484_v3 = vmul.f32 %v9875_v52, %v9553_v47  ;;  %v3285_v11 = vrot.slane %v3271_v21, %v9059_v27  ;;  %v3287_v48 = vcombine.low %v2906_v19, %v2914_v61  ;;  %v3288_v7 = vcombine.low %v2913_v60, %v2915_v43  ;;  %v8704_v52 = vld [vmem:[%s11148_s4 + $0x68] sm:$0xff]   ;;  %v3397_v15 = vld [vmem:[#allocation2 + $0x20] sm:$0xff]  ;;  %v8707_v43 = vld [vmem:[%s11148_s4 + $0x78] sm:$0xff]  }
 0x18b   : > { %v3268_v1 = vrot.slane %v3254_v34, %v9059_v27  ;;  %3385 = vst [vmem:[#allocation2 + $0x80] sm:$0xff] %v9985_v49  ;;  %7839 = vmatprep.subr.bf16.mxu0 %v9889_v32  ;;  %7798 = vmatmul.mubr.bf16.gmra.mrb[28].mxu0 %v3412_v12  ;;  %v10001_v24 = vpack.c.bf16 %v4112_v28, %v4111_v35  ;;  %vm1967_vm8 = vcmp.ge.s32.totalorder %v9969_v16, 1  ;;  %vm1977_vm9 = vcmp.le.s32.totalorder %v9969_v16, 16 }
 0x18c   : > { %v1514_v47 = vadd.f32 %v9908_v45, %v1484_v3  ;;  %7801 = vmatprep.mubr.msk.bf16.mxu0 %vm8874_vm0, %v9889_v32  ;;  %v3286_v54 = vcombine.low %v3278_v46, %v3285_v11  ;;  %v3295_v4 = vrot.slane %v3287_v48, %v9059_v27  ;;  %v3302_v59 = vrot.slane %v3288_v7, %v9059_v27  ;;  %vm10050_vm11 = vmand %vm1967_vm8, %vm1977_vm9  ;;  %v3399_v46 = vld [vmem:[#allocation2 + $0x30] sm:$0xff]  ;;  %v4115_v11 = vld [vmem:[#allocation2 + $0x42] sm:$0xff] }
 0x18d   : > { %v10003_v17 = vcombine.low %v3261_v30, %v3268_v1  ;;  %7954 = vmatmul.mubr.bf16.gmra.mrb[4].mxu1 %v10001_v24  ;;  %v1942_v45 = vrot.slane %v1538_v56, %v9059_v27  ;;  %v2423_v51 = vcombine.low %v1917_v0, %v9981_v20  ;;  %v1918_v14 = vcombine.high %v9981_v20, %v9981_v20  ;;  %v8706_v30 = vld [vmem:[%s11148_s4 + $0x138] sm:$0xff]   ;;  %vm2018_vm12 = vmand %vm10050_vm11, %vm1988_vm5  ;;  %v4116_v48 = vld [vmem:[#allocation2 + $0x4a] sm:$0xff] }
 0x18e   : > { %v1537_v23 = vmax.f32 %v1514_v47, 0.0  ;;  %7957 = vmatprep.mubr.msk.bf16.mxu1 %vm8874_vm0, %v9889_v32  ;;  %7996 = vmatpush3.bf16.msra.mxu1 %v8700_v29  ;;  %v2422_v53 = vrot.slane %v9972_v38, %v9059_v27  ;;  %v3303_v8 = vcombine.low %v3295_v4, %v3302_v59  ;;  %3387 = vst [vmem:[#allocation2 + $0x90] sm:$0xff] %v3286_v54  ;;  %vm10082_vm13 = vmand %vm10050_vm11, %vm2023_vm3 }
 0x18f   : > { %3386 = vst [vmem:[#allocation2 + $0x88] sm:$0xff] %v10003_v17  ;;  %v3416_v62 = vpack.c.bf16 %v9753_v39, %v9656_v63  ;;  %v3417_v50 = vpack.c.bf16 %v9825_v31, %v9797_v37  ;;  %7997 = vmatprep.subr.bf16.mxu1 %v9889_v32  ;;  %v3418_v2 = vpack.c.bf16 %v9940_v13, %v9836_v55  ;;  %v3607_v55 = vld [vmem:[#allocation2 + $0x1] sm:$0xff]  ;;  %v3608_v13 = vld [vmem:[#allocation2 + $0x9] sm:$0xff] }
 0x190   : > { %v1919_v58 = vcombine.high %v1537_v23, %v1537_v23  ;;  %v1926_v5 = vrot.slane %v1537_v23, %v9059_v27  ;;  %7840 = vmatpush3.bf16.msra.mxu0 %v8704_v52  ;;  %v3419_v38 = vpack.c.bf16 %v10003_v17, %v9985_v49  ;;  %v1943_v22 = vcombine.high %v1942_v45, %v1942_v45  ;;  %v8708_v49 = vld [vmem:[%s11148_s4 + $0x140] sm:$0xff]  }
 0x191   : > { %3388 = vst [vmem:[#allocation2 + $0x98] sm:$0xff] %v3303_v8  ;;  %v3413_v40 = vpack.c.bf16 %v3398_v36, %v3397_v15  ;;  %7841 = vmatprep.subr.bf16.mxu0 %v9889_v32  ;;  %v2431_v20 = vrot.slane %v2423_v51, %v9059_v27  ;;  %v10059_v42 = vpack.c.bf16 %v4114_v41, %v4113_v33  ;;  %v2520_v16 = vsel %vm2050_vm10, %v2422_v53, 0.0  ;;  %v3401_v53 = vld [vmem:[#allocation2 + $0x40] sm:$0xff] }
 0x192   : > { %v1933_v19 = vrot.slane %v1919_v58, %v9059_v27  ;;  %v1934_v60 = vcombine.high %v1926_v5, %v1926_v5  ;;  %v2424_v34 = vcombine.low %v1918_v14, %v1926_v5  ;;  %7998 = vmatpush3.bf16.msra.mxu1 %v8703_v44  ;;  %v2463_v21 = vrot.slane %v1943_v22, %v9059_v27 }
 0x193   : > { %7802 = vmatmul.mubr.bf16.gmra.mrb[32].mxu0 %v3413_v40  ;;  %7999 = vmatprep.subr.bf16.mxu1 %v9889_v32  ;;  %v2922_v3 = vrot.slane %v2520_v16, %v9059_v27  ;;  %v3414_v57 = vpack.c.bf16 %v9648_v25, %v3399_v46  ;;  %v10095_v51 = vpack.c.bf16 %v4116_v48, %v4115_v11  ;;  %v4118_v40 = vld [vmem:[#allocation2 + $0x5a] sm:$0xff]  ;;  %v8715_v11 = vld [vmem:[%s11148_s4 + $0x90] sm:$0xff]  }
 0x194   : > { %v1935_v18 = vcombine.high %v1933_v19, %v1933_v19  ;;  %v2438_v28 = vrot.slane %v2424_v34, %v9059_v27  ;;  %v2440_v61 = vcombine.low %v1934_v60, %v1933_v19  ;;  %7805 = vmatprep.mubr.msk.bf16.mxu0 %vm8874_vm0, %v9889_v32  ;;  %7842 = vmatpush3.bf16.msra.mxu0 %v8705_v6  ;;  %v2523_v52 = vsel %vm10082_vm13, %v2463_v21, 0.0  ;;  %v4117_v34 = vld [vmem:[#allocation2 + $0x52] sm:$0xff]  ;;  %v4122_v21 = vld [vmem:[#allocation2 + $0x7a] sm:$0xff] }
 0x195   : > { %7958 = vmatmul.mubr.bf16.gmra.mrb[8].mxu1 %v10059_v42  ;;  %7843 = vmatprep.subr.bf16.mxu0 %v9889_v32  ;;  %v2963_v8 = vrot.slane %v2523_v52, %v9059_v27  ;;  %v3415_v22 = vpack.c.bf16 %v9743_v10, %v3401_v53  ;;  %v10112_v16 = vpack.c.bf16 %v4118_v40, %v4117_v34  ;;  %v4120_v10 = vld [vmem:[#allocation2 + $0x6a] sm:$0xff]  ;;  %v4360_v46 = vld [vmem:[#allocation2 + $0x13] sm:$0xff] }
 0x196   : > { %v2439_v12 = vcombine.low %v2431_v20, %v2438_v28  ;;  %v2441_v1 = vcombine.low %v1935_v18, %v1942_v45  ;;  %v2448_v0 = vrot.slane %v2440_v61, %v9059_v27  ;;  %7961 = vmatprep.mubr.msk.bf16.mxu1 %vm8874_vm0, %v9889_v32  ;;  %8000 = vmatpush3.bf16.msra.mxu1 %v8706_v30  ;;  %v4119_v28 = vld [vmem:[#allocation2 + $0x62] sm:$0xff]  ;;  %v4124_v39 = vld [vmem:[#allocation2 + $0x8a] sm:$0xff]  ;;  %v8717_v52 = vld [vmem:[%s11148_s4 + $0x98] sm:$0xff]  }
 0x197   : > { %8037 = vmatprep.subr.bf16.mxu1 %v9889_v32  ;;  %v10122_v61 = vpack.c.bf16 %v4120_v10, %v4119_v28  ;;  %v4123_v63 = vld [vmem:[#allocation2 + $0x82] sm:$0xff]  ;;  %v8719_v40 = vld [vmem:[%s11148_s4 + $0x170] sm:$0xff]   ;;  %v8722_v34 = vld [vmem:[%s11148_s4 + $0x178] sm:$0xff]  }
 0x198   : > { %v2455_v35 = vrot.slane %v2441_v1, %v9059_v27  ;;  %v2521_v29 = vsel %vm2018_vm12, %v2439_v12, 0.0  ;;  %7844 = vmatpush3.bf16.msra.mxu0 %v8707_v43  ;;  %v4121_v43 = vld [vmem:[#allocation2 + $0x72] sm:$0xff]  ;;  %v8713_v1 = vld [vmem:[%s11148_s4 + $0x80] sm:$0xff]   ;;  %v8720_v53 = vld [vmem:[%s11148_s4 + $0xa8] sm:$0xff]  }
 0x199   : > { %v2923_v7 = vcombine.high %v2521_v29, %v2521_v29  ;;  %v2930_v47 = vrot.slane %v2521_v29, %v9059_v27  ;;  %7881 = vmatprep.subr.bf16.mxu0 %v9889_v32  ;;  %v10132_v12 = vpack.c.bf16 %v4122_v21, %v4121_v43  ;;  %v4125_v37 = vld [vmem:[#allocation2 + $0x92] sm:$0xff] }
 0x19a   : > { %v2456_v54 = vcombine.low %v2448_v0, %v2455_v35  ;;  %v3625_v0 = vpack.c.bf16 %v3608_v13, %v3607_v55  ;;  %v3609_v35 = vld [vmem:[#allocation2 + $0x11] sm:$0xff]  ;;  %v3618_v28 = vld [vmem:[#allocation2 + $0x59] sm:$0xff] }
 0x19b   : > { %v2937_v4 = vrot.slane %v2923_v7, %v9059_v27  ;;  %v2938_v59 = vcombine.high %v2930_v47, %v2930_v47  ;;  %v3304_v45 = vcombine.low %v2922_v3, %v2930_v47  ;;  %7806 = vmatmul.mubr.bf16.gmra.mrb[36].mxu0 %v3414_v57  ;;  %v8709_v3 = vld [vmem:[%s11148_s4 + $0x148] sm:$0xff]   ;;  %v3626_v48 = vpack.c.bf16 %v3610_v9, %v3609_v35  ;;  %v8710_v47 = vld [vmem:[%s11148_s4 + $0x150] sm:$0xff]   ;;  %v4373_v13 = vld [vmem:[#allocation2 + $0x7b] sm:$0xff] }
 0x19c   : > { %v2522_v23 = vsel %vm10050_vm11, %v2456_v54, 0.0  ;;  %7809 = vmatprep.mubr.msk.bf16.mxu0 %vm8874_vm0, %v9889_v32  ;;  %v4363_v29 = vld [vmem:[#allocation2 + $0x2b] sm:$0xff]  ;;  %v4362_v7 = vld [vmem:[#allocation2 + $0x23] sm:$0xff]  ;;  %v4372_v55 = vld [vmem:[#allocation2 + $0x73] sm:$0xff] }
 0x19d   : > { %v2939_v25 = vcombine.high %v2937_v4, %v2937_v4  ;;  %v2940_v14 = vcombine.high %v2522_v23, %v2522_v23  ;;  %v2947_v36 = vrot.slane %v2522_v23, %v9059_v27  ;;  %v3305_v44 = vcombine.low %v2938_v59, %v2937_v4  ;;  %7962 = vmatmul.mubr.bf16.gmra.mrb[12].mxu1 %v10095_v51  ;;  %v3612_v54 = vld [vmem:[#allocation2 + $0x29] sm:$0xff]  ;;  %v8711_v4 = vld [vmem:[%s11148_s4 + $0x158] sm:$0xff]   ;;  %v3611_v59 = vld [vmem:[#allocation2 + $0x21] sm:$0xff] }
 0x19e   : > { %v3312_v58 = vrot.slane %v3304_v45, %v9059_v27  ;;  %7965 = vmatprep.mubr.msk.bf16.mxu1 %vm8874_vm0, %v9889_v32  ;;  %v4379_v57 = vpack.c.bf16 %v4363_v29, %v4362_v7  ;;  %v4365_v45 = vld [vmem:[#allocation2 + $0x3b] sm:$0xff]  ;;  %v3617_v43 = vld [vmem:[#allocation2 + $0x51] sm:$0xff]  ;;  %v3624_v35 = vld [vmem:[#allocation2 + $0x89] sm:$0xff] }
 0x19f   : > { %v2954_v5 = vrot.slane %v2940_v14, %v9059_v27  ;;  %v2955_v15 = vcombine.high %v2947_v36, %v2947_v36  ;;  %v3319_v41 = vrot.slane %v3305_v44, %v9059_v27  ;;  %v3321_v6 = vcombine.low %v2939_v25, %v2947_v36  ;;  %v8718_v23 = vld [vmem:[%s11148_s4 + $0xa0] sm:$0xff]   ;;  %v4364_v14 = vld [vmem:[#allocation2 + $0x33] sm:$0xff]  ;;  %v4371_v21 = vld [vmem:[#allocation2 + $0x6b] sm:$0xff] }
 0x1a0   : > { %v3627_v25 = vpack.c.bf16 %v3612_v54, %v3611_v59  ;;  %v8712_v36 = vld [vmem:[%s11148_s4 + $0x160] sm:$0xff]   ;;  %v4380_v44 = vpack.c.bf16 %v4365_v45, %v4364_v14  ;;  %v4376_v29 = vld [vmem:[#allocation2 + $0x93] sm:$0xff]  ;;  %v8725_v14 = vld [vmem:[%s11148_s4 + $0x188] sm:$0xff]  }
 0x1a1   : > { %v2956_v56 = vcombine.high %v2954_v5, %v2954_v5  ;;  %v3320_v20 = vcombine.low %v3312_v58, %v3319_v41  ;;  %v3322_v19 = vcombine.low %v2955_v15, %v2954_v5  ;;  %v3329_v60 = vrot.slane %v3321_v6, %v9059_v27  ;;  %v8716_v58 = vld [vmem:[%s11148_s4 + $0x168] sm:$0xff]   ;;  %v3613_v5 = vld [vmem:[#allocation2 + $0x31] sm:$0xff]  ;;  %v10259_v54 = vld [vmem:[%s11148_s4 + $0x200] sm:$0xff]  }
 0x1a2   : > { %v4366_v15 = vld [vmem:[#allocation2 + $0x43] sm:$0xff]  ;;  %v4367_v41 = vld [vmem:[#allocation2 + $0x4b] sm:$0xff]  ;;  %v4611_v59 = vld [vmem:[#allocation2 + $0x14] sm:$0xff] }
 0x1a3   : > { %v3336_v33 = vrot.slane %v3322_v19, %v9059_v27  ;;  %v3338_v30 = vcombine.low %v2956_v56, %v2963_v8  ;;  %3389 = vst [vmem:[#allocation2 + $0xa0] sm:$0xff] %v3320_v20  ;;  %7810 = vmatmul.mubr.bf16.gmra.mrb[40].mxu0 %v3415_v22  ;;  %v3614_v8 = vld [vmem:[#allocation2 + $0x39] sm:$0xff]  ;;  %v8721_v6 = vld [vmem:[%s11148_s4 + $0xb0] sm:$0xff]   ;;  %v4381_v56 = vpack.c.bf16 %v4367_v41, %v4366_v15  ;;  %v3615_v19 = vld [vmem:[#allocation2 + $0x41] sm:$0xff] }
 0x1a4   : > { %7813 = vmatprep.mubr.msk.bf16.mxu0 %vm8874_vm0, %v9889_v32  ;;  %v3628_v22 = vpack.c.bf16 %v3614_v8, %v3613_v5  ;;  %v8723_v20 = vld [vmem:[%s11148_s4 + $0xb8] sm:$0xff]   ;;  %v8724_v45 = vld [vmem:[%s11148_s4 + $0x180] sm:$0xff]   ;;  %v8726_v8 = vld [vmem:[%s11148_s4 + $0x190] sm:$0xff]  }
 0x1a5   : > { %v3337_v18 = vcombine.low %v3329_v60, %v3336_v33  ;;  %7308 = vst.sshfl [vmem:[#allocation2 + $0xb0] sm:$0x33 pattern:$0x76325410] %v3338_v30  ;;  %7966 = vmatmul.mubr.bf16.gmra.mrb[16].mxu1 %v10112_v16  ;;  %v3616_v60 = vld [vmem:[#allocation2 + $0x49] sm:$0xff]  ;;  %v4369_v33 = vld [vmem:[#allocation2 + $0x5b] sm:$0xff] }
 0x1a6   : > { %7969 = vmatprep.mubr.msk.bf16.mxu1 %vm8874_vm0, %v9889_v32  ;;  %v3629_v30 = vpack.c.bf16 %v3616_v60, %v3615_v19  ;;  %v10299_v5 = vld [vmem:[%s11148_s4 + $0x218] sm:$0xff]   ;;  %v10313_v41 = vld [vmem:[%s11148_s4 + $0x220] sm:$0xff]   ;;  %v4618_v19 = vld [vmem:[#allocation2 + $0x4c] sm:$0xff] }
 0x1a7   : > { %3390 = vst [vmem:[#allocation2 + $0xa8] sm:$0xff] %v3337_v18  ;;  %v4368_v18 = vld [vmem:[#allocation2 + $0x53] sm:$0xff]  ;;  %v4616_v15 = vld [vmem:[#allocation2 + $0x3c] sm:$0xff] }
 0x1a8   : > { %v4382_v10 = vpack.c.bf16 %v4369_v33, %v4368_v18  ;;  %v10343_v60 = vld [vmem:[%s11148_s4 + $0x230] sm:$0xff]   ;;  %v4620_v18 = vld [vmem:[#allocation2 + $0x5c] sm:$0xff] }
 0x1aa   : > { %v4126_v31 = vld [vmem:[#allocation2 + $0x9a] sm:$0xff] }
 0x1ab   : > { %7814 = vmatmul.mubr.bf16.gmra.mrb[44].mxu0 %v3416_v62  ;;  %v10142_v62 = vpack.c.bf16 %v4124_v39, %v4123_v63  ;;  %v3630_v63 = vpack.c.bf16 %v3618_v28, %v3617_v43  ;;  %v4370_v39 = vld [vmem:[#allocation2 + $0x63] sm:$0xff]  ;;  %v4622_v43 = vld [vmem:[#allocation2 + $0x6c] sm:$0xff] }
 0x1ac   : > { %7817 = vmatprep.mubr.msk.bf16.mxu0 %vm8874_vm0, %v9889_v32 }
 0x1ad   : > { %7970 = vmatmul.mubr.bf16.gmra.mrb[20].mxu1 %v10122_v61 }
 0x1ae   : > { %7973 = vmatprep.mubr.msk.bf16.mxu1 %vm8874_vm0, %v9889_v32 }
 0x1b3   : > { %7818 = vmatmul.mubr.bf16.gmra.mrb[48].mxu0 %v3417_v50  ;;  %v4135_v50 = vpack.c.bf16 %v4126_v31, %v4125_v37  ;;  %v4383_v37 = vpack.c.bf16 %v4371_v21, %v4370_v39  ;;  %v3620_v31 = vld [vmem:[#allocation2 + $0x69] sm:$0xff]  ;;  %v4624_v39 = vld [vmem:[#allocation2 + $0x7c] sm:$0xff] }
 0x1b4   : > { %7821 = vmatprep.mubr.msk.bf16.mxu0 %vm8874_vm0, %v9889_v32  ;;  %v4621_v21 = vld [vmem:[#allocation2 + $0x64] sm:$0xff] }
 0x1b5   : > { %7974 = vmatmul.mubr.bf16.gmra.mrb[24].mxu1 %v10132_v12 }
 0x1b6   : > { %7977 = vmatprep.mubr.msk.bf16.mxu1 %vm8874_vm0, %v9889_v32 }
 0x1bb   : > { %7822 = vmatmul.mubr.bf16.gmra.mrb[52].mxu0 %v3418_v2  ;;  %v4361_v2 = vld [vmem:[#allocation2 + $0x1b] sm:$0xff] }
 0x1bc   : > { %7825 = vmatprep.mubr.msk.bf16.mxu0 %vm8874_vm0, %v9889_v32  ;;  %v4378_v17 = vpack.c.bf16 %v4361_v2, %v4360_v46  ;;  %v3622_v46 = vld [vmem:[#allocation2 + $0x79] sm:$0xff] }
 0x1bd   : > { %7978 = vmatmul.mubr.bf16.gmra.mrb[28].mxu1 %v10142_v62 }
 0x1be   : > { %7981 = vmatprep.mubr.msk.bf16.mxu1 %vm8874_vm0, %v9889_v32 }
 0x1c3   : > { %7826 = vmatmul.mubr.bf16.gmra.mrb[56].mxu0 %v3419_v38  ;;  %v8714_v38 = vld [vmem:[%s11148_s4 + $0x88] sm:$0xff]  }
 0x1c4   : > { %7845 = vmatprep.mubr.msk.bf16.mxu0 %vm8874_vm0, %v9889_v32 }
 0x1c5   : > { %7982 = vmatmul.mubr.bf16.gmra.mrb[32].mxu1 %v4135_v50  ;;  %v3619_v50 = vld [vmem:[#allocation2 + $0x61] sm:$0xff] }
 0x1c6   : > { %8001 = vmatprep.mubr.msk.bf16.mxu1 %vm8874_vm0, %v9889_v32  ;;  %v3631_v2 = vpack.c.bf16 %v3620_v31, %v3619_v50  ;;  %v4626_v31 = vld [vmem:[#allocation2 + $0x8c] sm:$0xff] }
 0x1cb   : > { %7846 = vmatmul.mubr.bf16.vlgmr.msra.gmra.mrb[24].mxu0 %v3625_v0  ;;  %v3621_v0 = vld [vmem:[#allocation2 + $0x71] sm:$0xff] }
 0x1cc   : > { %7849 = vmatprep.mubr.msk.bf16.mxu0 %vm8874_vm0, %v9889_v32  ;;  %7882 = vmatpush3.bf16.msra.mxu0 %v8713_v1  ;;  %v4384_v1 = vpack.c.bf16 %v4373_v13, %v4372_v55  ;;  %v4628_v55 = vld [vmem:[#allocation2 + $0x9c] sm:$0xff] }
 0x1cd   : > { %8002 = vmatmul.mubr.bf16.vlgmr.msra.gmra.mrb[0].mxu1 %v4378_v17  ;;  %7883 = vmatprep.subr.bf16.mxu0 %v9889_v32  ;;  %v4375_v17 = vld [vmem:[#allocation2 + $0x8b] sm:$0xff] }
 0x1ce   : > { %8038 = vmatpush3.bf16.msra.mxu1 %v8708_v49  ;;  %8005 = vmatprep.mubr.msk.bf16.mxu1 %vm8874_vm0, %v9889_v32  ;;  %v4374_v49 = vld [vmem:[#allocation2 + $0x83] sm:$0xff] }
 0x1cf   : > { %8039 = vmatprep.subr.bf16.mxu1 %v9889_v32  ;;  %v4385_v9 = vpack.c.bf16 %v4375_v17, %v4374_v49  ;;  %v8741_v49 = vld [vmem:[%s11148_s4 + $0x1c8] sm:$0xff]   ;;  %v5366_v17 = vld [vmem:[#allocation2 + $0x36] sm:$0xff] }
 0x1d0   : > { %7884 = vmatpush3.bf16.msra.mxu0 %v8714_v38  ;;  %v3632_v38 = vpack.c.bf16 %v3622_v46, %v3621_v0  ;;  %v8740_v0 = vld [vmem:[%s11148_s4 + $0x1c0] sm:$0xff]   ;;  %v10418_v46 = vld [vmem:[#allocation2 + $0xb4] sm:$0xff] }
 0x1d1   : > { %7885 = vmatprep.subr.bf16.mxu0 %v9889_v32 }
 0x1d2   : > { %8040 = vmatpush3.bf16.msra.mxu1 %v8709_v3  ;;  %v3623_v3 = vld [vmem:[#allocation2 + $0x81] sm:$0xff] }
 0x1d3   : > { %7850 = vmatmul.mubr.bf16.gmra.mrb[28].mxu0 %v3626_v48  ;;  %8041 = vmatprep.subr.bf16.mxu1 %v9889_v32  ;;  %v3633_v48 = vpack.c.bf16 %v3624_v35, %v3623_v3  ;;  %v5369_v3 = vld [vmem:[#allocation2 + $0x4e] sm:$0xff]  ;;  %v8743_v35 = vld [vmem:[%s11148_s4 + $0x1d8] sm:$0xff]  }
 0x1d4   : > { %7853 = vmatprep.mubr.msk.bf16.mxu0 %vm8874_vm0, %v9889_v32  ;;  %7886 = vmatpush3.bf16.msra.mxu0 %v8715_v11  ;;  %v4377_v11 = vld [vmem:[#allocation2 + $0x9b] sm:$0xff] }
 0x1d5   : > { %8006 = vmatmul.mubr.bf16.gmra.mrb[4].mxu1 %v4379_v57  ;;  %7887 = vmatprep.subr.bf16.mxu0 %v9889_v32  ;;  %v4386_v7 = vpack.c.bf16 %v4377_v11, %v4376_v29  ;;  %v3859_v57 = vld [vmem:[#allocation2 + $0xa] sm:$0xff]  ;;  %v8744_v11 = vld [vmem:[%s11148_s4 + $0x1e0] sm:$0xff]  }
 0x1d6   : > { %8009 = vmatprep.mubr.msk.bf16.mxu1 %vm8874_vm0, %v9889_v32  ;;  %8042 = vmatpush3.bf16.msra.mxu1 %v8710_v47  ;;  %v3858_v47 = vld [vmem:[#allocation2 + $0x2] sm:$0xff] }
 0x1d7   : > { %8043 = vmatprep.subr.bf16.mxu1 %v9889_v32 }
 0x1d8   : > { %7888 = vmatpush3.bf16.msra.mxu0 %v8717_v52  ;;  %v4612_v52 = vld [vmem:[#allocation2 + $0x1c] sm:$0xff] }
 0x1d9   : > { %7889 = vmatprep.subr.bf16.mxu0 %v9889_v32 }
 0x1da   : > { %8044 = vmatpush3.bf16.msra.mxu1 %v8711_v4  ;;  %v3876_v4 = vpack.c.bf16 %v3859_v57, %v3858_v47  ;;  %v5370_v47 = vld [vmem:[#allocation2 + $0x56] sm:$0xff] }
 0x1db   : > { %7854 = vmatmul.mubr.bf16.gmra.mrb[32].mxu0 %v3627_v25  ;;  %8045 = vmatprep.subr.bf16.mxu1 %v9889_v32  ;;  %v10270_v25 = vld [vmem:[%s11148_s4 + $0x208] sm:$0xff]  }
 0x1dc   : > { %7857 = vmatprep.mubr.msk.bf16.mxu0 %vm8874_vm0, %v9889_v32  ;;  %7890 = vmatpush3.bf16.msra.mxu0 %v8718_v23  ;;  %v4629_v23 = vpack.c.bf16 %v4612_v52, %v4611_v59  ;;  %v8746_v52 = vld [vmem:[%s11148_s4 + $0x1f0] sm:$0xff]   ;;  %v8747_v59 = vld [vmem:[%s11148_s4 + $0x1f8] sm:$0xff]  }
 0x1dd   : > { %8010 = vmatmul.mubr.bf16.gmra.mrb[8].mxu1 %v4380_v44  ;;  %7891 = vmatprep.subr.bf16.mxu0 %v9889_v32  ;;  %v10283_v44 = vld [vmem:[%s11148_s4 + $0x210] sm:$0xff]  }
 0x1de   : > { %8013 = vmatprep.mubr.msk.bf16.mxu1 %vm8874_vm0, %v9889_v32  ;;  %8046 = vmatpush3.bf16.msra.mxu1 %v8712_v36  ;;  %v4614_v36 = vld [vmem:[#allocation2 + $0x2c] sm:$0xff] }
 0x1df   : > { %8047 = vmatprep.subr.bf16.mxu1 %v9889_v32 }
 0x1e0   : > { %7892 = vmatpush3.bf16.msra.mxu0 %v8720_v53  ;;  %v4613_v53 = vld [vmem:[#allocation2 + $0x24] sm:$0xff] }
 0x1e1   : > { %7893 = vmatprep.subr.bf16.mxu0 %v9889_v32 }
 0x1e2   : > { %8048 = vmatpush3.bf16.msra.mxu1 %v8716_v58  ;;  %v10290_v58 = vpack.c.bf16 %v4614_v36, %v4613_v53  ;;  %v5375_v36 = vld [vmem:[#allocation2 + $0x7e] sm:$0xff] }
 0x1e3   : > { %7858 = vmatmul.mubr.bf16.gmra.mrb[36].mxu0 %v3628_v22  ;;  %8049 = vmatprep.subr.bf16.mxu1 %v9889_v32  ;;  %v8728_v22 = vld [vmem:[%s11148_s4 + $0x1a0] sm:$0xff]  }
 0x1e4   : > { %7861 = vmatprep.mubr.msk.bf16.mxu0 %vm8874_vm0, %v9889_v32  ;;  %7894 = vmatpush3.bf16.msra.mxu0 %v8721_v6  ;;  %v4615_v6 = vld [vmem:[#allocation2 + $0x34] sm:$0xff] }
 0x1e5   : > { %8014 = vmatmul.mubr.bf16.gmra.mrb[12].mxu1 %v4381_v56  ;;  %7895 = vmatprep.subr.bf16.mxu0 %v9889_v32  ;;  %v10329_v56 = vld [vmem:[%s11148_s4 + $0x228] sm:$0xff]  }
 0x1e6   : > { %8017 = vmatprep.mubr.msk.bf16.mxu1 %vm8874_vm0, %v9889_v32  ;;  %8050 = vmatpush3.bf16.msra.mxu1 %v8719_v40  ;;  %v10320_v40 = vpack.c.bf16 %v4616_v15, %v4615_v6  ;;  %v5114_v15 = vld [vmem:[#allocation2 + $0x2d] sm:$0xff]  ;;  %v5113_v6 = vld [vmem:[#allocation2 + $0x25] sm:$0xff] }
 0x1e7   : > { %8051 = vmatprep.subr.bf16.mxu1 %v9889_v32 }
 0x1e8   : > { %7896 = vmatpush3.bf16.msra.mxu0 %v8723_v20  ;;  %v4617_v20 = vld [vmem:[#allocation2 + $0x44] sm:$0xff] }
 0x1e9   : > { %8193 = vmatprep.subr.bf16.mxu0 %v9889_v32  ;;  %v10350_v33 = vpack.c.bf16 %v4618_v19, %v4617_v20  ;;  %v5118_v19 = vld [vmem:[#allocation2 + $0x4d] sm:$0xff] }
 0x1ea   : > { %8052 = vmatpush3.bf16.msra.mxu1 %v8722_v34  ;;  %v8735_v34 = vld [vmem:[%s11148_s4 + $0x1b0] sm:$0xff]  }
 0x1eb   : > { %7862 = vmatmul.mubr.bf16.gmra.mrb[40].mxu0 %v3629_v30  ;;  %8089 = vmatprep.subr.bf16.mxu1 %v9889_v32  ;;  %v10359_v30 = vld [vmem:[%s11148_s4 + $0x238] sm:$0xff]  }
 0x1ec   : > { %7865 = vmatprep.mubr.msk.bf16.mxu0 %vm8874_vm0, %v9889_v32 }
 0x1ed   : > { %8018 = vmatmul.mubr.bf16.gmra.mrb[16].mxu1 %v4382_v10  ;;  %v4619_v10 = vld [vmem:[#allocation2 + $0x54] sm:$0xff] }
 0x1ee   : > { %8021 = vmatprep.mubr.msk.bf16.mxu1 %vm8874_vm0, %v9889_v32  ;;  %v10372_v28 = vpack.c.bf16 %v4620_v18, %v4619_v10  ;;  %v5124_v18 = vld [vmem:[#allocation2 + $0x7d] sm:$0xff] }
 0x1f3   : > { %7866 = vmatmul.mubr.bf16.gmra.mrb[44].mxu0 %v3630_v63  ;;  %v10381_v63 = vpack.c.bf16 %v4622_v43, %v4621_v21  ;;  %v5128_v21 = vld [vmem:[#allocation2 + $0x9d] sm:$0xff] }
 0x1f4   : > { %7869 = vmatprep.mubr.msk.bf16.mxu0 %vm8874_vm0, %v9889_v32 }
 0x1f5   : > { %8022 = vmatmul.mubr.bf16.gmra.mrb[20].mxu1 %v4383_v37 }
 0x1f6   : > { %8025 = vmatprep.mubr.msk.bf16.mxu1 %vm8874_vm0, %v9889_v32 }
 0x1fb   : > { %7870 = vmatmul.mubr.bf16.gmra.mrb[48].mxu0 %v3631_v2  ;;  %v5364_v2 = vld [vmem:[#allocation2 + $0x26] sm:$0xff] }
 0x1fc   : > { %7873 = vmatprep.mubr.msk.bf16.mxu0 %vm8874_vm0, %v9889_v32 }
 0x1fd   : > { %8026 = vmatmul.mubr.bf16.gmra.mrb[24].mxu1 %v4384_v1 }
 0x1fe   : > { %8029 = vmatprep.mubr.msk.bf16.mxu1 %vm8874_vm0, %v9889_v32 }
 0x203   : > { %7874 = vmatmul.mubr.bf16.gmra.mrb[52].mxu0 %v3632_v38 }
 0x204   : > { %7877 = vmatprep.mubr.msk.bf16.mxu0 %vm8874_vm0, %v9889_v32 }
 0x205   : > { %8030 = vmatmul.mubr.bf16.gmra.mrb[28].mxu1 %v4385_v9  ;;  %v5368_v9 = vld [vmem:[#allocation2 + $0x46] sm:$0xff] }
 0x206   : > { %8033 = vmatprep.mubr.msk.bf16.mxu1 %vm8874_vm0, %v9889_v32  ;;  %v5384_v29 = vpack.c.bf16 %v5369_v3, %v5368_v9  ;;  %v5379_v9 = vld [vmem:[#allocation2 + $0x9e] sm:$0xff] }
 0x20b   : > { %7878 = vmatmul.mubr.bf16.gmra.mrb[56].mxu0 %v3633_v48  ;;  %v5371_v48 = vld [vmem:[#allocation2 + $0x5e] sm:$0xff] }
 0x20c   : > { %7897 = vmatprep.mubr.msk.bf16.mxu0 %vm8874_vm0, %v9889_v32  ;;  %v5385_v57 = vpack.c.bf16 %v5371_v48, %v5370_v47  ;;  %v5381_v47 = vld [vmem:[#allocation2 + $0xae] sm:$0xff] }
 0x20d   : > { %8034 = vmatmul.mubr.bf16.gmra.mrb[32].mxu1 %v4386_v7  ;;  %v8745_v7 = vld [vmem:[%s11148_s4 + $0x1e8] sm:$0xff]  }
 0x20e   : > { %8053 = vmatprep.mubr.msk.bf16.mxu1 %vm8874_vm0, %v9889_v32 }
 0x213   : > { %7898 = vmatmul.mubr.bf16.vlgmr.msra.gmra.mrb[24].mxu0 %v3876_v4  ;;  %v5373_v4 = vld [vmem:[#allocation2 + $0x6e] sm:$0xff] }
 0x214   : > { %7901 = vmatprep.mubr.msk.bf16.mxu0 %vm8874_vm0, %v9889_v32  ;;  %8194 = vmatpush3.bf16.msra.mxu0 %v10259_v54 }
 0x215   : > { %8054 = vmatmul.mubr.bf16.vlgmr.msra.gmra.mrb[0].mxu1 %v4629_v23  ;;  %8195 = vmatprep.subr.bf16.mxu0 %v9889_v32 }
 0x216   : > { %8090 = vmatpush3.bf16.msra.mxu1 %v8724_v45  ;;  %8057 = vmatprep.mubr.msk.bf16.mxu1 %vm8874_vm0, %v9889_v32  ;;  %v5372_v45 = vld [vmem:[#allocation2 + $0x66] sm:$0xff] }
 0x217   : > { %8091 = vmatprep.subr.bf16.mxu1 %v9889_v32  ;;  %v5386_v23 = vpack.c.bf16 %v5373_v4, %v5372_v45 }
 0x218   : > { %8196 = vmatpush3.bf16.msra.mxu0 %v10270_v25 }
 0x219   : > { %8197 = vmatprep.subr.bf16.mxu0 %v9889_v32 }
 0x21a   : > { %8092 = vmatpush3.bf16.msra.mxu1 %v8725_v14  ;;  %v5374_v14 = vld [vmem:[#allocation2 + $0x76] sm:$0xff] }
 0x21b   : > { %7902 = vmatmul.mubr.bf16.gmra.mrb[28].mxu0 %v9844_v26  ;;  %8093 = vmatprep.subr.bf16.mxu1 %v9889_v32  ;;  %v8727_v26 = vld [vmem:[%s11148_s4 + $0x198] sm:$0xff]   ;;  %v5387_v53 = vpack.c.bf16 %v5375_v36, %v5374_v14  ;;  %v8752_v14 = vld [vmem:[%s11151_s7 + $0x20] sm:$0xff]   ;;  %v8753_v36 = vld [vmem:[%s11151_s7 + $0x28] sm:$0xff]  }
 0x21c   : > { %7905 = vmatprep.mubr.msk.bf16.mxu0 %vm8874_vm0, %v9889_v32  ;;  %8198 = vmatpush3.bf16.msra.mxu0 %v10283_v44 }
 0x21d   : > { %8058 = vmatmul.mubr.bf16.gmra.mrb[4].mxu1 %v10290_v58  ;;  %8199 = vmatprep.subr.bf16.mxu0 %v9889_v32 }
 0x21e   : > { %8061 = vmatprep.mubr.msk.bf16.mxu1 %vm8874_vm0, %v9889_v32  ;;  %8094 = vmatpush3.bf16.msra.mxu1 %v8726_v8  ;;  %v4878_v8 = vld [vmem:[#allocation2 + $0xa4] sm:$0xff] }
 0x21f   : > { %8095 = vmatprep.subr.bf16.mxu1 %v9889_v32 }
 0x220   : > { %8200 = vmatpush3.bf16.msra.mxu0 %v10299_v5 }
 0x221   : > { %8201 = vmatprep.subr.bf16.mxu0 %v9889_v32 }
 0x222   : > { %8096 = vmatpush3.bf16.msra.mxu1 %v8727_v26 }
 0x223   : > { %7906 = vmatmul.mubr.bf16.gmra.mrb[32].mxu0 %v10001_v24  ;;  %8097 = vmatprep.subr.bf16.mxu1 %v9889_v32  ;;  %v8731_v24 = vld [vmem:[%s11148_s4 + $0x1a8] sm:$0xff]  }
 0x224   : > { %7909 = vmatprep.mubr.msk.bf16.mxu0 %vm8874_vm0, %v9889_v32  ;;  %8202 = vmatpush3.bf16.msra.mxu0 %v10313_v41 }
 0x225   : > { %8062 = vmatmul.mubr.bf16.gmra.mrb[8].mxu1 %v10320_v40  ;;  %8203 = vmatprep.subr.bf16.mxu0 %v9889_v32 }
 0x226   : > { %8065 = vmatprep.mubr.msk.bf16.mxu1 %vm8874_vm0, %v9889_v32  ;;  %8098 = vmatpush3.bf16.msra.mxu1 %v8728_v22  ;;  %v5131_v22 = vpack.c.bf16 %v5114_v15, %v5113_v6  ;;  %v8755_v6 = vld [vmem:[%s11151_s7 + $0x38] sm:$0xff]  }
 0x227   : > { %8099 = vmatprep.subr.bf16.mxu1 %v9889_v32 }
 0x228   : > { %8204 = vmatpush3.bf16.msra.mxu0 %v10329_v56 }
 0x229   : > { %8205 = vmatprep.subr.bf16.mxu0 %v9889_v32 }
 0x22a   : > { %8100 = vmatpush3.bf16.msra.mxu1 %v8731_v24  ;;  %v5115_v24 = vld [vmem:[#allocation2 + $0x35] sm:$0xff] }
 0x22b   : > { %7910 = vmatmul.mubr.bf16.gmra.mrb[36].mxu0 %v10059_v42  ;;  %8101 = vmatprep.subr.bf16.mxu1 %v9889_v32  ;;  %v8738_v42 = vld [vmem:[%s11148_s4 + $0x1b8] sm:$0xff]  }
 0x22c   : > { %7913 = vmatprep.mubr.msk.bf16.mxu0 %vm8874_vm0, %v9889_v32  ;;  %8206 = vmatpush3.bf16.msra.mxu0 %v10343_v60 }
 0x22d   : > { %8066 = vmatmul.mubr.bf16.gmra.mrb[12].mxu1 %v10350_v33  ;;  %8207 = vmatprep.subr.bf16.mxu0 %v9889_v32 }
 0x22e   : > { %8069 = vmatprep.mubr.msk.bf16.mxu1 %vm8874_vm0, %v9889_v32  ;;  %8102 = vmatpush3.bf16.msra.mxu1 %v8735_v34 }
 0x22f   : > { %8103 = vmatprep.subr.bf16.mxu1 %v9889_v32 }
 0x230   : > { %8208 = vmatpush3.bf16.msra.mxu0 %v10359_v30 }
 0x231   : > { %8245 = vmatprep.subr.bf16.mxu0 %v9889_v32 }
 0x232   : > { %8104 = vmatpush3.bf16.msra.mxu1 %v8738_v42  ;;  %v5121_v42 = vld [vmem:[#allocation2 + $0x65] sm:$0xff] }
 0x233   : > { %7914 = vmatmul.mubr.bf16.gmra.mrb[40].mxu0 %v10095_v51  ;;  %8141 = vmatprep.subr.bf16.mxu1 %v9889_v32  ;;  %v4623_v51 = vld [vmem:[#allocation2 + $0x74] sm:$0xff] }
 0x234   : > { %7917 = vmatprep.mubr.msk.bf16.mxu0 %vm8874_vm0, %v9889_v32  ;;  %v10389_v37 = vpack.c.bf16 %v4624_v39, %v4623_v51  ;;  %v8749_v39 = vld [vmem:[%s11151_s7 + $0x8] sm:$0xff]  }
 0x235   : > { %8070 = vmatmul.mubr.bf16.gmra.mrb[16].mxu1 %v10372_v28 }
 0x236   : > { %8073 = vmatprep.mubr.msk.bf16.mxu1 %vm8874_vm0, %v9889_v32 }
 0x23b   : > { %7918 = vmatmul.mubr.bf16.gmra.mrb[44].mxu0 %v10112_v16  ;;  %v4625_v16 = vld [vmem:[#allocation2 + $0x84] sm:$0xff] }
 0x23c   : > { %7921 = vmatprep.mubr.msk.bf16.mxu0 %vm8874_vm0, %v9889_v32  ;;  %v10397_v50 = vpack.c.bf16 %v4626_v31, %v4625_v16  ;;  %v5129_v16 = vld [vmem:[#allocation2 + $0xa5] sm:$0xff]  ;;  %v5130_v31 = vld [vmem:[#allocation2 + $0xad] sm:$0xff] }
 0x23d   : > { %8074 = vmatmul.mubr.bf16.gmra.mrb[20].mxu1 %v10381_v63 }
 0x23e   : > { %8077 = vmatprep.mubr.msk.bf16.mxu1 %vm8874_vm0, %v9889_v32 }
 0x243   : > { %7922 = vmatmul.mubr.bf16.gmra.mrb[48].mxu0 %v10122_v61  ;;  %v4627_v61 = vld [vmem:[#allocation2 + $0x94] sm:$0xff] }
 0x244   : > { %7925 = vmatprep.mubr.msk.bf16.mxu0 %vm8874_vm0, %v9889_v32  ;;  %v10405_v13 = vpack.c.bf16 %v4628_v55, %v4627_v61  ;;  %v8751_v61 = vld [vmem:[%s11151_s7 + $0x18] sm:$0xff]  }
 0x245   : > { %8078 = vmatmul.mubr.bf16.gmra.mrb[24].mxu1 %v10389_v37 }
 0x246   : > { %8081 = vmatprep.mubr.msk.bf16.mxu1 %vm8874_vm0, %v9889_v32 }
 0x24b   : > { %7926 = vmatmul.mubr.bf16.gmra.mrb[52].mxu0 %v10132_v12  ;;  %v5365_v12 = vld [vmem:[#allocation2 + $0x2e] sm:$0xff] }
 0x24c   : > { %7929 = vmatprep.mubr.msk.bf16.mxu0 %vm8874_vm0, %v9889_v32  ;;  %v5382_v1 = vpack.c.bf16 %v5365_v12, %v5364_v2  ;;  %v5376_v2 = vld [vmem:[#allocation2 + $0x86] sm:$0xff] }
 0x24d   : > { %8082 = vmatmul.mubr.bf16.gmra.mrb[28].mxu1 %v10397_v50 }
 0x24e   : > { %8085 = vmatprep.mubr.msk.bf16.mxu1 %vm8874_vm0, %v9889_v32 }
 0x253   : > { %7930 = vmatmul.mubr.bf16.gmra.mrb[56].mxu0 %v10142_v62  ;;  %v5367_v62 = vld [vmem:[#allocation2 + $0x3e] sm:$0xff] }
 0x254   : > { %8209 = vmatprep.mubr.msk.bf16.mxu0 %vm8874_vm0, %v9889_v32  ;;  %v5383_v38 = vpack.c.bf16 %v5367_v62, %v5366_v17 }
 0x255   : > { %8086 = vmatmul.mubr.bf16.gmra.mrb[32].mxu1 %v10405_v13 }
 0x256   : > { %8105 = vmatprep.mubr.msk.bf16.mxu1 %vm8874_vm0, %v9889_v32 }
 0x25b   : > { %8210 = vmatmul.mubr.bf16.vlgmr.msra.gmra.mrb[60].mxu0 %v5382_v1  ;;  %v5377_v1 = vld [vmem:[#allocation2 + $0x8e] sm:$0xff] }
 0x25c   : > { %8213 = vmatprep.mubr.msk.bf16.mxu0 %vm8874_vm0, %v9889_v32  ;;  %v8742_v32 = vld [vmem:[%s11148_s4 + $0x1d0] sm:$0xff]   ;;  %v5388_v62 = vpack.c.bf16 %v5377_v1, %v5376_v2 }
 0x25d   : > { %8106 = vmatmul.mubr.bf16.vlgmr.msra.gmra.mrb[0].mxu1 %v10290_v58  ;;  %v4879_v58 = vld [vmem:[#allocation2 + $0xac] sm:$0xff] }
 0x25e   : > { %8142 = vmatpush3.bf16.msra.mxu1 %v8740_v0  ;;  %8109 = vmatprep.mubr.msk.bf16.mxu1 %vm8874_vm0, %v10418_v46  ;;  %v4888_v26 = vpack.c.bf16 %v4879_v58, %v4878_v8  ;;  %v8754_v58 = vld [vmem:[%s11151_s7 + $0x30] sm:$0xff]  }
 0x25f   : > { %8143 = vmatprep.subr.bf16.mxu1 %v10418_v46 }
 0x262   : > { %8144 = vmatpush3.bf16.msra.mxu1 %v8741_v49 }
 0x263   : > { %8214 = vmatmul.mubr.bf16.gmra.mrb[64].mxu0 %v5383_v38  ;;  %8145 = vmatprep.subr.bf16.mxu1 %v10418_v46 }
 0x264   : > { %8217 = vmatprep.mubr.msk.bf16.mxu0 %vm8874_vm0, %v10418_v46 }
 0x265   : > { %8110 = vmatmul.mubr.bf16.gmra.mrb[4].mxu1 %v10320_v40  ;;  %v5116_v40 = vld [vmem:[#allocation2 + $0x3d] sm:$0xff] }
 0x266   : > { %8113 = vmatprep.mubr.msk.bf16.mxu1 %vm8874_vm0, %v10418_v46  ;;  %8146 = vmatpush3.bf16.msra.mxu1 %v8742_v32  ;;  %v5132_v20 = vpack.c.bf16 %v5116_v40, %v5115_v24  ;;  %v5378_v32 = vld [vmem:[#allocation2 + $0x96] sm:$0xff] }
 0x267   : > { %8147 = vmatprep.subr.bf16.mxu1 %v10418_v46 }
 0x26a   : > { %8148 = vmatpush3.bf16.msra.mxu1 %v8743_v35  ;;  %v5389_v35 = vpack.c.bf16 %v5379_v9, %v5378_v32 }
 0x26b   : > { %8218 = vmatmul.mubr.bf16.gmra.mrb[68].mxu0 %v5384_v29  ;;  %8149 = vmatprep.subr.bf16.mxu1 %v10418_v46 }
 0x26c   : > { %8221 = vmatprep.mubr.msk.bf16.mxu0 %vm8874_vm0, %v10418_v46 }
 0x26d   : > { %8114 = vmatmul.mubr.bf16.gmra.mrb[8].mxu1 %v10350_v33  ;;  %v5119_v33 = vld [vmem:[#allocation2 + $0x55] sm:$0xff] }
 0x26e   : > { %8117 = vmatprep.mubr.msk.bf16.mxu1 %vm8874_vm0, %v10418_v46  ;;  %8150 = vmatpush3.bf16.msra.mxu1 %v8744_v11 }
 0x26f   : > { %8151 = vmatprep.subr.bf16.mxu1 %v10418_v46 }
 0x272   : > { %8152 = vmatpush3.bf16.msra.mxu1 %v8745_v7  ;;  %v5380_v7 = vld [vmem:[#allocation2 + $0xa6] sm:$0xff] }
 0x273   : > { %8222 = vmatmul.mubr.bf16.gmra.mrb[72].mxu0 %v5385_v57  ;;  %8153 = vmatprep.subr.bf16.mxu1 %v10418_v46 }
 0x274   : > { %8225 = vmatprep.mubr.msk.bf16.mxu0 %vm8874_vm0, %v10418_v46 }
 0x275   : > { %8118 = vmatmul.mubr.bf16.gmra.mrb[12].mxu1 %v10372_v28  ;;  %v5125_v28 = vld [vmem:[#allocation2 + $0x85] sm:$0xff] }
 0x276   : > { %8121 = vmatprep.mubr.msk.bf16.mxu1 %vm8874_vm0, %v10418_v46  ;;  %8154 = vmatpush3.bf16.msra.mxu1 %v8746_v52  ;;  %v5390_v52 = vpack.c.bf16 %v5381_v47, %v5380_v7 }
 0x277   : > { %8155 = vmatprep.subr.bf16.mxu1 %v10418_v46 }
 0x27a   : > { %8156 = vmatpush3.bf16.msra.mxu1 %v8747_v59 }
 0x27b   : > { %8226 = vmatmul.mubr.bf16.gmra.mrb[76].mxu0 %v5386_v23  ;;  %8297 = vmatprep.subr.bf16.mxu1 %v10418_v46 }
 0x27c   : > { %8229 = vmatprep.mubr.msk.bf16.mxu0 %vm8874_vm0, %v10418_v46 }
 0x27d   : > { %8122 = vmatmul.mubr.bf16.gmra.mrb[16].mxu1 %v10381_v63  ;;  %v8748_v63 = vld [vmem:[%s11151_s7] sm:$0xff]  }
 0x27e   : > { %8125 = vmatprep.mubr.msk.bf16.mxu1 %vm8874_vm0, %v10418_v46  ;;  %8246 = vmatpush3.bf16.msra.mxu0 %v8748_v63 }
 0x27f   : > { %8247 = vmatprep.subr.bf16.mxu0 %v10418_v46 }
 0x282   : > { %8248 = vmatpush3.bf16.msra.mxu0 %v8749_v39 }
 0x283   : > { %8230 = vmatmul.mubr.bf16.gmra.mrb[80].mxu0 %v5387_v53  ;;  %8249 = vmatprep.subr.bf16.mxu0 %v10418_v46 }
 0x284   : > { %8261 = vmatprep.mubr.msk.bf16.mxu0 %vm8874_vm0, %v10418_v46 }
 0x285   : > { %8126 = vmatmul.mubr.bf16.gmra.mrb[20].mxu1 %v10389_v37  ;;  %v8750_v37 = vld [vmem:[%s11151_s7 + $0x10] sm:$0xff]  }
 0x286   : > { %8129 = vmatprep.mubr.msk.bf16.mxu1 %vm8874_vm0, %v10418_v46  ;;  %8250 = vmatpush3.bf16.msra.mxu0 %v8750_v37 }
 0x287   : > { %8251 = vmatprep.subr.bf16.mxu0 %v10418_v46 }
 0x28a   : > { %8252 = vmatpush3.bf16.msra.mxu0 %v8751_v61 }
 0x28b   : > { %8253 = vmatprep.subr.bf16.mxu0 %v10418_v46 }
 0x28d   : > { %8130 = vmatmul.mubr.bf16.gmra.mrb[24].mxu1 %v10397_v50  ;;  %v5139_v50 = vpack.c.bf16 %v5130_v31, %v5129_v16 }
 0x28e   : > { %8133 = vmatprep.mubr.msk.bf16.mxu1 %vm8874_vm0, %v10418_v46  ;;  %8254 = vmatpush3.bf16.msra.mxu0 %v8752_v14 }
 0x28f   : > { %8255 = vmatprep.subr.bf16.mxu0 %v10418_v46 }
 0x292   : > { %8256 = vmatpush3.bf16.msra.mxu0 %v8753_v36 }
 0x293   : > { %8257 = vmatprep.subr.bf16.mxu0 %v10418_v46 }
 0x295   : > { %8134 = vmatmul.mubr.bf16.gmra.mrb[28].mxu1 %v10405_v13 }
 0x296   : > { %8137 = vmatprep.mubr.msk.bf16.mxu1 %vm8874_vm0, %v10418_v46  ;;  %8258 = vmatpush3.bf16.msra.mxu0 %v8754_v58 }
 0x297   : > { %8259 = vmatprep.subr.bf16.mxu0 %v10418_v46 }
 0x29a   : > { %8260 = vmatpush3.bf16.msra.mxu0 %v8755_v6 }
 0x29d   : > { %8138 = vmatmul.mubr.bf16.gmra.mrb[32].mxu1 %v4888_v26 }
 0x29e   : > { %8157 = vmatprep.mubr.msk.bf16.mxu1 %vm8874_vm0, %v10418_v46 }
 0x2a5   : > { %8158 = vmatmul.mubr.bf16.vlgmr.msra.gmra.mrb[0].mxu1 %v5131_v22 }
 0x2a6   : > { %8305 = vmatpush3.bf16.msra.mxu1 %v10259_v54  ;;  %8161 = vmatprep.mubr.msk.bf16.mxu1 %vm8874_vm0, %v10418_v46  ;;  %v5117_v54 = vld [vmem:[#allocation2 + $0x45] sm:$0xff] }
 0x2a7   : > { %8298 = vmatprep.subr.bf16.mxu1 %v10418_v46  ;;  %v5133_v34 = vpack.c.bf16 %v5118_v19, %v5117_v54 }
 0x2aa   : > { %8306 = vmatpush3.bf16.msra.mxu1 %v10270_v25  ;;  %v5120_v25 = vld [vmem:[#allocation2 + $0x5d] sm:$0xff] }
 0x2ab   : > { %8299 = vmatprep.subr.bf16.mxu1 %v10418_v46 }
 0x2ad   : > { %8162 = vmatmul.mubr.bf16.gmra.mrb[4].mxu1 %v5132_v20 }
 0x2ae   : > { %8165 = vmatprep.mubr.msk.bf16.mxu1 %vm8874_vm0, %v10418_v46  ;;  %8307 = vmatpush3.bf16.msra.mxu1 %v10283_v44  ;;  %v5134_v44 = vpack.c.bf16 %v5120_v25, %v5119_v33 }
 0x2af   : > { %8300 = vmatprep.subr.bf16.mxu1 %v10418_v46 }
 0x2b2   : > { %8308 = vmatpush3.bf16.msra.mxu1 %v10299_v5  ;;  %v5122_v5 = vld [vmem:[#allocation2 + $0x6d] sm:$0xff] }
 0x2b3   : > { %8301 = vmatprep.subr.bf16.mxu1 %v10418_v46 }
 0x2b5   : > { %8166 = vmatmul.mubr.bf16.gmra.mrb[8].mxu1 %v5133_v34 }
 0x2b6   : > { %8169 = vmatprep.mubr.msk.bf16.mxu1 %vm8874_vm0, %v10418_v46  ;;  %8309 = vmatpush3.bf16.msra.mxu1 %v10313_v41  ;;  %v5135_v41 = vpack.c.bf16 %v5122_v5, %v5121_v42 }
 0x2b7   : > { %8302 = vmatprep.subr.bf16.mxu1 %v10418_v46 }
 0x2ba   : > { %8310 = vmatpush3.bf16.msra.mxu1 %v10329_v56  ;;  %v5123_v56 = vld [vmem:[#allocation2 + $0x75] sm:$0xff] }
 0x2bb   : > { %8303 = vmatprep.subr.bf16.mxu1 %v10418_v46  ;;  %v5136_v10 = vpack.c.bf16 %v5124_v18, %v5123_v56 }
 0x2bd   : > { %8170 = vmatmul.mubr.bf16.gmra.mrb[12].mxu1 %v5134_v44 }
 0x2be   : > { %8173 = vmatprep.mubr.msk.bf16.mxu1 %vm8874_vm0, %v10418_v46  ;;  %8311 = vmatpush3.bf16.msra.mxu1 %v10343_v60  ;;  %v5126_v60 = vld [vmem:[#allocation2 + $0x8d] sm:$0xff] }
 0x2bf   : > { %8304 = vmatprep.subr.bf16.mxu1 %v10418_v46  ;;  %v5137_v43 = vpack.c.bf16 %v5126_v60, %v5125_v28 }
 0x2c2   : > { %8312 = vmatpush3.bf16.msra.mxu1 %v10359_v30  ;;  %v5127_v30 = vld [vmem:[#allocation2 + $0x95] sm:$0xff] }
 0x2c3   : > { %v5138_v51 = vpack.c.bf16 %v5128_v21, %v5127_v30 }
 0x2c5   : > { %8174 = vmatmul.mubr.bf16.gmra.mrb[16].mxu1 %v5135_v41 }
 0x2c6   : > { %8177 = vmatprep.mubr.msk.bf16.mxu1 %vm8874_vm0, %v10418_v46 }
 0x2cd   : > { %8178 = vmatmul.mubr.bf16.gmra.mrb[20].mxu1 %v5136_v10 }
 0x2ce   : > { %8181 = vmatprep.mubr.msk.bf16.mxu1 %vm8874_vm0, %v10418_v46 }
 0x2d5   : > { %8182 = vmatmul.mubr.bf16.gmra.mrb[24].mxu1 %v5137_v43 }
 0x2d6   : > { %8185 = vmatprep.mubr.msk.bf16.mxu1 %vm8874_vm0, %v10418_v46 }
 0x2dd   : > { %8186 = vmatmul.mubr.bf16.gmra.mrb[28].mxu1 %v5138_v51 }
 0x2de   : > { %8189 = vmatprep.mubr.msk.bf16.mxu1 %vm8874_vm0, %v10418_v46 }
 0x2e5   : > { %8190 = vmatmul.mubr.bf16.gmra.mrb[32].mxu1 %v5139_v50 }
 0x2e6   : > { %v10530_v55 = vpop.f32.mrb[24].mxu0  ;;  %8233 = vmatprep.mubr.msk.bf16.mxu1 %vm8874_vm0, %v10418_v46 }
 0x2e7   : > { %v7899_v13 = vpop.f32.mrb[25].mxu0 }
 0x2e8   : > { %v10534_v12 = vpop.f32.mrb[26].mxu0 }
 0x2e9   : > { %v7900_v0 = vpop.f32.mrb[27].mxu0 }
 0x2ed   : > { %8234 = vmatmul.mubr.bf16.vlgmr.msra.gmra.mrb[24].mxu1 %v5388_v62 }
 0x2ee   : > { %v10537_v49 = vpop.f32.mrb[28].mxu0  ;;  %8237 = vmatprep.mubr.msk.bf16.mxu1 %vm8874_vm0, %v10418_v46 }
 0x2ef   : > { %v7903_v17 = vpop.f32.mrb[29].mxu0 }
 0x2f0   : > { %v10541_v38 = vpop.f32.mrb[30].mxu0 }
 0x2f1   : > { %v7904_v3 = vpop.f32.mrb[31].mxu0 }
 0x2f5   : > { %8238 = vmatmul.mubr.bf16.gmra.mrb[28].mxu1 %v5389_v35 }
 0x2f6   : > { %v10543_v29 = vpop.f32.mrb[32].mxu0  ;;  %8241 = vmatprep.mubr.msk.bf16.mxu1 %vm8874_vm0, %v10418_v46 }
 0x2f7   : > { %v7907_v11 = vpop.f32.mrb[33].mxu0 }
 0x2f8   : > { %v10547_v48 = vpop.f32.mrb[34].mxu0 }
 0x2f9   : > { %v7908_v57 = vpop.f32.mrb[35].mxu0 }
 0x2fd   : > { %8242 = vmatmul.mubr.bf16.gmra.mrb[32].mxu1 %v5390_v52  ;;  %v10604_v52 = vld [vmem:[%s11149_s5] ss:$0 sm:$0xff] }
 0x2fe   : > { %v10549_v4 = vpop.f32.mrb[36].mxu0 }
 0x2ff   : > { %v7911_v59 = vpop.f32.mrb[37].mxu0 }
 0x300   : > { %v10551_v45 = vpop.f32.mrb[38].mxu0 }
 0x301   : > { %v7912_v23 = vpop.f32.mrb[39].mxu0 }
 0x306   : > { %v10560_v53 = vpop.f32.mrb[40].mxu0 }
 0x307   : > { %v7915_v8 = vpop.f32.mrb[41].mxu0 }
 0x308   : > { %v10565_v26 = vpop.f32.mrb[42].mxu0  ;;  %v10610_v8 = vld [vmem:[%s11150_s6] ss:$0 sm:$0xff] }
 0x309   : > { %v7916_v15 = vpop.f32.mrb[43].mxu0 }
 0x30e   : > { %v10572_v22 = vpop.f32.mrb[44].mxu0 }
 0x30f   : > { %v7919_v40 = vpop.f32.mrb[45].mxu0 }
 0x310   : > { %v10574_v24 = vpop.f32.mrb[46].mxu0 }
 0x311   : > { %v7920_v20 = vpop.f32.mrb[47].mxu0 }
 0x316   : > { %v10576_v54 = vpop.f32.mrb[48].mxu0 }
 0x317   : > { %v7923_v19 = vpop.f32.mrb[49].mxu0 }
 0x318   : > { %v10578_v34 = vpop.f32.mrb[50].mxu0 }
 0x319   : > { %v7924_v25 = vpop.f32.mrb[51].mxu0 }
 0x31e   : > { %v10580_v33 = vpop.f32.mrb[52].mxu0 }
 0x31f   : > { %v7927_v44 = vpop.f32.mrb[53].mxu0 }
 0x320   : > { %v10582_v5 = vpop.f32.mrb[54].mxu0 }
 0x321   : > { %v7928_v42 = vpop.f32.mrb[55].mxu0 }
 0x326   : > { %v10584_v41 = vpop.f32.mrb[56].mxu0 }
 0x327   : > { %v7931_v56 = vpop.f32.mrb[57].mxu0 }
 0x328   : > { %v10586_v18 = vpop.f32.mrb[58].mxu0 }
 0x329   : > { %v7932_v10 = vpop.f32.mrb[59].mxu0 }
 0x32e   : > { %v5490_v28 = vpop.f32.mrb[60].mxu0 }
 0x32f   : > { %v8211_v60 = vpop.f32.mrb[61].mxu0 }
 0x330   : > { %v5493_v43 = vpop.f32.mrb[62].mxu0 }
 0x331   : > { %v8212_v30 = vpop.f32.mrb[63].mxu0 }
 0x336   : > { %v5498_v21 = vpop.f32.mrb[64].mxu0 }
 0x337   : > { %v8215_v63 = vpop.f32.mrb[65].mxu0 }
 0x338   : > { %v5501_v51 = vpop.f32.mrb[66].mxu0 }
 0x339   : > { %v8216_v39 = vpop.f32.mrb[67].mxu0 }
 0x33e   : > { %v5506_v37 = vpop.f32.mrb[68].mxu0 }
 0x33f   : > { %v8219_v16 = vpop.f32.mrb[69].mxu0 }
 0x340   : > { %v5509_v31 = vpop.f32.mrb[70].mxu0 }
 0x341   : > { %v8220_v50 = vpop.f32.mrb[71].mxu0 }
 0x346   : > { %v10588_v61 = vpop.f32.mrb[72].mxu0 }
 0x347   : > { %v8223_v13 = vpop.f32.mrb[73].mxu0 }
 0x348   : > { %v10590_v2 = vpop.f32.mrb[74].mxu0 }
 0x349   : > { %v8224_v1 = vpop.f32.mrb[75].mxu0 }
 0x34e   : > { %v10592_v0 = vpop.f32.mrb[76].mxu0 }
 0x34f   : > { %v8227_v62 = vpop.f32.mrb[77].mxu0 }
 0x350   : > { %v10594_v17 = vpop.f32.mrb[78].mxu0 }
 0x351   : > { %v8228_v32 = vpop.f32.mrb[79].mxu0 }
 0x356   : > { %v10596_v9 = vpop.f32.mrb[80].mxu0 }
 0x357   : > { %v8231_v3 = vpop.f32.mrb[81].mxu0 }
 0x358   : > { %v10598_v35 = vpop.f32.mrb[82].mxu0 }
 0x359   : > { %v8232_v11 = vpop.f32.mrb[83].mxu0 }
 0x378   : > { %v5239_v7 = vpop.f32.mrb[0].mxu1 }
 0x379   : > { %v8313_v47 = vadd.f32 %v5239_v7, %v10530_v55  ;;  %v8159_v57 = vpop.f32.mrb[1].mxu1 }
 0x37a   : > { %v5242_v59 = vpop.f32.mrb[2].mxu1 }
 0x37b   : > { %v8314_v23 = vadd.f32 %v8313_v47, %v5490_v28  ;;  %v8315_v14 = vadd.f32 %v5242_v59, %v10534_v12  ;;  %v8160_v36 = vpop.f32.mrb[3].mxu1 }
 0x37d   : > { %v5640_v58 = vmul.f32 %v8314_v23, %v10604_v52  ;;  %v8316_v15 = vadd.f32 %v8315_v14, %v5493_v43 }
 0x37f   : > { %v5665_v55 = vadd.f32 %v10610_v8, %v5640_v58  ;;  %v5641_v6 = vmul.f32 %v8316_v15, %v10604_v52 }
 0x380   : > { %v5247_v40 = vpop.f32.mrb[4].mxu1 }
 0x381   : > { %v5666_v20 = vadd.f32 %v10610_v8, %v5641_v6  ;;  %v8317_v19 = vadd.f32 %v5247_v40, %v10537_v49  ;;  %v8163_v25 = vpop.f32.mrb[5].mxu1  ;;  %v5683_v44 = vmax.f32 %v5665_v55, 0.0 }
 0x382   : > { %v5250_v12 = vpop.f32.mrb[6].mxu1 }
 0x383   : > { %v5684_v42 = vmax.f32 %v5666_v20, 0.0  ;;  %v8318_v56 = vadd.f32 %v8317_v19, %v5498_v21  ;;  %v8319_v10 = vadd.f32 %v5250_v12, %v10541_v38  ;;  %v8164_v28 = vpop.f32.mrb[7].mxu1 }
 0x385   : > { %v5701_v60 = vpack.c.bf16 %v5684_v42, %v5683_v44  ;;  %v5642_v43 = vmul.f32 %v8318_v56, %v10604_v52  ;;  %v8320_v30 = vadd.f32 %v8319_v10, %v5501_v51 }
 0x387   : > { %v5643_v63 = vmul.f32 %v8320_v30, %v10604_v52  ;;  %8262 = vmatmul.mubr.bf16.vlgmr.msra.gmra.mrb[84].mxu0 %v5701_v60  ;;  %v5667_v39 = vadd.f32 %v10610_v8, %v5642_v43 }
 0x388   : > { %v5255_v16 = vpop.f32.mrb[8].mxu1  ;;  %8265 = vmatprep.mubr.msk.bf16.mxu0 %vm8874_vm0, %v10418_v46 }
 0x389   : > { %v8321_v49 = vadd.f32 %v5255_v16, %v10543_v29  ;;  %v8167_v50 = vpop.f32.mrb[9].mxu1  ;;  %v5668_v21 = vadd.f32 %v10610_v8, %v5643_v63  ;;  %v5685_v51 = vmax.f32 %v5667_v39, 0.0 }
 0x38a   : > { %v5258_v38 = vpop.f32.mrb[10].mxu1 }
 0x38b   : > { %v8322_v13 = vadd.f32 %v8321_v49, %v5506_v37  ;;  %v8323_v1 = vadd.f32 %v5258_v38, %v10547_v48  ;;  %v8168_v62 = vpop.f32.mrb[11].mxu1  ;;  %v5686_v32 = vmax.f32 %v5668_v21, 0.0 }
 0x38d   : > { %v5644_v3 = vmul.f32 %v8322_v13, %v10604_v52  ;;  %v8324_v11 = vadd.f32 %v8323_v1, %v5509_v31  ;;  %v5702_v7 = vpack.c.bf16 %v5686_v32, %v5685_v51 }
 0x38f   : > { %v5645_v47 = vmul.f32 %v8324_v11, %v10604_v52  ;;  %8266 = vmatmul.mubr.bf16.gmra.mrb[88].mxu0 %v5702_v7  ;;  %v5669_v57 = vadd.f32 %v10610_v8, %v5644_v3 }
 0x390   : > { %v5263_v29 = vpop.f32.mrb[12].mxu1  ;;  %8269 = vmatprep.mubr.msk.bf16.mxu0 %vm8874_vm0, %v10418_v46 }
 0x391   : > { %v8325_v37 = vadd.f32 %v5263_v29, %v10549_v4  ;;  %v8171_v59 = vpop.f32.mrb[13].mxu1  ;;  %v5670_v48 = vadd.f32 %v10610_v8, %v5645_v47  ;;  %v5687_v58 = vmax.f32 %v5669_v57, 0.0 }
 0x392   : > { %v5266_v23 = vpop.f32.mrb[14].mxu1 }
 0x393   : > { %v8326_v14 = vadd.f32 %v8325_v37, %v10588_v61  ;;  %v8327_v31 = vadd.f32 %v5266_v23, %v10551_v45  ;;  %v8172_v36 = vpop.f32.mrb[15].mxu1  ;;  %v5688_v15 = vmax.f32 %v5670_v48, 0.0 }
 0x395   : > { %v5646_v55 = vmul.f32 %v8326_v14, %v10604_v52  ;;  %v8328_v6 = vadd.f32 %v8327_v31, %v10590_v2  ;;  %v5703_v40 = vpack.c.bf16 %v5688_v15, %v5687_v58 }
 0x397   : > { %v5647_v20 = vmul.f32 %v8328_v6, %v10604_v52  ;;  %8270 = vmatmul.mubr.bf16.gmra.mrb[92].mxu0 %v5703_v40  ;;  %v5671_v4 = vadd.f32 %v10610_v8, %v5646_v55 }
 0x398   : > { %v5271_v19 = vpop.f32.mrb[16].mxu1  ;;  %8273 = vmatprep.mubr.msk.bf16.mxu0 %vm8874_vm0, %v10418_v46 }
 0x399   : > { %v8329_v61 = vadd.f32 %v5271_v19, %v10560_v53  ;;  %v8175_v45 = vpop.f32.mrb[17].mxu1  ;;  %v5672_v25 = vadd.f32 %v10610_v8, %v5647_v20  ;;  %v5689_v56 = vmax.f32 %v5671_v4, 0.0 }
 0x39a   : > { %v5274_v12 = vpop.f32.mrb[18].mxu1 }
 0x39b   : > { %v8330_v44 = vadd.f32 %v8329_v61, %v10592_v0  ;;  %v8331_v2 = vadd.f32 %v5274_v12, %v10565_v26  ;;  %v8176_v42 = vpop.f32.mrb[19].mxu1  ;;  %v5690_v10 = vmax.f32 %v5672_v25, 0.0 }
 0x39d   : > { %v5648_v28 = vmul.f32 %v8330_v44, %v10604_v52  ;;  %v8332_v60 = vadd.f32 %v8331_v2, %v10594_v17  ;;  %v5704_v43 = vpack.c.bf16 %v5690_v10, %v5689_v56 }
 0x39f   : > { %v5649_v30 = vmul.f32 %v8332_v60, %v10604_v52  ;;  %8274 = vmatmul.mubr.bf16.gmra.mrb[96].mxu0 %v5704_v43  ;;  %v5673_v53 = vadd.f32 %v10610_v8, %v5648_v28 }
 0x3a0   : > { %v5279_v63 = vpop.f32.mrb[20].mxu1  ;;  %8277 = vmatprep.mubr.msk.bf16.mxu0 %vm8874_vm0, %v10418_v46 }
 0x3a1   : > { %v8333_v0 = vadd.f32 %v5279_v63, %v10572_v22  ;;  %v8179_v26 = vpop.f32.mrb[21].mxu1  ;;  %v5674_v39 = vadd.f32 %v10610_v8, %v5649_v30  ;;  %v5691_v21 = vmax.f32 %v5673_v53, 0.0  ;;  %v7524_v53 = vld [vmem:[%s9019_s18 + $0x21] sm:$0xff]  ;;  %v7525_v63 = vld [vmem:[%s9019_s18 + $0x31] sm:$0xff] }
 0x3a2   : > { %v5282_v16 = vpop.f32.mrb[22].mxu1  ;;  %v6365_v26 = vcombine.high %v7524_v53, %v7524_v53 }
 0x3a3   : > { %v8334_v49 = vadd.f32 %v8333_v0, %v10596_v9  ;;  %v8335_v17 = vadd.f32 %v5282_v16, %v10574_v24  ;;  %v8180_v50 = vpop.f32.mrb[23].mxu1  ;;  %v5692_v38 = vmax.f32 %v5674_v39, 0.0  ;;  %v7527_v39 = vld [vmem:[%s9019_s18 + $0x49] sm:$0xff] }
 0x3a4   : > { %v7529_v50 = vld [vmem:[%s9019_s18 + $0x61] sm:$0xff] }
 0x3a5   : > { %v5650_v13 = vmul.f32 %v8334_v49, %v10604_v52  ;;  %v8336_v1 = vadd.f32 %v8335_v17, %v10598_v35  ;;  %v5705_v62 = vpack.c.bf16 %v5692_v38, %v5691_v21  ;;  %v10698_v49 = vrot.slane %v7524_v53, %v9059_v27  ;;  %v7530_v21 = vld [vmem:[%s9019_s18 + $0x69] sm:$0xff] }
 0x3a6   : > { %v10703_v38 = vrot.slane %v6365_v26, %v9059_v27 }
 0x3a7   : > { %v5651_v51 = vmul.f32 %v8336_v1, %v10604_v52  ;;  %8278 = vmatmul.mubr.bf16.gmra.mrb[100].mxu0 %v5705_v62  ;;  %v5675_v22 = vadd.f32 %v10610_v8, %v5650_v13  ;;  %v10706_v13 = vrot.slane %v7525_v63, %v9059_v27  ;;  %v6416_v1 = vcombine.high %v7527_v39, %v7527_v39 }
 0x3a8   : > { %8281 = vmatprep.mubr.msk.bf16.mxu0 %vm8874_vm0, %v10418_v46 }
 0x3a9   : > { %v5676_v9 = vadd.f32 %v10610_v8, %v5651_v51  ;;  %v5693_v32 = vmax.f32 %v5675_v22, 0.0  ;;  %v7528_v22 = vld [vmem:[%s9019_s18 + $0x51] sm:$0xff] }
 0x3ab   : > { %v5694_v24 = vmax.f32 %v5676_v9, 0.0  ;;  %v10718_v9 = vld [vmem:[%s11152_s8] ss:$0 sm:$0xff] }
 0x3ad   : > { %v5706_v3 = vpack.c.bf16 %v5694_v24, %v5693_v32  ;;  %v6433_v24 = vcombine.high %v7528_v22, %v7528_v22 }
 0x3af   : > { %8282 = vmatmul.mubr.bf16.gmra.mrb[104].mxu0 %v5706_v3  ;;  %v6450_v3 = vcombine.high %v7529_v50, %v7529_v50 }
 0x3b0   : > { %8285 = vmatprep.mubr.msk.bf16.mxu0 %vm8874_vm0, %v10418_v46 }
 0x3c0   : > { %v5538_v11 = vpop.f32.mrb[24].mxu1 }
 0x3c1   : > { %v8337_v35 = vadd.f32 %v5538_v11, %v10576_v54  ;;  %v8235_v7 = vpop.f32.mrb[25].mxu1  ;;  %v6467_v11 = vcombine.high %v7530_v21, %v7530_v21 }
 0x3c2   : > { %v5541_v47 = vpop.f32.mrb[26].mxu1  ;;  %v6380_v7 = vcombine.high %v10698_v49, %v10698_v49 }
 0x3c3   : > { %v5652_v57 = vmul.f32 %v8337_v35, %v10604_v52  ;;  %v8338_v29 = vadd.f32 %v5541_v47, %v10578_v34  ;;  %v8236_v37 = vpop.f32.mrb[27].mxu1 }
 0x3c4   : > { %v10735_v37 = vld [vmem:[%s11153_s9] ss:$0 sm:$0xff] }
 0x3c5   : > { %v5677_v59 = vadd.f32 %v10610_v8, %v5652_v57  ;;  %v5653_v48 = vmul.f32 %v8338_v29, %v10604_v52  ;;  %v10730_v57 = vrot.slane %v7527_v39, %v9059_v27 }
 0x3c7   : > { %v5678_v23 = vadd.f32 %v10610_v8, %v5653_v48  ;;  %v5695_v31 = vmax.f32 %v5677_v59, 0.0  ;;  %v6381_v59 = vcombine.high %v10703_v38, %v10703_v38  ;;  %v6397_v48 = vcombine.high %v10706_v13, %v10706_v13 }
 0x3c8   : > { %v5546_v14 = vpop.f32.mrb[28].mxu1 }
 0x3c9   : > { %v5696_v36 = vmax.f32 %v5678_v23, 0.0  ;;  %v8339_v58 = vadd.f32 %v5546_v14, %v10580_v33  ;;  %v8239_v15 = vpop.f32.mrb[29].mxu1  ;;  %v10742_v23 = vrot.slane %v6416_v1, %v9059_v27  ;;  %v10745_v14 = vrot.slane %v7528_v22, %v9059_v27 }
 0x3ca   : > { %v5549_v54 = vpop.f32.mrb[30].mxu1 }
 0x3cb   : > { %v5654_v55 = vmul.f32 %v8339_v58, %v10604_v52  ;;  %v8340_v6 = vadd.f32 %v5549_v54, %v10582_v5  ;;  %v8240_v40 = vpop.f32.mrb[31].mxu1  ;;  %v5707_v34 = vpack.c.bf16 %v5696_v36, %v5695_v31  ;;  %v10753_v54 = vrot.slane %v7529_v50, %v9059_v27 }
 0x3cc   : > { %v10757_v40 = vrot.slane %v6433_v24, %v9059_v27 }
 0x3cd   : > { %v5679_v20 = vadd.f32 %v10610_v8, %v5654_v55  ;;  %v5655_v4 = vmul.f32 %v8340_v6, %v10604_v52  ;;  %8286 = vmatmul.mubr.bf16.gmra.mrb[108].mxu0 %v5707_v34  ;;  %v7531_v55 = vld [vmem:[%s9019_s18 + $0x79] sm:$0xff]  ;;  %v10760_v34 = vrot.slane %v6450_v3, %v9059_v27 }
 0x3ce   : > { %8289 = vmatprep.mubr.msk.bf16.mxu0 %vm8874_vm0, %v10418_v46 }
 0x3cf   : > { %v5680_v19 = vadd.f32 %v10610_v8, %v5655_v4  ;;  %v5697_v33 = vmax.f32 %v5679_v20, 0.0  ;;  %v10763_v20 = vrot.slane %v7530_v21, %v9059_v27  ;;  %v10766_v4 = vrot.slane %v6467_v11, %v9059_v27 }
 0x3d0   : > { %v5554_v61 = vpop.f32.mrb[32].mxu1 }
 0x3d1   : > { %v5698_v45 = vmax.f32 %v5680_v19, 0.0  ;;  %v8341_v25 = vadd.f32 %v5554_v61, %v10584_v41  ;;  %v8243_v12 = vpop.f32.mrb[33].mxu1 }
 0x3d2   : > { %v5557_v5 = vpop.f32.mrb[34].mxu1  ;;  %v6432_v12 = vcombine.high %v10742_v23, %v10742_v23 }
 0x3d3   : > { %v5656_v44 = vmul.f32 %v8341_v25, %v10604_v52  ;;  %v8342_v2 = vadd.f32 %v5557_v5, %v10586_v18  ;;  %v8244_v42 = vpop.f32.mrb[35].mxu1  ;;  %v5708_v56 = vpack.c.bf16 %v5698_v45, %v5697_v33  ;;  %v7523_v18 = vld [vmem:[%s9019_s18 + $0x19] sm:$0xff]  ;;  %v6431_v25 = vcombine.high %v10730_v57, %v10730_v57 }
 0x3d4   : > { %v6348_v0 = vcombine.high %v7523_v18, %v7523_v18  ;;  %v10691_v16 = vrot.slane %v7523_v18, %v9059_v27  ;;  %v6448_v5 = vcombine.high %v10745_v14, %v10745_v14  ;;  %v6483_v18 = vcombine.high %v10766_v4, %v10766_v4 }
 0x3d5   : > { %v5681_v10 = vadd.f32 %v10610_v8, %v5656_v44  ;;  %v5657_v28 = vmul.f32 %v8342_v2, %v10604_v52  ;;  %8290 = vmatmul.mubr.bf16.gmra.mrb[112].mxu0 %v5708_v56  ;;  %v6382_v52 = vcombine.high %v7525_v63, %v7525_v63  ;;  %v6484_v44 = vcombine.high %v7531_v55, %v7531_v55 }
 0x3d6   : > { %8293 = vmatprep.mubr.msk.bf16.mxu0 %vm8874_vm0, %v10418_v46  ;;  %v7526_v46 = vld [vmem:[%s9019_s18 + $0x39] sm:$0xff]  ;;  %v6363_v32 = vcombine.high %v10691_v16, %v10691_v16  ;;  %v10779_v2 = vrot.slane %v7531_v55, %v9059_v27 }
 0x3d7   : > { %v5682_v41 = vadd.f32 %v10610_v8, %v5657_v28  ;;  %v5699_v60 = vmax.f32 %v5681_v10, 0.0  ;;  %v10695_v8 = vrot.slane %v6348_v0, %v9059_v27  ;;  %v6399_v17 = vcombine.high %v7526_v46, %v7526_v46 }
 0x3d8   : > { %v10709_v62 = vrot.slane %v6382_v52, %v9059_v27  ;;  %v10712_v51 = vrot.slane %v7526_v46, %v9059_v27  ;;  %v6465_v28 = vcombine.high %v10753_v54, %v10753_v54  ;;  %v10800_v46 = vrot.slane %v6484_v44, %v9059_v27 }
 0x3d9   : > { %v5700_v43 = vmax.f32 %v5682_v41, 0.0  ;;  %v6364_v35 = vcombine.high %v10695_v8, %v10695_v8  ;;  %v10727_v47 = vrot.slane %v6399_v17, %v9059_v27  ;;  %v10786_v41 = vld [vmem:[%s9019_s18 + $0x81] sm:$0xff]  ;;  %v6499_v17 = vcombine.high %v10779_v2, %v10779_v2 }
 0x3da   : > { %v6398_v58 = vcombine.high %v10709_v62, %v10709_v62  ;;  %v6414_v15 = vcombine.high %v10712_v51, %v10712_v51  ;;  %v6501_v50 = vcombine.high %v10786_v41, %v10786_v41 }
 0x3db   : > { %v5709_v30 = vpack.c.bf16 %v5700_v43, %v5699_v60  ;;  %v6415_v45 = vcombine.high %v10727_v47, %v10727_v47  ;;  %v6449_v60 = vcombine.high %v10757_v40, %v10757_v40  ;;  %v6466_v43 = vcombine.high %v10760_v34, %v10760_v34 }
 0x3dd   : > { %8294 = vmatmul.mubr.bf16.gmra.mrb[116].mxu0 %v5709_v30  ;;  %v6482_v30 = vcombine.high %v10763_v20, %v10763_v20 }
 0x45a   : > { %v5808_v29 = vpop.f32.mrb[84].mxu0 }
 0x45b   : > { %v5886_v31 = vmul.f32 %v10718_v9, %v5808_v29  ;;  %v8263_v36 = vpop.f32.mrb[85].mxu0 }
 0x45c   : > { %v5811_v6 = vpop.f32.mrb[86].mxu0 }
 0x45d   : > { %v5911_v19 = vadd.f32 %v10735_v37, %v5886_v31  ;;  %v5887_v61 = vmul.f32 %v10718_v9, %v5811_v6  ;;  %v8264_v33 = vpop.f32.mrb[87].mxu0 }
 0x45f   : > { %v5966_v42 = vcombine.high %v5911_v19, %v5911_v19  ;;  %v5973_v56 = vrot.slane %v5911_v19, %v9059_v27  ;;  %v5912_v10 = vadd.f32 %v10735_v37, %v5887_v61 }
 0x461   : > { %v5980_v53 = vrot.slane %v5966_v42, %v9059_v27  ;;  %v5981_v63 = vcombine.high %v5973_v56, %v5973_v56  ;;  %v6684_v0 = vadd.f32 %v10691_v16, %v5973_v56  ;;  %v5983_v26 = vcombine.high %v5912_v10, %v5912_v10 }
 0x462   : > { %v5990_v52 = vrot.slane %v5912_v10, %v9059_v27  ;;  %v5816_v39 = vpop.f32.mrb[88].mxu0  ;;  %v10809_v16 = vrot.slane %v10786_v41, %v9059_v27 }
 0x463   : > { %v5982_v21 = vcombine.high %v5980_v53, %v5980_v53  ;;  %v6685_v1 = vadd.f32 %v6363_v32, %v5981_v63  ;;  %v6686_v22 = vadd.f32 %v10695_v8, %v5980_v53  ;;  %v8267_v24 = vpop.f32.mrb[89].mxu0  ;;  %v5997_v3 = vrot.slane %v5983_v26, %v9059_v27 }
 0x464   : > { %v5998_v11 = vcombine.high %v5990_v52, %v5990_v52  ;;  %v6688_v29 = vadd.f32 %v10698_v49, %v5990_v52  ;;  %v5888_v31 = vmul.f32 %v10718_v9, %v5816_v39  ;;  %v5819_v36 = vpop.f32.mrb[90].mxu0  ;;  %v6748_v6 = vmax.f32 %v6684_v0, 0.0 }
 0x465   : > { %v6687_v55 = vadd.f32 %v6364_v35, %v5982_v21  ;;  %v6749_v19 = vmax.f32 %v6685_v1, 0.0  ;;  %v5889_v32 = vmul.f32 %v10718_v9, %v5819_v36  ;;  %v8268_v8 = vpop.f32.mrb[91].mxu0  ;;  %v6750_v61 = vmax.f32 %v6686_v22, 0.0 }
 0x466   : > { %v5999_v33 = vcombine.high %v5997_v3, %v5997_v3  ;;  %v6689_v44 = vadd.f32 %v6380_v7, %v5998_v11  ;;  %v6690_v42 = vadd.f32 %v10703_v38, %v5997_v3  ;;  %v5913_v53 = vadd.f32 %v10735_v37, %v5888_v31 }
 0x467   : > { %v6751_v56 = vmax.f32 %v6687_v55, 0.0  ;;  %v6876_v10 = vcombine.low %v6748_v6, %v6749_v19  ;;  %v5914_v35 = vadd.f32 %v10735_v37, %v5889_v32  ;;  %v6752_v0 = vmax.f32 %v6688_v29, 0.0 }
 0x468   : > { %v6691_v63 = vadd.f32 %v6381_v59, %v5999_v33  ;;  %v6753_v26 = vmax.f32 %v6689_v44, 0.0  ;;  %v6754_v52 = vmax.f32 %v6690_v42, 0.0  ;;  %v6000_v7 = vcombine.high %v5913_v53, %v5913_v53 }
 0x469   : > { %v6877_v39 = vcombine.low %v6750_v61, %v6751_v56  ;;  %v6884_v49 = vrot.slane %v6876_v10, %v9059_v27  ;;  %v6007_v21 = vrot.slane %v5913_v53, %v9059_v27  ;;  %v6017_v24 = vcombine.high %v5914_v35, %v5914_v35 }
 0x46a   : > { %v6755_v1 = vmax.f32 %v6691_v63, 0.0  ;;  %v6893_v22 = vcombine.low %v6752_v0, %v6753_v26  ;;  %v6024_v3 = vrot.slane %v5914_v35, %v9059_v27  ;;  %v5824_v11 = vpop.f32.mrb[92].mxu0  ;;  %v6014_v59 = vrot.slane %v6000_v7, %v9059_v27 }
 0x46b   : > { %v6891_v38 = vrot.slane %v6877_v39, %v9059_v27  ;;  %v6015_v29 = vcombine.high %v6007_v21, %v6007_v21  ;;  %v5890_v31 = vmul.f32 %v10718_v9, %v5824_v11  ;;  %v8271_v36 = vpop.f32.mrb[93].mxu0  ;;  %v6031_v19 = vrot.slane %v6017_v24, %v9059_v27 }
 0x46c   : > { %v6894_v55 = vcombine.low %v6754_v52, %v6755_v1  ;;  %v6901_v6 = vrot.slane %v6893_v22, %v9059_v27  ;;  %v6032_v32 = vcombine.high %v6024_v3, %v6024_v3  ;;  %v5827_v8 = vpop.f32.mrb[94].mxu0  ;;  %v6016_v33 = vcombine.high %v6014_v59, %v6014_v59 }
 0x46d   : > { %v6892_v61 = vcombine.low %v6884_v49, %v6891_v38  ;;  %v6692_v44 = vadd.f32 %v10706_v13, %v6015_v29  ;;  %v6693_v42 = vadd.f32 %v6397_v48, %v6014_v59  ;;  %v8272_v56 = vpop.f32.mrb[95].mxu0  ;;  %v6033_v53 = vcombine.high %v6031_v19, %v6031_v19 }
 0x46e   : > { %v6908_v10 = vrot.slane %v6894_v55, %v9059_v27  ;;  %v6695_v35 = vadd.f32 %v6398_v58, %v6024_v3  ;;  %v6696_v63 = vadd.f32 %v10712_v51, %v6032_v32  ;;  %v6694_v0 = vadd.f32 %v10709_v62, %v6016_v33 }
 0x46f   : > { %7164 = vst [vmem:[%s10844_s21] sm:$0xff] %v6892_v61  ;;  %v6756_v26 = vmax.f32 %v6692_v44, 0.0  ;;  %v6757_v13 = vmax.f32 %v6693_v42, 0.0  ;;  %v6697_v48 = vadd.f32 %v6414_v15, %v6031_v19  ;;  %v6698_v39 = vadd.f32 %v10727_v47, %v6033_v53 }
 0x470   : > { %v6909_v52 = vcombine.low %v6901_v6, %v6908_v10  ;;  %v6759_v49 = vmax.f32 %v6695_v35, 0.0  ;;  %v6760_v58 = vmax.f32 %v6696_v63, 0.0  ;;  %v6758_v21 = vmax.f32 %v6694_v0, 0.0 }
 0x471   : > { %v6910_v7 = vcombine.low %v6756_v26, %v6757_v13  ;;  %v6761_v1 = vmax.f32 %v6697_v48, 0.0  ;;  %v5915_v22 = vadd.f32 %v10735_v37, %v5890_v31  ;;  %v5891_v24 = vmul.f32 %v10718_v9, %v5827_v8 }
 0x472   : > { %7165 = vst [vmem:[%s10844_s21 + $0x8] sm:$0xff] %v6909_v52  ;;  %v5832_v62 = vpop.f32.mrb[96].mxu0  ;;  %v6500_v3 = vcombine.high %v10800_v46, %v10800_v46  ;;  %v10861_v51 = vrot.slane %v6501_v50, %v9059_v27  ;;  %v6516_v15 = vcombine.high %v10809_v16, %v10809_v16  ;;  %v6911_v11 = vcombine.low %v6758_v21, %v6759_v49 }
 0x473   : > { %v6927_v38 = vcombine.low %v6760_v58, %v6761_v1  ;;  %v6034_v59 = vcombine.high %v5915_v22, %v5915_v22  ;;  %v6762_v29 = vmax.f32 %v6698_v39, 0.0  ;;  %v8275_v31 = vpop.f32.mrb[97].mxu0  ;;  %v6918_v36 = vrot.slane %v6910_v7, %v9059_v27 }
 0x474   : > { %v6041_v55 = vrot.slane %v5915_v22, %v9059_v27  ;;  %v5916_v6 = vadd.f32 %v10735_v37, %v5891_v24  ;;  %v5892_v19 = vmul.f32 %v10718_v9, %v5832_v62  ;;  %v5835_v32 = vpop.f32.mrb[98].mxu0  ;;  %v6925_v41 = vrot.slane %v6911_v11, %v9059_v27 }
 0x475   : > { %v6935_v50 = vrot.slane %v6927_v38, %v9059_v27  ;;  %v6048_v8 = vrot.slane %v6034_v59, %v9059_v27  ;;  %v5893_v61 = vmul.f32 %v10718_v9, %v5835_v32  ;;  %v8276_v33 = vpop.f32.mrb[99].mxu0 }
 0x476   : > { %v6699_v44 = vadd.f32 %v6415_v45, %v6041_v55  ;;  %v6050_v42 = vcombine.high %v5916_v6, %v5916_v6  ;;  %v6057_v56 = vrot.slane %v5916_v6, %v9059_v27  ;;  %v5917_v10 = vadd.f32 %v10735_v37, %v5892_v19 }
 0x477   : > { %v6926_v53 = vcombine.low %v6918_v36, %v6925_v41  ;;  %v6049_v35 = vcombine.high %v6048_v8, %v6048_v8  ;;  %v6700_v63 = vadd.f32 %v10730_v57, %v6048_v8  ;;  %v5918_v0 = vadd.f32 %v10735_v37, %v5893_v61 }
 0x478   : > { %v6763_v26 = vmax.f32 %v6699_v44, 0.0  ;;  %v6064_v13 = vrot.slane %v6050_v42, %v9059_v27  ;;  %v6065_v48 = vcombine.high %v6057_v56, %v6057_v56  ;;  %v6702_v52 = vadd.f32 %v10742_v23, %v6057_v56 }
 0x479   : > { %7166 = vst [vmem:[%s10844_s21 + $0x10] sm:$0xff] %v6926_v53  ;;  %v6701_v47 = vadd.f32 %v6431_v25, %v6049_v35  ;;  %v6764_v45 = vmax.f32 %v6700_v63, 0.0  ;;  %v6067_v39 = vcombine.high %v5917_v10, %v5917_v10  ;;  %v6074_v49 = vrot.slane %v5917_v10, %v9059_v27 }
 0x47a   : > { %v6928_v58 = vcombine.low %v6762_v29, %v6763_v26  ;;  %v6066_v7 = vcombine.high %v6064_v13, %v6064_v13  ;;  %v6703_v21 = vadd.f32 %v6432_v12, %v6065_v48  ;;  %v6704_v1 = vadd.f32 %v10745_v14, %v6064_v13  ;;  %v5840_v22 = vpop.f32.mrb[100].mxu0 }
 0x47b   : > { %v6765_v24 = vmax.f32 %v6701_v47, 0.0  ;;  %v6766_v62 = vmax.f32 %v6702_v52, 0.0  ;;  %v6081_v11 = vrot.slane %v6067_v39, %v9059_v27  ;;  %v6082_v38 = vcombine.high %v6074_v49, %v6074_v49  ;;  %v8279_v57 = vpop.f32.mrb[101].mxu0 }
 0x47c   : > { %v6942_v25 = vrot.slane %v6928_v58, %v9059_v27  ;;  %v6705_v59 = vadd.f32 %v6448_v5, %v6066_v7  ;;  %v6767_v29 = vmax.f32 %v6703_v21, 0.0  ;;  %v6768_v31 = vmax.f32 %v6704_v1, 0.0  ;;  %v5843_v23 = vpop.f32.mrb[102].mxu0 }
 0x47d   : > { %v6944_v12 = vcombine.low %v6764_v45, %v6765_v24  ;;  %v6083_v36 = vcombine.high %v6081_v11, %v6081_v11  ;;  %v6706_v55 = vadd.f32 %v10757_v40, %v6074_v49  ;;  %v6707_v6 = vadd.f32 %v6449_v60, %v6082_v38  ;;  %v8280_v19 = vpop.f32.mrb[103].mxu0 }
 0x47e   : > { %v6943_v32 = vcombine.low %v6935_v50, %v6942_v25  ;;  %v6769_v41 = vmax.f32 %v6705_v59, 0.0  ;;  %v6945_v8 = vcombine.low %v6766_v62, %v6767_v29  ;;  %v6084_v61 = vcombine.high %v5918_v0, %v5918_v0 }
 0x47f   : > { %v6952_v14 = vrot.slane %v6944_v12, %v9059_v27  ;;  %v6708_v5 = vadd.f32 %v10753_v54, %v6083_v36  ;;  %v6770_v33 = vmax.f32 %v6706_v55, 0.0  ;;  %v6771_v44 = vmax.f32 %v6707_v6, 0.0 }
 0x480   : > { %7167 = vst [vmem:[%s10844_s21 + $0x18] sm:$0xff] %v6943_v32  ;;  %v6959_v42 = vrot.slane %v6945_v8, %v9059_v27  ;;  %v6961_v56 = vcombine.low %v6768_v31, %v6769_v41  ;;  %v6091_v10 = vrot.slane %v5918_v0, %v9059_v27  ;;  %v6098_v40 = vrot.slane %v6084_v61, %v9059_v27 }
 0x481   : > { %v6772_v60 = vmax.f32 %v6708_v5, 0.0  ;;  %v6962_v50 = vcombine.low %v6770_v33, %v6771_v44  ;;  %v5894_v53 = vmul.f32 %v10718_v9, %v5840_v22  ;;  %v5895_v35 = vmul.f32 %v10718_v9, %v5843_v23 }
 0x482   : > { %v6960_v63 = vcombine.low %v6952_v14, %v6959_v42  ;;  %v6969_v26 = vrot.slane %v6961_v56, %v9059_v27  ;;  %v6099_v13 = vcombine.high %v6091_v10, %v6091_v10  ;;  %v6100_v48 = vcombine.high %v6098_v40, %v6098_v40  ;;  %v5848_v52 = vpop.f32.mrb[104].mxu0 }
 0x483   : > { %v6976_v47 = vrot.slane %v6962_v50, %v9059_v27  ;;  %v6709_v0 = vadd.f32 %v6465_v28, %v6091_v10  ;;  %v6711_v45 = vadd.f32 %v6466_v43, %v6098_v40  ;;  %v5919_v39 = vadd.f32 %v10735_v37, %v5894_v53  ;;  %v8283_v49 = vpop.f32.mrb[105].mxu0 }
 0x484   : > { %7168 = vst [vmem:[%s10844_s21 + $0x20] sm:$0xff] %v6960_v63  ;;  %v6710_v58 = vadd.f32 %v10760_v34, %v6099_v13  ;;  %v6712_v7 = vadd.f32 %v10763_v20, %v6100_v48  ;;  %v5920_v21 = vadd.f32 %v10735_v37, %v5895_v35  ;;  %v5896_v1 = vmul.f32 %v10718_v9, %v5848_v52  ;;  %v5851_v22 = vpop.f32.mrb[106].mxu0 }
 0x485   : > { %v6977_v54 = vcombine.low %v6969_v26, %v6976_v47  ;;  %v6773_v28 = vmax.f32 %v6709_v0, 0.0  ;;  %v6775_v24 = vmax.f32 %v6711_v45, 0.0  ;;  %v6101_v62 = vcombine.high %v5919_v39, %v5919_v39  ;;  %v8284_v11 = vpop.f32.mrb[107].mxu0 }
 0x486   : > { %v6774_v43 = vmax.f32 %v6710_v58, 0.0  ;;  %v6108_v38 = vrot.slane %v5919_v39, %v9059_v27  ;;  %v6776_v57 = vmax.f32 %v6712_v7, 0.0  ;;  %v6117_v25 = vcombine.high %v5920_v21, %v5920_v21 }
 0x487   : > { %7169 = vst [vmem:[%s10844_s21 + $0x28] sm:$0xff] %v6977_v54  ;;  %v6978_v59 = vcombine.low %v6772_v60, %v6773_v28  ;;  %v6115_v34 = vrot.slane %v6101_v62, %v9059_v27  ;;  %v6124_v29 = vrot.slane %v5920_v21, %v9059_v27  ;;  %v5921_v31 = vadd.f32 %v10735_v37, %v5896_v1  ;;  %v7533_v54 = vld [vmem:[%s9019_s18 + $0x91] sm:$0xff] }
 0x488   : > { %v6979_v23 = vcombine.low %v6774_v43, %v6775_v24  ;;  %v6116_v12 = vcombine.high %v6108_v38, %v6108_v38  ;;  %v6713_v36 = vadd.f32 %v6482_v30, %v6108_v38  ;;  %v6131_v55 = vrot.slane %v6117_v25, %v9059_v27  ;;  %v7534_v38 = vld [vmem:[%s9019_s18 + $0x99] sm:$0xff] }
 0x489   : > { %v6986_v6 = vrot.slane %v6978_v59, %v9059_v27  ;;  %v6715_v19 = vadd.f32 %v6483_v18, %v6115_v34  ;;  %v6132_v32 = vcombine.high %v6124_v29, %v6124_v29  ;;  %v6716_v41 = vadd.f32 %v10779_v2, %v6124_v29 }
 0x48a   : > { %v6993_v8 = vrot.slane %v6979_v23, %v9059_v27  ;;  %v6714_v61 = vadd.f32 %v10766_v4, %v6116_v12  ;;  %v6777_v14 = vmax.f32 %v6713_v36, 0.0  ;;  %v6133_v5 = vcombine.high %v6131_v55, %v6131_v55  ;;  %v7536_v36 = vld [vmem:[%s9019_s18 + $0xb1] sm:$0xff] }
 0x48b   : > { %v6779_v20 = vmax.f32 %v6715_v19, 0.0  ;;  %v6717_v30 = vadd.f32 %v6499_v17, %v6132_v32  ;;  %v6718_v33 = vadd.f32 %v10800_v46, %v6131_v55  ;;  %v6517_v18 = vcombine.high %v10861_v51, %v10861_v51  ;;  %v7535_v55 = vld [vmem:[%s9019_s18 + $0xa9] sm:$0xff]  ;;  %v7537_v19 = vld [vmem:[%s9019_s18 + $0xc1] sm:$0xff] }
 0x48c   : > { %v6994_v44 = vcombine.low %v6986_v6, %v6993_v8  ;;  %v6778_v42 = vmax.f32 %v6714_v61, 0.0  ;;  %v6995_v56 = vcombine.low %v6776_v57, %v6777_v14  ;;  %v6719_v10 = vadd.f32 %v6500_v3, %v6133_v5 }
 0x48d   : > { %v6780_v4 = vmax.f32 %v6716_v41, 0.0  ;;  %v6781_v40 = vmax.f32 %v6717_v30, 0.0  ;;  %v6134_v60 = vcombine.high %v5921_v31, %v5921_v31  ;;  %v6141_v50 = vrot.slane %v5921_v31, %v9059_v27 }
 0x48e   : > { %7170 = vst [vmem:[%s10844_s21 + $0x30] sm:$0xff] %v6994_v44  ;;  %v6996_v2 = vcombine.low %v6778_v42, %v6779_v20  ;;  %v6782_v17 = vmax.f32 %v6718_v33, 0.0  ;;  %v6783_v53 = vmax.f32 %v6719_v10, 0.0  ;;  %v5897_v35 = vmul.f32 %v10718_v9, %v5851_v22 }
 0x48f   : > { %v7012_v63 = vcombine.low %v6780_v4, %v6781_v40  ;;  %v6148_v26 = vrot.slane %v6134_v60, %v9059_v27  ;;  %v6149_v13 = vcombine.high %v6141_v50, %v6141_v50  ;;  %v6720_v46 = vadd.f32 %v10809_v16, %v6141_v50 }
 0x490   : > { %v7003_v3 = vrot.slane %v6995_v56, %v9059_v27  ;;  %v7010_v48 = vrot.slane %v6996_v2, %v9059_v27  ;;  %v7013_v52 = vcombine.low %v6782_v17, %v6783_v53  ;;  %v5922_v7 = vadd.f32 %v10735_v37, %v5897_v35 }
 0x491   : > { %v6150_v47 = vcombine.high %v6148_v26, %v6148_v26  ;;  %v6721_v0 = vadd.f32 %v6516_v15, %v6149_v13  ;;  %v6722_v45 = vadd.f32 %v10861_v51, %v6148_v26  ;;  %v7020_v49 = vrot.slane %v7012_v63, %v9059_v27 }
 0x492   : > { %v7011_v39 = vcombine.low %v7003_v3, %v7010_v48  ;;  %v7027_v58 = vrot.slane %v7013_v52, %v9059_v27  ;;  %v6784_v1 = vmax.f32 %v6720_v46, 0.0  ;;  %v6151_v51 = vcombine.high %v5922_v7, %v5922_v7  ;;  %v10996_v46 = vld [vmem:[%s9019_s18 + $0xc9] sm:$0xff]  ;;  %s7546_s18 = sshll.u32 %s8854_s16, 4 }
 0x493   : > { %v6723_v21 = vadd.f32 %v6517_v18, %v6150_v47  ;;  %v6785_v22 = vmax.f32 %v6721_v0, 0.0  ;;  %v6786_v24 = vmax.f32 %v6722_v45, 0.0  ;;  %v6158_v62 = vrot.slane %v5922_v7, %v9059_v27  ;;  %s7194_s22 = sadd.s32 %s7546_s18, %s7542_s23  ;;  %s8780_s18 = sshll.u32 %s8875_s12, 4  ;;  %s8781_s18 = int_to_ptr.vmem [resolvable:$false] %s8780_s18 }
 0x494   : > { %7171 = vst [vmem:[%s10844_s21 + $0x38] sm:$0xff] %v7011_v39  ;;  %v7028_v28 = vcombine.low %v7020_v49, %v7027_v58  ;;  %v6525_v11 = vrot.slane %v7533_v54, %v9059_v27  ;;  %v6165_v59 = vrot.slane %v6151_v51, %v9059_v27  ;;  %v6518_v23 = vcombine.high %v7533_v54, %v7533_v54  ;;  %s7543_s16 = sshll.u32 %s7194_s22, 7  ;;  %s8782_s23 = scalar_lea.vmem %s8781_s18, 4096 }
 0x495   : > { %v6787_v16 = vmax.f32 %v6723_v21, 0.0  ;;  %v7029_v15 = vcombine.low %v6784_v1, %v6785_v22  ;;  %v6166_v34 = vcombine.high %v6158_v62, %v6158_v62  ;;  %v6535_v12 = vcombine.high %v7534_v38, %v7534_v38  ;;  %s11085_s25 = scalar_lea.hbm %s11154_s10, %s7543_s16  ;;  %p8783_p2 = scmp.lt.s32.totalorder %s11087_s17, %s8781_s18 }
 0x496   : > { %7172 = vst [vmem:[%s10844_s21 + $0x40] sm:$0xff] %v7028_v28  ;;  %v6533_v29 = vcombine.high %v6525_v11, %v6525_v11  ;;  %v6552_v6 = vcombine.high %v7535_v55, %v7535_v55  ;;  %v6569_v8 = vcombine.high %v7536_v36, %v7536_v36  ;;  %v6532_v61 = vrot.slane %v6518_v23, %v9059_v27  ;;  %p8784_p4 = scmp.lt.s32.totalorder %s8782_s23, %s8776_s29 }
 0x497   : > { %v7030_v43 = vcombine.low %v6786_v24, %v6787_v16  ;;  %v7037_v57 = vrot.slane %v7029_v15, %v9059_v27  ;;  %v6724_v32 = vadd.f32 %v6525_v11, %v6166_v34  ;;  %v6542_v14 = vrot.slane %v7534_v38, %v9059_v27 }
 0x498   : > { %v6725_v41 = vadd.f32 %v6533_v29, %v6165_v59  ;;  %v6549_v5 = vrot.slane %v6535_v12, %v9059_v27  ;;  %v6167_v20 = vcombine.high %v6165_v59, %v6165_v59  ;;  %v10978_v33 = vrot.slane %v7535_v55, %v9059_v27  ;;  %p8785_p5 = por %p8784_p4, %p8783_p2 }
 0x499   : > { %v7044_v25 = vrot.slane %v7030_v43, %v9059_v27  ;;  %v10981_v18 = vrot.slane %v7536_v36, %v9059_v27  ;;  %v6586_v44 = vcombine.high %v7537_v19, %v7537_v19  ;;  %v6534_v56 = vcombine.high %v6532_v61, %v6532_v61 }
 0x49a   : > { %v10985_v4 = vrot.slane %v6552_v6, %v9059_v27  ;;  %v6788_v40 = vmax.f32 %v6724_v32, 0.0  ;;  %v6789_v60 = vmax.f32 %v6725_v41, 0.0  ;;  %v10988_v2 = vrot.slane %v6569_v8, %v9059_v27  ;;  %p8786_p6 = pnand %p8785_p5, %p8779_p1 }
 0x49b   : > { %v7045_v31 = vcombine.low %v7037_v57, %v7044_v25  ;;  %v10991_v17 = vrot.slane %v7537_v19, %v9059_v27  ;;  %v6550_v35 = vcombine.high %v6542_v14, %v6542_v14  ;;  %v6551_v26 = vcombine.high %v6549_v5, %v6549_v5 }
 0x49c   : > { %v6726_v3 = vadd.f32 %v6532_v61, %v6167_v20  ;;  %v6567_v48 = vcombine.high %v10978_v33, %v10978_v33  ;;  %v6584_v52 = vcombine.high %v10981_v18, %v10981_v18  ;;  %v11003_v47 = vrot.slane %v6586_v44, %v9059_v27 }
 0x49d   : > { %7173 = vst [vmem:[%s10844_s21 + $0x48] sm:$0xff] %v7045_v31  ;;  %v6568_v49 = vcombine.high %v10985_v4, %v10985_v4  ;;  %v7046_v58 = vcombine.low %v6788_v40, %v6789_v60  ;;  %v6585_v7 = vcombine.high %v10988_v2, %v10988_v2  ;;  %v6601_v21 = vcombine.high %v10991_v17, %v10991_v17 }
 0x49e   : > { %v11015_v1 = vrot.slane %v10996_v46, %v9059_v27  ;;  %v6790_v16 = vmax.f32 %v6726_v3, 0.0  ;;  %v6602_v62 = vcombine.high %v11003_v47, %v11003_v47  ;;  %v6603_v11 = vcombine.high %v10996_v46, %v10996_v46 }
 0x49f   : > { %v7054_v34 = vrot.slane %v7046_v58, %v9059_v27 }
 0x4a0   : > { %v5856_v30 = vpop.f32.mrb[108].mxu0 }
 0x4a1   : > { %v5898_v42 = vmul.f32 %v10718_v9, %v5856_v30  ;;  %v8287_v10 = vpop.f32.mrb[109].mxu0 }
 0x4a2   : > { %v5859_v50 = vpop.f32.mrb[110].mxu0 }
 0x4a3   : > { %v5923_v53 = vadd.f32 %v10735_v37, %v5898_v42  ;;  %v5899_v63 = vmul.f32 %v10718_v9, %v5859_v50  ;;  %v8288_v13 = vpop.f32.mrb[111].mxu0 }
 0x4a5   : > { %v6168_v0 = vcombine.high %v5923_v53, %v5923_v53  ;;  %v6175_v45 = vrot.slane %v5923_v53, %v9059_v27  ;;  %v5924_v39 = vadd.f32 %v10735_v37, %v5899_v63 }
 0x4a7   : > { %v6182_v22 = vrot.slane %v6168_v0, %v9059_v27  ;;  %v6183_v54 = vcombine.high %v6175_v45, %v6175_v45  ;;  %v6727_v28 = vadd.f32 %v6534_v56, %v6175_v45  ;;  %v6185_v24 = vcombine.high %v5924_v39, %v5924_v39 }
 0x4a8   : > { %v6192_v15 = vrot.slane %v5924_v39, %v9059_v27  ;;  %v5864_v51 = vpop.f32.mrb[112].mxu0 }
 0x4a9   : > { %v6184_v43 = vcombine.high %v6182_v22, %v6182_v22  ;;  %v6728_v38 = vadd.f32 %v6542_v14, %v6183_v54  ;;  %v6729_v57 = vadd.f32 %v6550_v35, %v6182_v22  ;;  %v6791_v25 = vmax.f32 %v6727_v28, 0.0  ;;  %v8291_v59 = vpop.f32.mrb[113].mxu0 }
 0x4aa   : > { %v6199_v29 = vrot.slane %v6185_v24, %v9059_v27  ;;  %v6731_v31 = vadd.f32 %v6551_v26, %v6192_v15  ;;  %v5900_v23 = vmul.f32 %v10718_v9, %v5864_v51  ;;  %v5867_v12 = vpop.f32.mrb[114].mxu0  ;;  %v6617_v51 = vrot.slane %v6603_v11, %v9059_v27 }
 0x4ab   : > { %v6730_v36 = vadd.f32 %v6549_v5, %v6184_v43  ;;  %v6792_v55 = vmax.f32 %v6728_v38, 0.0  ;;  %v6793_v6 = vmax.f32 %v6729_v57, 0.0  ;;  %v7047_v19 = vcombine.low %v6790_v16, %v6791_v25  ;;  %v8292_v32 = vpop.f32.mrb[115].mxu0 }
 0x4ac   : > { %v6200_v41 = vcombine.high %v6199_v29, %v6199_v29  ;;  %v6732_v8 = vadd.f32 %v10978_v33, %v6199_v29  ;;  %v6795_v61 = vmax.f32 %v6731_v31, 0.0  ;;  %v5925_v14 = vadd.f32 %v10735_v37, %v5900_v23 }
 0x4ad   : > { %v7061_v20 = vrot.slane %v7047_v19, %v9059_v27  ;;  %v7063_v30 = vcombine.low %v6792_v55, %v6793_v6  ;;  %v6794_v44 = vmax.f32 %v6730_v36, 0.0  ;;  %v5901_v42 = vmul.f32 %v10718_v9, %v5867_v12 }
 0x4ae   : > { %v6733_v56 = vadd.f32 %v6567_v48, %v6200_v41  ;;  %v6796_v10 = vmax.f32 %v6732_v8, 0.0  ;;  %v6201_v5 = vcombine.high %v5925_v14, %v5925_v14  ;;  %v6208_v40 = vrot.slane %v5925_v14, %v9059_v27 }
 0x4af   : > { %v7062_v60 = vcombine.low %v7054_v34, %v7061_v20  ;;  %v7071_v50 = vrot.slane %v7063_v30, %v9059_v27  ;;  %v7064_v53 = vcombine.low %v6794_v44, %v6795_v61  ;;  %v5926_v33 = vadd.f32 %v10735_v37, %v5901_v42 }
 0x4b0   : > { %v6797_v35 = vmax.f32 %v6733_v56, 0.0  ;;  %v6215_v63 = vrot.slane %v6201_v5, %v9059_v27  ;;  %v6216_v26 = vcombine.high %v6208_v40, %v6208_v40  ;;  %v6734_v13 = vadd.f32 %v10985_v4, %v6208_v40  ;;  %v5872_v46 = vpop.f32.mrb[116].mxu0 }
 0x4b1   : > { %7174 = vst [vmem:[%s10844_s21 + $0x50] sm:$0xff] %v7062_v60  ;;  %v7078_v3 = vrot.slane %v7064_v53, %v9059_v27  ;;  %v6218_v48 = vcombine.high %v5926_v33, %v5926_v33  ;;  %v6225_v0 = vrot.slane %v5926_v33, %v9059_v27  ;;  %v5902_v45 = vmul.f32 %v10718_v9, %v5872_v46  ;;  %v8295_v39 = vpop.f32.mrb[117].mxu0 }
 0x4b2   : > { %v7080_v58 = vcombine.low %v6796_v10, %v6797_v35  ;;  %v6217_v22 = vcombine.high %v6215_v63, %v6215_v63  ;;  %v6735_v54 = vadd.f32 %v6568_v49, %v6216_v26  ;;  %v6736_v28 = vadd.f32 %v10981_v18, %v6215_v63  ;;  %v5875_v24 = vpop.f32.mrb[118].mxu0 }
 0x4b3   : > { %v7079_v16 = vcombine.low %v7071_v50, %v7078_v3  ;;  %v6232_v4 = vrot.slane %v6218_v48, %v9059_v27  ;;  %v6233_v15 = vcombine.high %v6225_v0, %v6225_v0  ;;  %v8296_v43 = vpop.f32.mrb[119].mxu0  ;;  %v6798_v25 = vmax.f32 %v6734_v13, 0.0 }
 0x4b4   : > { %v7088_v38 = vrot.slane %v7080_v58, %v9059_v27  ;;  %v6737_v57 = vadd.f32 %v6584_v52, %v6217_v22  ;;  %v6799_v59 = vmax.f32 %v6735_v54, 0.0  ;;  %v6738_v34 = vadd.f32 %v10988_v2, %v6225_v0 }
 0x4b5   : > { %7175 = vst [vmem:[%s10844_s21 + $0x58] sm:$0xff] %v7079_v16  ;;  %v6234_v49 = vcombine.high %v6232_v4, %v6232_v4  ;;  %v6739_v29 = vadd.f32 %v6585_v7, %v6233_v15  ;;  %v5927_v31 = vadd.f32 %v10735_v37, %v5902_v45  ;;  %v6800_v11 = vmax.f32 %v6736_v28, 0.0 }
 0x4b6   : > { %v6801_v23 = vmax.f32 %v6737_v57, 0.0  ;;  %v7081_v12 = vcombine.low %v6798_v25, %v6799_v59  ;;  %v5903_v36 = vmul.f32 %v10718_v9, %v5875_v24  ;;  %v6802_v52 = vmax.f32 %v6738_v34, 0.0 }
 0x4b7   : > { %v6740_v18 = vadd.f32 %v10991_v17, %v6234_v49  ;;  %v6803_v55 = vmax.f32 %v6739_v29, 0.0  ;;  %v6235_v6 = vcombine.high %v5927_v31, %v5927_v31  ;;  %v6242_v41 = vrot.slane %v5927_v31, %v9059_v27 }
 0x4b8   : > { %v7095_v19 = vrot.slane %v7081_v12, %v9059_v27  ;;  %v7097_v32 = vcombine.low %v6800_v11, %v6801_v23  ;;  %v5928_v2 = vadd.f32 %v10735_v37, %v5903_v36  ;;  %v6618_v61 = vcombine.high %v11015_v1, %v11015_v1 }
 0x4b9   : > { %v7098_v7 = vcombine.low %v6802_v52, %v6803_v55  ;;  %v6249_v8 = vrot.slane %v6235_v6, %v9059_v27  ;;  %v6619_v9 = vcombine.high %v6617_v51, %v6617_v51  ;;  %v6250_v30 = vcombine.high %v6242_v41, %v6242_v41 }
 0x4ba   : > { %v7096_v14 = vcombine.low %v7088_v38, %v7095_v19  ;;  %v7105_v20 = vrot.slane %v7097_v32, %v9059_v27  ;;  %v6741_v44 = vadd.f32 %v6601_v21, %v6242_v41  ;;  %v6252_v10 = vcombine.high %v5928_v2, %v5928_v2 }
 0x4bb   : > { %v7112_v42 = vrot.slane %v7098_v7, %v9059_v27  ;;  %v6251_v56 = vcombine.high %v6249_v8, %v6249_v8  ;;  %v6743_v37 = vadd.f32 %v6602_v62, %v6249_v8  ;;  %v6804_v5 = vmax.f32 %v6740_v18, 0.0 }
 0x4bc   : > { %7176 = vst [vmem:[%s10844_s21 + $0x60] sm:$0xff] %v7096_v14  ;;  %v6742_v40 = vadd.f32 %v11003_v47, %v6250_v30  ;;  %v6805_v60 = vmax.f32 %v6741_v44, 0.0  ;;  %v6259_v50 = vrot.slane %v5928_v2, %v9059_v27  ;;  %v6266_v33 = vrot.slane %v6252_v10, %v9059_v27 }
 0x4bd   : > { %v7113_v17 = vcombine.low %v7105_v20, %v7112_v42  ;;  %v6744_v21 = vadd.f32 %v11015_v1, %v6251_v56  ;;  %v6807_v53 = vmax.f32 %v6743_v37, 0.0 }
 0x4be   : > { %v6806_v35 = vmax.f32 %v6742_v40, 0.0  ;;  %v7114_v63 = vcombine.low %v6804_v5, %v6805_v60  ;;  %v6267_v26 = vcombine.high %v6259_v50, %v6259_v50  ;;  %v6745_v62 = vadd.f32 %v6618_v61, %v6259_v50 }
 0x4bf   : > { %7177 = vst [vmem:[%s10844_s21 + $0x68] sm:$0xff] %v7113_v17  ;;  %v6747_v13 = vadd.f32 %v6619_v9, %v6266_v33  ;;  %v6808_v47 = vmax.f32 %v6744_v21, 0.0 }
 0x4c0   : > { %v7115_v46 = vcombine.low %v6806_v35, %v6807_v53  ;;  %v6746_v3 = vadd.f32 %v6617_v51, %v6267_v26  ;;  %v6809_v48 = vmax.f32 %v6745_v62, 0.0  ;;  %v7122_v1 = vrot.slane %v7114_v63, %v9059_v27 }
 0x4c1   : > { %v6811_v0 = vmax.f32 %v6747_v13, 0.0 }
 0x4c2   : > { %v7129_v45 = vrot.slane %v7115_v46, %v9059_v27  ;;  %v6810_v39 = vmax.f32 %v6746_v3, 0.0  ;;  %v7131_v58 = vcombine.low %v6808_v47, %v6809_v48 }
 0x4c4   : > { %v7130_v22 = vcombine.low %v7122_v1, %v7129_v45  ;;  %v7132_v54 = vcombine.low %v6810_v39, %v6811_v0  ;;  %v7139_v28 = vrot.slane %v7131_v58, %v9059_v27 }
 0x4c6   : > { %7178 = vst [vmem:[%s10844_s21 + $0x70] sm:$0xff] %v7130_v22  ;;  %v7146_v24 = vrot.slane %v7132_v54, %v9059_v27 }
 0x4c8   : > { %v7147_v16 = vcombine.low %v7139_v28, %v7146_v24 }
 0x4ca   : > { %7179 = vst [vmem:[%s10844_s21 + $0x78] sm:$0xff] %v7147_v16 }
 0x4cb   : > { %8789 = shalt.err (!%p8786_p6)
}
 0x4cc   : > { %s8790_s30 = scalar_lea.hbm %s11085_s25, 2048  ;;  %s8794_s16 = scalar_lea.hbm %s11154_s10, 8192 }
 0x4cd   : > { %p8791_p7 = scmp.ne.s32.totalorder %s11085_s25, %s8790_s30  ;;  %p8795_p11 = scmp.lt.u32.totalorder %s11085_s25, %s11154_s10 }
 0x4ce   : > { %p8796_p12 = scmp.lt.u32.totalorder %s8794_s16, %s8790_s30  ;;  %p8798_p0 = scmp.lt.u32.totalorder %s8790_s30, %s11085_s25 }
 0x4cf   : > { %p8792_p9 = pnand %p8791_p7, %p8984_p3 }
 0x4d0   : > { %p8797_p13 = por %p8796_p12, %p8795_p11 }
 0x4d1   : > { %p8793_p10 = pneg %p8792_p9 }
 0x4d2   : > { %p8799_p1 = por %p8798_p0, %p8797_p13 }
 0x4d4   : > { %p8800_p2 = pnand %p8799_p1, %p8793_p10 }
 0x4d6   : > { %8803 = shalt.err (!%p8800_p2)
}
 0x4d7   : > { %s8876_s29 = smov 128   ;;  %s8877_s12 = smov 8  }
 0x4d8   : > { %8572 = dma.vmem_to_hbm [thread:$0]  (%p8984_p3), %s11087_s17, 2048, %s11085_s25, %s11092_s28, %s8876_s29, %s8876_s29, %s8877_s12  }
 0x4d9 PF: > { %p8578_p4 = scmp.ge.s32.totalorder %s8870_s20, 2  ;;  %s7212_s18 = sand.u32 1, %s8842_s13  }
 0x4da   : > { %s7213_s23 = scalar_lea.sflag [#allocation5], %s7212_s18 }
 0x4db   : > { %p8575_p5 = pnand %p8578_p4, %p8993_p8 }
 0x4dd   : > { %8837 = dma.done.wait (!%p8575_p5), %s7213_s23, 2048  }
 0x4de   : > { %8839 = vsyncadd (!%p8575_p5), %s7213_s23, 4294965248  ;;  %s23_s20 = sadd.s32 1, %s8870_s20   ;;  %s11211_s16 = sld [smem:[#allocation7_spill]] }
 0x4df   : > { %p20_p6 = scmp.ge.s32.totalorder %s23_s20, 6   ;;  %s11212_s17 = sld [smem:[#allocation8_spill]] }
 0x4e0   : > { %s11213_s18 = sld [smem:[#allocation9_spill]]  ;;  %s11214_s19 = sld [smem:[#allocation10_spill]] }
 0x4e1   : > { %s11215_s13 = smov %s8846_s14  ;;  %s11216_s14 = smov %s8850_s15 }
 0x4e2   : > { %s11217_s15 = smov %s9002_s11  ;;  %22 = sbr.rel (!%p20_p6) target bundleno = 5 (0x5), region = 105 }
 0x4e9   :  { %7218 = vsyncpa [#allocation5], 1 }
 0x4ea   :  { %7220 = vsyncpa [#allocation5 + $0x1], 1 }

</bundles_post_ra>
